<compile_context>
chip_gen: v6e
topology: v6e:2x2x1
jax: 0.10.0
libtpu: 0.0.40
codegen_flags: <defaults>
</compile_context>

<pallas_src>
import math
import numpy as np

import jax
import jax.numpy as jnp
from jax import lax
from jax.experimental import pallas as pl
from jax.experimental.pallas import tpu as pltpu


def _sigmoid(z):
    # Explicit formulation: guaranteed Mosaic lowering (exp + add + div).
    return 1.0 / (1.0 + jnp.exp(-z))


def _make_lstm_kernel(seq_len, hidden, inner_unroll):
    """Fused-gate LSTM recurrence kernel.

    Gate packing along the fused 4H axis is (i, f, o, g): the three sigmoid
    gates form one contiguous 3H slab (single wide sigmoid) and the tanh
    candidate is the trailing H lanes (single wide tanh).
    """
    H = hidden

    def kernel(x_ref, wx_ref, wh_ref, b_ref,        # inputs
               y_ref, hn_ref, cn_ref,                # outputs
               h_sc, c_sc, xp_sc):                   # scratch
        # Grid = (batch_tiles, time_chunks).  Time MUST stay the innermost,
        # "arbitrary" axis: h_sc / c_sc carry the recurrent state across it.
        t_blk = pl.program_id(1)

        @pl.when(t_blk == 0)
        def _init():
            # CustomRNN.init_hidden(): zeros for every member of the hidden tuple.
            h_sc[...] = jnp.zeros_like(h_sc)
            c_sc[...] = jnp.zeros_like(c_sc)

        Tc, Bt, I = x_ref.shape
        cdt = wx_ref.dtype               # MXU operand dtype (f32, or bf16)

        # ---- Hoisted, time-parallel input projection for the whole chunk ----
        # MultiLinear x-term for all Tc steps at once + single bias add:
        #   (Tc*Bt, I) @ (I, 4H) + (1, 4H).  Bt is a multiple of 8, so the
        # (Tc, Bt, .) <-> (Tc*Bt, .) folds are sublane-aligned and cheap.
        # The result is parked in VMEM scratch and streamed per step so the
        # recurrence never holds the whole chunk's projection in vregs.
        x_all = x_ref[...].astype(cdt).reshape(Tc * Bt, I)
        xp = jnp.dot(x_all, wx_ref[...],
                     preferred_element_type=jnp.float32) + b_ref[...]
        xp_sc[...] = xp.reshape(Tc, Bt, 4 * H)

        wh = wh_ref[...]                 # (H, 4H): resident, single-buffered

        def step(t, carry):
            h, c = carry
            # MultiLinear h-term: the only matmul on the serial critical path.
            pre = xp_sc[t] + jnp.dot(h.astype(cdt), wh,
                                     preferred_element_type=jnp.float32)
            sg = _sigmoid(pre[:, :3 * H])            # i | f | o  (one EUP slab)
            g = jnp.tanh(pre[:, 3 * H:])             # candidate   (one EUP slab)
            i_g = sg[:, :H]
            f_g = sg[:, H:2 * H]
            o_g = sg[:, 2 * H:3 * H]
            # h_new_1 = sum(prod(f, c_prev), prod(i, g))
            c_new = f_g * c + i_g * g
            # h_new_0 = prod(o, activation_tanh(h_new_1))
            h_new = o_g * jnp.tanh(c_new)
            # Lane-dense (Bt, H) store.  Rows past the real sequence length land
            # in the padded tail of the last chunk's block and are dropped by
            # Pallas at writeback.
            y_ref[t] = h_new.astype(y_ref.dtype)
            # Mask the carry so the padded tail never pollutes the state
            # (select, not multiply -> garbage/NaN in the pad cannot propagate).
            valid = (t_blk * Tc + t) < seq_len
            h = jnp.where(valid, h_new, h)
            c = jnp.where(valid, c_new, c)
            return h, c

        h, c = lax.fori_loop(0, Tc, step, (h_sc[...], c_sc[...]),
                             unroll=inner_unroll)
        h_sc[...] = h
        c_sc[...] = c

        # Final hidden tuple: written once, on the last time chunk only.
        @pl.when(t_blk == pl.num_programs(1) - 1)
        def _final():
            hn_ref[0] = h.astype(hn_ref.dtype)
            cn_ref[0] = c.astype(cn_ref.dtype)

    return kernel


def _vmem_budget_bytes():
    """Generation-aware VMEM budget: v7x has 64 MiB/TC, v5e/v6e have 128 MiB."""
    try:
        kind = jax.devices()[0].device_kind.lower()
    except Exception:
        kind = ""
    if "v7" in kind:
        return 56 * 1024 * 1024
    return 100 * 1024 * 1024


def _pick_time_chunk(T, Bt, I, H, x_bytes, w_bytes, y_bytes, budget_bytes):
    """Largest Tc whose double-buffered x/y chunks + resident weights +
    xp/h/c scratch (+ headroom for compiler temps) fit the VMEM budget."""
    fixed = ((I + H) * 4 * H + 4 * H) * w_bytes      # Wx, Wh, bias (1-buffered)
    fixed += 2 * Bt * H * 4                          # h / c carry scratch (f32)
    per_tc = (2 * Bt * I * x_bytes                   # x chunk, double-buffered
              + 2 * Bt * H * y_bytes                 # y chunk, double-buffered
              + 2 * Bt * 4 * H * 4)                  # xp scratch + matmul temp
    avail = budget_bytes - fixed - (4 << 20)         # headroom
    if avail <= per_tc:
        return 1
    return int(max(1, min(T, 256, avail // per_tc)))


def custom_rnn_forward(x, wx, wh, b, *, time_chunk=None, batch_tile=None,
                       compute_dtype=None, out_dtype=jnp.float32,
                       vmem_limit_bytes=None):
    """LSTM-recipe CustomRNN forward.

    x:  (T, B, I)  time-major inputs (matches torch.unbind(inputs, dim=0)).
    wx: (I, 4H), wh: (H, 4H), b: (1, 4H); fused gate order (i, f, o, g).

    Returns (y (T, B, H), (h_final (1, B, H), c_final (1, B, H))).

    compute_dtype=jnp.bfloat16 (v6e/v7x): streams x and holds Wx/Wh in bf16,
    f32 accumulation and f32 h/c state kept.  batch_tile=B//2 engages the
    second TensorCore on v7x (needs B//2 % 8 == 0 and H % 128 == 0).
    """
    T, B, I = x.shape
    H = wh.shape[0]
    assert wx.shape == (I, 4 * H) and wh.shape == (H, 4 * H) and b.shape == (1, 4 * H)

    if compute_dtype is not None:
        x = x.astype(compute_dtype)
        wx = wx.astype(compute_dtype)
        wh = wh.astype(compute_dtype)
    b = b.astype(jnp.float32)

    if batch_tile is None:
        batch_tile = B                   # >1 tiles only pays off on v7x megacore
    Bt = int(batch_tile)
    assert B % Bt == 0, "batch_tile must divide B"
    if Bt != B:
        sub = 16 if x.dtype == jnp.bfloat16 else 8
        assert Bt % sub == 0 and H % 128 == 0, (
            "batch tiling needs Bt %% %d == 0 and H %% 128 == 0 to satisfy the "
            "(8, 128) block rule" % sub)
    nb = B // Bt

    if vmem_limit_bytes is None:
        vmem_limit_bytes = _vmem_budget_bytes()
    if time_chunk is None:
        time_chunk = _pick_time_chunk(
            T, Bt, I, H, x.dtype.itemsize, wx.dtype.itemsize,
            jnp.dtype(out_dtype).itemsize, vmem_limit_bytes)
    Tc = int(time_chunk)
    nt = pl.cdiv(T, Tc)                  # masked tail: Tc need not divide T

    kernel = _make_lstm_kernel(seq_len=T, hidden=H,
                               inner_unroll=max(1, min(8, Tc)))

    def _call(single_buffer_weights):
        w_kw = {"pipeline_mode": pl.Buffered(1)} if single_buffer_weights else {}
        grid_spec = pltpu.PrefetchScalarGridSpec(
            num_scalar_prefetch=0,
            grid=(nb, nt),               # time innermost -> state carry is legal
            in_specs=[
                pl.BlockSpec((Tc, Bt, I), lambda bi, ti: (ti, bi, 0)),       # x
                pl.BlockSpec((I, 4 * H), lambda bi, ti: (0, 0), **w_kw),     # Wx
                pl.BlockSpec((H, 4 * H), lambda bi, ti: (0, 0), **w_kw),     # Wh
                pl.BlockSpec((1, 4 * H), lambda bi, ti: (0, 0), **w_kw),     # bias
            ],
            out_specs=[
                pl.BlockSpec((Tc, Bt, H), lambda bi, ti: (ti, bi, 0)),       # y
                pl.BlockSpec((1, Bt, H), lambda bi, ti: (0, bi, 0)),         # h_n
                pl.BlockSpec((1, Bt, H), lambda bi, ti: (0, bi, 0)),         # c_n
            ],
            scratch_shapes=[
                pltpu.VMEM((Bt, H), jnp.float32),             # h carry
                pltpu.VMEM((Bt, H), jnp.float32),             # c carry
                pltpu.VMEM((Tc, Bt, 4 * H), jnp.float32),     # streamed x-proj
            ],
        )
        return pl.pallas_call(
            kernel,
            out_shape=(
                jax.ShapeDtypeStruct((T, B, H), out_dtype),
                jax.ShapeDtypeStruct((1, B, H), jnp.float32),
                jax.ShapeDtypeStruct((1, B, H), jnp.float32),
            ),
            grid_spec=grid_spec,
            compiler_params=pltpu.CompilerParams(
                # Batch tiles are independent (megacore shard on v7x); time is
                # serial and must stay "arbitrary" + innermost (state carry).
                dimension_semantics=("parallel", "arbitrary"),
                vmem_limit_bytes=int(vmem_limit_bytes),
            ),
        )(x, wx, wh, b)

    try:
        y, h_fin, c_fin = _call(single_buffer_weights=True)
    except Exception:
        # Fallback for JAX builds whose TPU pipeliner rejects pipeline_mode:
        # default double-buffered weights (correct, slightly more VMEM).
        y, h_fin, c_fin = _call(single_buffer_weights=False)

    return y, (h_fin, c_fin)


def _reference_forward(x, wx, wh, b):
    """Pure-JAX reference mirroring the PyTorch LSTM recipe, gate order (i,f,o,g)."""
    T, B, I = x.shape
    H = wh.shape[0]
    hi = lax.Precision.HIGHEST

    def step(carry, xt):
        h, c = carry
        pre = (jnp.dot(xt, wx, precision=hi)
               + jnp.dot(h, wh, precision=hi) + b[0])
        sg = jax.nn.sigmoid(pre[:, :3 * H])
        g = jnp.tanh(pre[:, 3 * H:])
        c_new = sg[:, H:2 * H] * c + sg[:, :H] * g
        h_new = sg[:, 2 * H:3 * H] * jnp.tanh(c_new)
        return (h_new, c_new), h_new

    init = (jnp.zeros((B, H), jnp.float32), jnp.zeros((B, H), jnp.float32))
    (h_fin, c_fin), ys = lax.scan(step, init, x)
    return ys, (h_fin[None], c_fin[None])


if __name__ == "__main__":
    # Small but vreg-aligned demo shapes: batch=8 (full 8 sublanes), hidden=128
    # (full 128-lane vreg; 4H=512 is 256-aligned for the v6e/v7x MXU), input=16,
    # seq=12.  time_chunk=8 with T=12 exercises BOTH the cross-chunk state
    # carry and the masked tail chunk of the cdiv grid.
    T, B, I, H = 12, 8, 16, 128

    key = jax.random.PRNGKey(0)
    kx, kwx, kwh, kb = jax.random.split(key, 4)

    # reset_parameters(): uniform(-stdv, stdv), stdv = 1/sqrt(hidden_size)
    stdv = 1.0 / math.sqrt(H)
    x = jax.random.normal(kx, (T, B, I), dtype=jnp.float32)
    wx = jax.random.uniform(kwx, (I, 4 * H), jnp.float32, -stdv, stdv)
    wh = jax.random.uniform(kwh, (H, 4 * H), jnp.float32, -stdv, stdv)
    b = jax.random.uniform(kb, (1, 4 * H), jnp.float32, -stdv, stdv)

    # f32 end-to-end so the strict reference check holds; on v6e/v7x pass
    # compute_dtype=jnp.bfloat16 (and loosen the tolerance) for bandwidth.
    y, (h_fin, c_fin) = custom_rnn_forward(x, wx, wh, b, time_chunk=8)
    jax.block_until_ready((y, h_fin, c_fin))

    y_ref, (h_ref, c_ref) = _reference_forward(x, wx, wh, b)
    np.testing.assert_allclose(np.asarray(y), np.asarray(y_ref), rtol=1e-4, atol=1e-4)
    np.testing.assert_allclose(np.asarray(h_fin), np.asarray(h_ref), rtol=1e-4, atol=1e-4)
    np.testing.assert_allclose(np.asarray(c_fin), np.asarray(c_ref), rtol=1e-4, atol=1e-4)

    print("KERNEL_OK")
</pallas_src>

<mosaic_0001>
module attributes {stable_mosaic.version = 11 : i64} {
  func.func @kernel(%arg0: i32, %arg1: i32, %arg2: memref<8x8x16xf32, #tpu.memory_space<vmem>>, %arg3: memref<16x512xf32, #tpu.memory_space<vmem>>, %arg4: memref<128x512xf32, #tpu.memory_space<vmem>>, %arg5: memref<1x512xf32, #tpu.memory_space<vmem>>, %arg6: memref<8x8x128xf32, #tpu.memory_space<vmem>>, %arg7: memref<1x8x128xf32, #tpu.memory_space<vmem>>, %arg8: memref<1x8x128xf32, #tpu.memory_space<vmem>>, %arg9: memref<8x128xf32, #tpu.memory_space<vmem>>, %arg10: memref<8x128xf32, #tpu.memory_space<vmem>>, %arg11: memref<8x8x512xf32, #tpu.memory_space<vmem>>) attributes {dimension_semantics = [#tpu.dimension_semantics<parallel>, #tpu.dimension_semantics<arbitrary>], iteration_bounds = array<i64: 1, 2>, scalar_prefetch = 0 : i64, scratch_operands = 3 : i64, tpu.core_type = #tpu.core_type<tc>, window_params = [{transform_indices = @transform_0, window_bounds = array<i64: 8, 8, 16>}, {pipeline_mode = #tpu.pipeline_mode<synchronous>, transform_indices = @transform_1, window_bounds = array<i64: 16, 512>}, {pipeline_mode = #tpu.pipeline_mode<synchronous>, transform_indices = @transform_2, window_bounds = array<i64: 128, 512>}, {pipeline_mode = #tpu.pipeline_mode<synchronous>, transform_indices = @transform_3, window_bounds = array<i64: 1, 512>}, {transform_indices = @transform_4, window_bounds = array<i64: 8, 8, 128>}, {transform_indices = @transform_5, window_bounds = array<i64: 1, 8, 128>}, {transform_indices = @transform_6, window_bounds = array<i64: 1, 8, 128>}]} {
    %c0_i32 = arith.constant 0 : i32
    %0 = arith.cmpi eq, %arg1, %c0_i32 : i32
    %1 = arith.extui %0 : i1 to i32
    %c0_i32_0 = arith.constant 0 : i32
    %2 = arith.cmpi ne, %1, %c0_i32_0 : i32
    scf.if %2 {
      %cst_102 = arith.constant 0.000000e+00 : f32
      %276 = vector.broadcast %cst_102 : f32 to vector<8x128xf32>
      %c0_103 = arith.constant 0 : index
      %c0_104 = arith.constant 0 : index
      %277 = vector.load %arg9[%c0_103, %c0_104] : memref<8x128xf32, #tpu.memory_space<vmem>>, vector<8x128xf32>
      tpu.vector_store %arg9[%c0_103, %c0_104], %276 {strides = array<i32>} : memref<8x128xf32, #tpu.memory_space<vmem>>, vector<8x128xf32>,
      %cst_105 = arith.constant 0.000000e+00 : f32
      %278 = vector.broadcast %cst_105 : f32 to vector<8x128xf32>
      %c0_106 = arith.constant 0 : index
      %c0_107 = arith.constant 0 : index
      %279 = vector.load %arg10[%c0_106, %c0_107] : memref<8x128xf32, #tpu.memory_space<vmem>>, vector<8x128xf32>
      tpu.vector_store %arg10[%c0_106, %c0_107], %278 {strides = array<i32>} : memref<8x128xf32, #tpu.memory_space<vmem>>, vector<8x128xf32>,
    } else {
    }
    %c0 = arith.constant 0 : index
    %c0_1 = arith.constant 0 : index
    %c0_2 = arith.constant 0 : index
    %3 = vector.load %arg2[%c0, %c0_1, %c0_2] : memref<8x8x16xf32, #tpu.memory_space<vmem>>, vector<8x8x16xf32>
    %4 = vector.shape_cast %3 : vector<8x8x16xf32> to vector<64x16xf32>
    %c0_3 = arith.constant 0 : index
    %c0_4 = arith.constant 0 : index
    %5 = vector.load %arg3[%c0_3, %c0_4] : memref<16x512xf32, #tpu.memory_space<vmem>>, vector<16x512xf32>
    %cst = arith.constant dense<0.000000e+00> : vector<64x512xf32>
    %6 = tpu.matmul %4, %5, %cst {dimension_numbers = #tpu.dot_dimension_numbers<[1], [0], [0], [1], [0, 0, 1, 1], [], []>} : vector<64x16xf32>, vector<16x512xf32>, vector<64x512xf32> -> vector<64x512xf32>
    %c0_5 = arith.constant 0 : index
    %c0_6 = arith.constant 0 : index
    %7 = vector.load %arg5[%c0_5, %c0_6] : memref<1x512xf32, #tpu.memory_space<vmem>>, vector<1x512xf32>
    %8 = vector.broadcast %7 : vector<1x512xf32> to vector<64x512xf32>
    %9 = arith.addf %6, %8 : vector<64x512xf32>
    %10 = vector.shape_cast %9 : vector<64x512xf32> to vector<8x8x512xf32>
    %c0_7 = arith.constant 0 : index
    %c0_8 = arith.constant 0 : index
    %c0_9 = arith.constant 0 : index
    %11 = vector.load %arg11[%c0_7, %c0_8, %c0_9] : memref<8x8x512xf32, #tpu.memory_space<vmem>>, vector<8x8x512xf32>
    tpu.vector_store %arg11[%c0_7, %c0_8, %c0_9], %10 {strides = array<i32>} : memref<8x8x512xf32, #tpu.memory_space<vmem>>, vector<8x8x512xf32>,
    %c0_10 = arith.constant 0 : index
    %c0_11 = arith.constant 0 : index
    %12 = vector.load %arg4[%c0_10, %c0_11] : memref<128x512xf32, #tpu.memory_space<vmem>>, vector<128x512xf32>
    %c0_12 = arith.constant 0 : index
    %c0_13 = arith.constant 0 : index
    %13 = vector.load %arg9[%c0_12, %c0_13] : memref<8x128xf32, #tpu.memory_space<vmem>>, vector<8x128xf32>
    %c0_14 = arith.constant 0 : index
    %c0_15 = arith.constant 0 : index
    %14 = vector.load %arg10[%c0_14, %c0_15] : memref<8x128xf32, #tpu.memory_space<vmem>>, vector<8x128xf32>
    %c0_i32_16 = arith.constant 0 : i32
    %15 = arith.index_cast %c0_i32_16 : i32 to index
    %c0_17 = arith.constant 0 : index
    %c0_18 = arith.constant 0 : index
    %16 = vector.load %arg11[%15, %c0_17, %c0_18] : memref<8x8x512xf32, #tpu.memory_space<vmem>>, vector<1x8x512xf32>
    %17 = vector.shape_cast %16 : vector<1x8x512xf32> to vector<8x512xf32>
    %cst_19 = arith.constant dense<0.000000e+00> : vector<8x512xf32>
    %18 = tpu.matmul %13, %12, %cst_19 {dimension_numbers = #tpu.dot_dimension_numbers<[1], [0], [0], [1], [0, 0, 1, 1], [], []>} : vector<8x128xf32>, vector<128x512xf32>, vector<8x512xf32> -> vector<8x512xf32>
    %19 = arith.addf %17, %18 : vector<8x512xf32>
    %20 = vector.extract_strided_slice %19 {offsets = [0, 0], sizes = [8, 384], strides = [1, 1]} : vector<8x512xf32> to vector<8x384xf32>
    %cst_20 = arith.constant 0.000000e+00 : f32
    %21 = vector.broadcast %cst_20 : f32 to vector<8x384xf32>
    %22 = arith.subf %21, %20 : vector<8x384xf32>
    %23 = math.exp %22 : vector<8x384xf32>
    %cst_21 = arith.constant 1.000000e+00 : f32
    %24 = vector.broadcast %cst_21 : f32 to vector<8x384xf32>
    %25 = arith.addf %24, %23 : vector<8x384xf32>
    %cst_22 = arith.constant 1.000000e+00 : f32
    %26 = vector.broadcast %cst_22 : f32 to vector<8x384xf32>
    %27 = arith.divf %26, %25 : vector<8x384xf32>
    %28 = vector.extract_strided_slice %19 {offsets = [0, 384], sizes = [8, 128], strides = [1, 1]} : vector<8x512xf32> to vector<8x128xf32>
    %29 = math.tanh %28 : vector<8x128xf32>
    %30 = vector.extract_strided_slice %27 {offsets = [0, 0], sizes = [8, 128], strides = [1, 1]} : vector<8x384xf32> to vector<8x128xf32>
    %31 = vector.extract_strided_slice %27 {offsets = [0, 128], sizes = [8, 128], strides = [1, 1]} : vector<8x384xf32> to vector<8x128xf32>
    %32 = vector.extract_strided_slice %27 {offsets = [0, 256], sizes = [8, 128], strides = [1, 1]} : vector<8x384xf32> to vector<8x128xf32>
    %33 = arith.mulf %31, %14 : vector<8x128xf32>
    %34 = arith.mulf %30, %29 : vector<8x128xf32>
    %35 = arith.addf %33, %34 : vector<8x128xf32>
    %36 = math.tanh %35 : vector<8x128xf32>
    %37 = arith.mulf %32, %36 : vector<8x128xf32>
    %38 = arith.index_cast %c0_i32_16 : i32 to index
    %c0_23 = arith.constant 0 : index
    %c0_24 = arith.constant 0 : index
    %39 = vector.load %arg6[%38, %c0_23, %c0_24] : memref<8x8x128xf32, #tpu.memory_space<vmem>>, vector<1x8x128xf32>
    %40 = vector.shape_cast %39 : vector<1x8x128xf32> to vector<8x128xf32>
    %41 = vector.shape_cast %37 : vector<8x128xf32> to vector<1x8x128xf32>
    tpu.vector_store %arg6[%38, %c0_23, %c0_24], %41 {strides = array<i32>} : memref<8x8x128xf32, #tpu.memory_space<vmem>>, vector<1x8x128xf32>,
    %c8_i32 = arith.constant 8 : i32
    %42 = arith.muli %arg1, %c8_i32 : i32
    %43 = arith.addi %42, %c0_i32_16 : i32
    %c12_i32 = arith.constant 12 : i32
    %44 = arith.cmpi slt, %43, %c12_i32 : i32
    %45 = arith.select %44, %37, %13 : vector<8x128xf32>
    %46 = arith.select %44, %35, %14 : vector<8x128xf32>
    %c1_i32 = arith.constant 1 : i32
    %47 = arith.index_cast %c1_i32 : i32 to index
    %c0_25 = arith.constant 0 : index
    %c0_26 = arith.constant 0 : index
    %48 = vector.load %arg11[%47, %c0_25, %c0_26] : memref<8x8x512xf32, #tpu.memory_space<vmem>>, vector<1x8x512xf32>
    %49 = vector.shape_cast %48 : vector<1x8x512xf32> to vector<8x512xf32>
    %cst_27 = arith.constant dense<0.000000e+00> : vector<8x512xf32>
    %50 = tpu.matmul %45, %12, %cst_27 {dimension_numbers = #tpu.dot_dimension_numbers<[1], [0], [0], [1], [0, 0, 1, 1], [], []>} : vector<8x128xf32>, vector<128x512xf32>, vector<8x512xf32> -> vector<8x512xf32>
    %51 = arith.addf %49, %50 : vector<8x512xf32>
    %52 = vector.extract_strided_slice %51 {offsets = [0, 0], sizes = [8, 384], strides = [1, 1]} : vector<8x512xf32> to vector<8x384xf32>
    %cst_28 = arith.constant 0.000000e+00 : f32
    %53 = vector.broadcast %cst_28 : f32 to vector<8x384xf32>
    %54 = arith.subf %53, %52 : vector<8x384xf32>
    %55 = math.exp %54 : vector<8x384xf32>
    %cst_29 = arith.constant 1.000000e+00 : f32
    %56 = vector.broadcast %cst_29 : f32 to vector<8x384xf32>
    %57 = arith.addf %56, %55 : vector<8x384xf32>
    %cst_30 = arith.constant 1.000000e+00 : f32
    %58 = vector.broadcast %cst_30 : f32 to vector<8x384xf32>
    %59 = arith.divf %58, %57 : vector<8x384xf32>
    %60 = vector.extract_strided_slice %51 {offsets = [0, 384], sizes = [8, 128], strides = [1, 1]} : vector<8x512xf32> to vector<8x128xf32>
    %61 = math.tanh %60 : vector<8x128xf32>
    %62 = vector.extract_strided_slice %59 {offsets = [0, 0], sizes = [8, 128], strides = [1, 1]} : vector<8x384xf32> to vector<8x128xf32>
    %63 = vector.extract_strided_slice %59 {offsets = [0, 128], sizes = [8, 128], strides = [1, 1]} : vector<8x384xf32> to vector<8x128xf32>
    %64 = vector.extract_strided_slice %59 {offsets = [0, 256], sizes = [8, 128], strides = [1, 1]} : vector<8x384xf32> to vector<8x128xf32>
    %65 = arith.mulf %63, %46 : vector<8x128xf32>
    %66 = arith.mulf %62, %61 : vector<8x128xf32>
    %67 = arith.addf %65, %66 : vector<8x128xf32>
    %68 = math.tanh %67 : vector<8x128xf32>
    %69 = arith.mulf %64, %68 : vector<8x128xf32>
    %70 = arith.index_cast %c1_i32 : i32 to index
    %c0_31 = arith.constant 0 : index
    %c0_32 = arith.constant 0 : index
    %71 = vector.load %arg6[%70, %c0_31, %c0_32] : memref<8x8x128xf32, #tpu.memory_space<vmem>>, vector<1x8x128xf32>
    %72 = vector.shape_cast %71 : vector<1x8x128xf32> to vector<8x128xf32>
    %73 = vector.shape_cast %69 : vector<8x128xf32> to vector<1x8x128xf32>
    tpu.vector_store %arg6[%70, %c0_31, %c0_32], %73 {strides = array<i32>} : memref<8x8x128xf32, #tpu.memory_space<vmem>>, vector<1x8x128xf32>,
    %c8_i32_33 = arith.constant 8 : i32
    %74 = arith.muli %arg1, %c8_i32_33 : i32
    %75 = arith.addi %74, %c1_i32 : i32
    %c12_i32_34 = arith.constant 12 : i32
    %76 = arith.cmpi slt, %75, %c12_i32_34 : i32
    %77 = arith.select %76, %69, %45 : vector<8x128xf32>
    %78 = arith.select %76, %67, %46 : vector<8x128xf32>
    %c2_i32 = arith.constant 2 : i32
    %79 = arith.index_cast %c2_i32 : i32 to index
    %c0_35 = arith.constant 0 : index
    %c0_36 = arith.constant 0 : index
    %80 = vector.load %arg11[%79, %c0_35, %c0_36] : memref<8x8x512xf32, #tpu.memory_space<vmem>>, vector<1x8x512xf32>
    %81 = vector.shape_cast %80 : vector<1x8x512xf32> to vector<8x512xf32>
    %cst_37 = arith.constant dense<0.000000e+00> : vector<8x512xf32>
    %82 = tpu.matmul %77, %12, %cst_37 {dimension_numbers = #tpu.dot_dimension_numbers<[1], [0], [0], [1], [0, 0, 1, 1], [], []>} : vector<8x128xf32>, vector<128x512xf32>, vector<8x512xf32> -> vector<8x512xf32>
    %83 = arith.addf %81, %82 : vector<8x512xf32>
    %84 = vector.extract_strided_slice %83 {offsets = [0, 0], sizes = [8, 384], strides = [1, 1]} : vector<8x512xf32> to vector<8x384xf32>
    %cst_38 = arith.constant 0.000000e+00 : f32
    %85 = vector.broadcast %cst_38 : f32 to vector<8x384xf32>
    %86 = arith.subf %85, %84 : vector<8x384xf32>
    %87 = math.exp %86 : vector<8x384xf32>
    %cst_39 = arith.constant 1.000000e+00 : f32
    %88 = vector.broadcast %cst_39 : f32 to vector<8x384xf32>
    %89 = arith.addf %88, %87 : vector<8x384xf32>
    %cst_40 = arith.constant 1.000000e+00 : f32
    %90 = vector.broadcast %cst_40 : f32 to vector<8x384xf32>
    %91 = arith.divf %90, %89 : vector<8x384xf32>
    %92 = vector.extract_strided_slice %83 {offsets = [0, 384], sizes = [8, 128], strides = [1, 1]} : vector<8x512xf32> to vector<8x128xf32>
    %93 = math.tanh %92 : vector<8x128xf32>
    %94 = vector.extract_strided_slice %91 {offsets = [0, 0], sizes = [8, 128], strides = [1, 1]} : vector<8x384xf32> to vector<8x128xf32>
    %95 = vector.extract_strided_slice %91 {offsets = [0, 128], sizes = [8, 128], strides = [1, 1]} : vector<8x384xf32> to vector<8x128xf32>
    %96 = vector.extract_strided_slice %91 {offsets = [0, 256], sizes = [8, 128], strides = [1, 1]} : vector<8x384xf32> to vector<8x128xf32>
    %97 = arith.mulf %95, %78 : vector<8x128xf32>
    %98 = arith.mulf %94, %93 : vector<8x128xf32>
    %99 = arith.addf %97, %98 : vector<8x128xf32>
    %100 = math.tanh %99 : vector<8x128xf32>
    %101 = arith.mulf %96, %100 : vector<8x128xf32>
    %102 = arith.index_cast %c2_i32 : i32 to index
    %c0_41 = arith.constant 0 : index
    %c0_42 = arith.constant 0 : index
    %103 = vector.load %arg6[%102, %c0_41, %c0_42] : memref<8x8x128xf32, #tpu.memory_space<vmem>>, vector<1x8x128xf32>
    %104 = vector.shape_cast %103 : vector<1x8x128xf32> to vector<8x128xf32>
    %105 = vector.shape_cast %101 : vector<8x128xf32> to vector<1x8x128xf32>
    tpu.vector_store %arg6[%102, %c0_41, %c0_42], %105 {strides = array<i32>} : memref<8x8x128xf32, #tpu.memory_space<vmem>>, vector<1x8x128xf32>,
    %c8_i32_43 = arith.constant 8 : i32
    %106 = arith.muli %arg1, %c8_i32_43 : i32
    %107 = arith.addi %106, %c2_i32 : i32
    %c12_i32_44 = arith.constant 12 : i32
    %108 = arith.cmpi slt, %107, %c12_i32_44 : i32
    %109 = arith.select %108, %101, %77 : vector<8x128xf32>
    %110 = arith.select %108, %99, %78 : vector<8x128xf32>
    %c3_i32 = arith.constant 3 : i32
    %111 = arith.index_cast %c3_i32 : i32 to index
    %c0_45 = arith.constant 0 : index
    %c0_46 = arith.constant 0 : index
    %112 = vector.load %arg11[%111, %c0_45, %c0_46] : memref<8x8x512xf32, #tpu.memory_space<vmem>>, vector<1x8x512xf32>
    %113 = vector.shape_cast %112 : vector<1x8x512xf32> to vector<8x512xf32>
    %cst_47 = arith.constant dense<0.000000e+00> : vector<8x512xf32>
    %114 = tpu.matmul %109, %12, %cst_47 {dimension_numbers = #tpu.dot_dimension_numbers<[1], [0], [0], [1], [0, 0, 1, 1], [], []>} : vector<8x128xf32>, vector<128x512xf32>, vector<8x512xf32> -> vector<8x512xf32>
    %115 = arith.addf %113, %114 : vector<8x512xf32>
    %116 = vector.extract_strided_slice %115 {offsets = [0, 0], sizes = [8, 384], strides = [1, 1]} : vector<8x512xf32> to vector<8x384xf32>
    %cst_48 = arith.constant 0.000000e+00 : f32
    %117 = vector.broadcast %cst_48 : f32 to vector<8x384xf32>
    %118 = arith.subf %117, %116 : vector<8x384xf32>
    %119 = math.exp %118 : vector<8x384xf32>
    %cst_49 = arith.constant 1.000000e+00 : f32
    %120 = vector.broadcast %cst_49 : f32 to vector<8x384xf32>
    %121 = arith.addf %120, %119 : vector<8x384xf32>
    %cst_50 = arith.constant 1.000000e+00 : f32
    %122 = vector.broadcast %cst_50 : f32 to vector<8x384xf32>
    %123 = arith.divf %122, %121 : vector<8x384xf32>
    %124 = vector.extract_strided_slice %115 {offsets = [0, 384], sizes = [8, 128], strides = [1, 1]} : vector<8x512xf32> to vector<8x128xf32>
    %125 = math.tanh %124 : vector<8x128xf32>
    %126 = vector.extract_strided_slice %123 {offsets = [0, 0], sizes = [8, 128], strides = [1, 1]} : vector<8x384xf32> to vector<8x128xf32>
    %127 = vector.extract_strided_slice %123 {offsets = [0, 128], sizes = [8, 128], strides = [1, 1]} : vector<8x384xf32> to vector<8x128xf32>
    %128 = vector.extract_strided_slice %123 {offsets = [0, 256], sizes = [8, 128], strides = [1, 1]} : vector<8x384xf32> to vector<8x128xf32>
    %129 = arith.mulf %127, %110 : vector<8x128xf32>
    %130 = arith.mulf %126, %125 : vector<8x128xf32>
    %131 = arith.addf %129, %130 : vector<8x128xf32>
    %132 = math.tanh %131 : vector<8x128xf32>
    %133 = arith.mulf %128, %132 : vector<8x128xf32>
    %134 = arith.index_cast %c3_i32 : i32 to index
    %c0_51 = arith.constant 0 : index
    %c0_52 = arith.constant 0 : index
    %135 = vector.load %arg6[%134, %c0_51, %c0_52] : memref<8x8x128xf32, #tpu.memory_space<vmem>>, vector<1x8x128xf32>
    %136 = vector.shape_cast %135 : vector<1x8x128xf32> to vector<8x128xf32>
    %137 = vector.shape_cast %133 : vector<8x128xf32> to vector<1x8x128xf32>
    tpu.vector_store %arg6[%134, %c0_51, %c0_52], %137 {strides = array<i32>} : memref<8x8x128xf32, #tpu.memory_space<vmem>>, vector<1x8x128xf32>,
    %c8_i32_53 = arith.constant 8 : i32
    %138 = arith.muli %arg1, %c8_i32_53 : i32
    %139 = arith.addi %138, %c3_i32 : i32
    %c12_i32_54 = arith.constant 12 : i32
    %140 = arith.cmpi slt, %139, %c12_i32_54 : i32
    %141 = arith.select %140, %133, %109 : vector<8x128xf32>
    %142 = arith.select %140, %131, %110 : vector<8x128xf32>
    %c4_i32 = arith.constant 4 : i32
    %143 = arith.index_cast %c4_i32 : i32 to index
    %c0_55 = arith.constant 0 : index
    %c0_56 = arith.constant 0 : index
    %144 = vector.load %arg11[%143, %c0_55, %c0_56] : memref<8x8x512xf32, #tpu.memory_space<vmem>>, vector<1x8x512xf32>
    %145 = vector.shape_cast %144 : vector<1x8x512xf32> to vector<8x512xf32>
    %cst_57 = arith.constant dense<0.000000e+00> : vector<8x512xf32>
    %146 = tpu.matmul %141, %12, %cst_57 {dimension_numbers = #tpu.dot_dimension_numbers<[1], [0], [0], [1], [0, 0, 1, 1], [], []>} : vector<8x128xf32>, vector<128x512xf32>, vector<8x512xf32> -> vector<8x512xf32>
    %147 = arith.addf %145, %146 : vector<8x512xf32>
    %148 = vector.extract_strided_slice %147 {offsets = [0, 0], sizes = [8, 384], strides = [1, 1]} : vector<8x512xf32> to vector<8x384xf32>
    %cst_58 = arith.constant 0.000000e+00 : f32
    %149 = vector.broadcast %cst_58 : f32 to vector<8x384xf32>
    %150 = arith.subf %149, %148 : vector<8x384xf32>
    %151 = math.exp %150 : vector<8x384xf32>
    %cst_59 = arith.constant 1.000000e+00 : f32
    %152 = vector.broadcast %cst_59 : f32 to vector<8x384xf32>
    %153 = arith.addf %152, %151 : vector<8x384xf32>
    %cst_60 = arith.constant 1.000000e+00 : f32
    %154 = vector.broadcast %cst_60 : f32 to vector<8x384xf32>
    %155 = arith.divf %154, %153 : vector<8x384xf32>
    %156 = vector.extract_strided_slice %147 {offsets = [0, 384], sizes = [8, 128], strides = [1, 1]} : vector<8x512xf32> to vector<8x128xf32>
    %157 = math.tanh %156 : vector<8x128xf32>
    %158 = vector.extract_strided_slice %155 {offsets = [0, 0], sizes = [8, 128], strides = [1, 1]} : vector<8x384xf32> to vector<8x128xf32>
    %159 = vector.extract_strided_slice %155 {offsets = [0, 128], sizes = [8, 128], strides = [1, 1]} : vector<8x384xf32> to vector<8x128xf32>
    %160 = vector.extract_strided_slice %155 {offsets = [0, 256], sizes = [8, 128], strides = [1, 1]} : vector<8x384xf32> to vector<8x128xf32>
    %161 = arith.mulf %159, %142 : vector<8x128xf32>
    %162 = arith.mulf %158, %157 : vector<8x128xf32>
    %163 = arith.addf %161, %162 : vector<8x128xf32>
    %164 = math.tanh %163 : vector<8x128xf32>
    %165 = arith.mulf %160, %164 : vector<8x128xf32>
    %166 = arith.index_cast %c4_i32 : i32 to index
    %c0_61 = arith.constant 0 : index
    %c0_62 = arith.constant 0 : index
    %167 = vector.load %arg6[%166, %c0_61, %c0_62] : memref<8x8x128xf32, #tpu.memory_space<vmem>>, vector<1x8x128xf32>
    %168 = vector.shape_cast %167 : vector<1x8x128xf32> to vector<8x128xf32>
    %169 = vector.shape_cast %165 : vector<8x128xf32> to vector<1x8x128xf32>
    tpu.vector_store %arg6[%166, %c0_61, %c0_62], %169 {strides = array<i32>} : memref<8x8x128xf32, #tpu.memory_space<vmem>>, vector<1x8x128xf32>,
    %c8_i32_63 = arith.constant 8 : i32
    %170 = arith.muli %arg1, %c8_i32_63 : i32
    %171 = arith.addi %170, %c4_i32 : i32
    %c12_i32_64 = arith.constant 12 : i32
    %172 = arith.cmpi slt, %171, %c12_i32_64 : i32
    %173 = arith.select %172, %165, %141 : vector<8x128xf32>
    %174 = arith.select %172, %163, %142 : vector<8x128xf32>
    %c5_i32 = arith.constant 5 : i32
    %175 = arith.index_cast %c5_i32 : i32 to index
    %c0_65 = arith.constant 0 : index
    %c0_66 = arith.constant 0 : index
    %176 = vector.load %arg11[%175, %c0_65, %c0_66] : memref<8x8x512xf32, #tpu.memory_space<vmem>>, vector<1x8x512xf32>
    %177 = vector.shape_cast %176 : vector<1x8x512xf32> to vector<8x512xf32>
    %cst_67 = arith.constant dense<0.000000e+00> : vector<8x512xf32>
    %178 = tpu.matmul %173, %12, %cst_67 {dimension_numbers = #tpu.dot_dimension_numbers<[1], [0], [0], [1], [0, 0, 1, 1], [], []>} : vector<8x128xf32>, vector<128x512xf32>, vector<8x512xf32> -> vector<8x512xf32>
    %179 = arith.addf %177, %178 : vector<8x512xf32>
    %180 = vector.extract_strided_slice %179 {offsets = [0, 0], sizes = [8, 384], strides = [1, 1]} : vector<8x512xf32> to vector<8x384xf32>
    %cst_68 = arith.constant 0.000000e+00 : f32
    %181 = vector.broadcast %cst_68 : f32 to vector<8x384xf32>
    %182 = arith.subf %181, %180 : vector<8x384xf32>
    %183 = math.exp %182 : vector<8x384xf32>
    %cst_69 = arith.constant 1.000000e+00 : f32
    %184 = vector.broadcast %cst_69 : f32 to vector<8x384xf32>
    %185 = arith.addf %184, %183 : vector<8x384xf32>
    %cst_70 = arith.constant 1.000000e+00 : f32
    %186 = vector.broadcast %cst_70 : f32 to vector<8x384xf32>
    %187 = arith.divf %186, %185 : vector<8x384xf32>
    %188 = vector.extract_strided_slice %179 {offsets = [0, 384], sizes = [8, 128], strides = [1, 1]} : vector<8x512xf32> to vector<8x128xf32>
    %189 = math.tanh %188 : vector<8x128xf32>
    %190 = vector.extract_strided_slice %187 {offsets = [0, 0], sizes = [8, 128], strides = [1, 1]} : vector<8x384xf32> to vector<8x128xf32>
    %191 = vector.extract_strided_slice %187 {offsets = [0, 128], sizes = [8, 128], strides = [1, 1]} : vector<8x384xf32> to vector<8x128xf32>
    %192 = vector.extract_strided_slice %187 {offsets = [0, 256], sizes = [8, 128], strides = [1, 1]} : vector<8x384xf32> to vector<8x128xf32>
    %193 = arith.mulf %191, %174 : vector<8x128xf32>
    %194 = arith.mulf %190, %189 : vector<8x128xf32>
    %195 = arith.addf %193, %194 : vector<8x128xf32>
    %196 = math.tanh %195 : vector<8x128xf32>
    %197 = arith.mulf %192, %196 : vector<8x128xf32>
    %198 = arith.index_cast %c5_i32 : i32 to index
    %c0_71 = arith.constant 0 : index
    %c0_72 = arith.constant 0 : index
    %199 = vector.load %arg6[%198, %c0_71, %c0_72] : memref<8x8x128xf32, #tpu.memory_space<vmem>>, vector<1x8x128xf32>
    %200 = vector.shape_cast %199 : vector<1x8x128xf32> to vector<8x128xf32>
    %201 = vector.shape_cast %197 : vector<8x128xf32> to vector<1x8x128xf32>
    tpu.vector_store %arg6[%198, %c0_71, %c0_72], %201 {strides = array<i32>} : memref<8x8x128xf32, #tpu.memory_space<vmem>>, vector<1x8x128xf32>,
    %c8_i32_73 = arith.constant 8 : i32
    %202 = arith.muli %arg1, %c8_i32_73 : i32
    %203 = arith.addi %202, %c5_i32 : i32
    %c12_i32_74 = arith.constant 12 : i32
    %204 = arith.cmpi slt, %203, %c12_i32_74 : i32
    %205 = arith.select %204, %197, %173 : vector<8x128xf32>
    %206 = arith.select %204, %195, %174 : vector<8x128xf32>
    %c6_i32 = arith.constant 6 : i32
    %207 = arith.index_cast %c6_i32 : i32 to index
    %c0_75 = arith.constant 0 : index
    %c0_76 = arith.constant 0 : index
    %208 = vector.load %arg11[%207, %c0_75, %c0_76] : memref<8x8x512xf32, #tpu.memory_space<vmem>>, vector<1x8x512xf32>
    %209 = vector.shape_cast %208 : vector<1x8x512xf32> to vector<8x512xf32>
    %cst_77 = arith.constant dense<0.000000e+00> : vector<8x512xf32>
    %210 = tpu.matmul %205, %12, %cst_77 {dimension_numbers = #tpu.dot_dimension_numbers<[1], [0], [0], [1], [0, 0, 1, 1], [], []>} : vector<8x128xf32>, vector<128x512xf32>, vector<8x512xf32> -> vector<8x512xf32>
    %211 = arith.addf %209, %210 : vector<8x512xf32>
    %212 = vector.extract_strided_slice %211 {offsets = [0, 0], sizes = [8, 384], strides = [1, 1]} : vector<8x512xf32> to vector<8x384xf32>
    %cst_78 = arith.constant 0.000000e+00 : f32
    %213 = vector.broadcast %cst_78 : f32 to vector<8x384xf32>
    %214 = arith.subf %213, %212 : vector<8x384xf32>
    %215 = math.exp %214 : vector<8x384xf32>
    %cst_79 = arith.constant 1.000000e+00 : f32
    %216 = vector.broadcast %cst_79 : f32 to vector<8x384xf32>
    %217 = arith.addf %216, %215 : vector<8x384xf32>
    %cst_80 = arith.constant 1.000000e+00 : f32
    %218 = vector.broadcast %cst_80 : f32 to vector<8x384xf32>
    %219 = arith.divf %218, %217 : vector<8x384xf32>
    %220 = vector.extract_strided_slice %211 {offsets = [0, 384], sizes = [8, 128], strides = [1, 1]} : vector<8x512xf32> to vector<8x128xf32>
    %221 = math.tanh %220 : vector<8x128xf32>
    %222 = vector.extract_strided_slice %219 {offsets = [0, 0], sizes = [8, 128], strides = [1, 1]} : vector<8x384xf32> to vector<8x128xf32>
    %223 = vector.extract_strided_slice %219 {offsets = [0, 128], sizes = [8, 128], strides = [1, 1]} : vector<8x384xf32> to vector<8x128xf32>
    %224 = vector.extract_strided_slice %219 {offsets = [0, 256], sizes = [8, 128], strides = [1, 1]} : vector<8x384xf32> to vector<8x128xf32>
    %225 = arith.mulf %223, %206 : vector<8x128xf32>
    %226 = arith.mulf %222, %221 : vector<8x128xf32>
    %227 = arith.addf %225, %226 : vector<8x128xf32>
    %228 = math.tanh %227 : vector<8x128xf32>
    %229 = arith.mulf %224, %228 : vector<8x128xf32>
    %230 = arith.index_cast %c6_i32 : i32 to index
    %c0_81 = arith.constant 0 : index
    %c0_82 = arith.constant 0 : index
    %231 = vector.load %arg6[%230, %c0_81, %c0_82] : memref<8x8x128xf32, #tpu.memory_space<vmem>>, vector<1x8x128xf32>
    %232 = vector.shape_cast %231 : vector<1x8x128xf32> to vector<8x128xf32>
    %233 = vector.shape_cast %229 : vector<8x128xf32> to vector<1x8x128xf32>
    tpu.vector_store %arg6[%230, %c0_81, %c0_82], %233 {strides = array<i32>} : memref<8x8x128xf32, #tpu.memory_space<vmem>>, vector<1x8x128xf32>,
    %c8_i32_83 = arith.constant 8 : i32
    %234 = arith.muli %arg1, %c8_i32_83 : i32
    %235 = arith.addi %234, %c6_i32 : i32
    %c12_i32_84 = arith.constant 12 : i32
    %236 = arith.cmpi slt, %235, %c12_i32_84 : i32
    %237 = arith.select %236, %229, %205 : vector<8x128xf32>
    %238 = arith.select %236, %227, %206 : vector<8x128xf32>
    %c7_i32 = arith.constant 7 : i32
    %239 = arith.index_cast %c7_i32 : i32 to index
    %c0_85 = arith.constant 0 : index
    %c0_86 = arith.constant 0 : index
    %240 = vector.load %arg11[%239, %c0_85, %c0_86] : memref<8x8x512xf32, #tpu.memory_space<vmem>>, vector<1x8x512xf32>
    %241 = vector.shape_cast %240 : vector<1x8x512xf32> to vector<8x512xf32>
    %cst_87 = arith.constant dense<0.000000e+00> : vector<8x512xf32>
    %242 = tpu.matmul %237, %12, %cst_87 {dimension_numbers = #tpu.dot_dimension_numbers<[1], [0], [0], [1], [0, 0, 1, 1], [], []>} : vector<8x128xf32>, vector<128x512xf32>, vector<8x512xf32> -> vector<8x512xf32>
    %243 = arith.addf %241, %242 : vector<8x512xf32>
    %244 = vector.extract_strided_slice %243 {offsets = [0, 0], sizes = [8, 384], strides = [1, 1]} : vector<8x512xf32> to vector<8x384xf32>
    %cst_88 = arith.constant 0.000000e+00 : f32
    %245 = vector.broadcast %cst_88 : f32 to vector<8x384xf32>
    %246 = arith.subf %245, %244 : vector<8x384xf32>
    %247 = math.exp %246 : vector<8x384xf32>
    %cst_89 = arith.constant 1.000000e+00 : f32
    %248 = vector.broadcast %cst_89 : f32 to vector<8x384xf32>
    %249 = arith.addf %248, %247 : vector<8x384xf32>
    %cst_90 = arith.constant 1.000000e+00 : f32
    %250 = vector.broadcast %cst_90 : f32 to vector<8x384xf32>
    %251 = arith.divf %250, %249 : vector<8x384xf32>
    %252 = vector.extract_strided_slice %243 {offsets = [0, 384], sizes = [8, 128], strides = [1, 1]} : vector<8x512xf32> to vector<8x128xf32>
    %253 = math.tanh %252 : vector<8x128xf32>
    %254 = vector.extract_strided_slice %251 {offsets = [0, 0], sizes = [8, 128], strides = [1, 1]} : vector<8x384xf32> to vector<8x128xf32>
    %255 = vector.extract_strided_slice %251 {offsets = [0, 128], sizes = [8, 128], strides = [1, 1]} : vector<8x384xf32> to vector<8x128xf32>
    %256 = vector.extract_strided_slice %251 {offsets = [0, 256], sizes = [8, 128], strides = [1, 1]} : vector<8x384xf32> to vector<8x128xf32>
    %257 = arith.mulf %255, %238 : vector<8x128xf32>
    %258 = arith.mulf %254, %253 : vector<8x128xf32>
    %259 = arith.addf %257, %258 : vector<8x128xf32>
    %260 = math.tanh %259 : vector<8x128xf32>
    %261 = arith.mulf %256, %260 : vector<8x128xf32>
    %262 = arith.index_cast %c7_i32 : i32 to index
    %c0_91 = arith.constant 0 : index
    %c0_92 = arith.constant 0 : index
    %263 = vector.load %arg6[%262, %c0_91, %c0_92] : memref<8x8x128xf32, #tpu.memory_space<vmem>>, vector<1x8x128xf32>
    %264 = vector.shape_cast %263 : vector<1x8x128xf32> to vector<8x128xf32>
    %265 = vector.shape_cast %261 : vector<8x128xf32> to vector<1x8x128xf32>
    tpu.vector_store %arg6[%262, %c0_91, %c0_92], %265 {strides = array<i32>} : memref<8x8x128xf32, #tpu.memory_space<vmem>>, vector<1x8x128xf32>,
    %c8_i32_93 = arith.constant 8 : i32
    %266 = arith.muli %arg1, %c8_i32_93 : i32
    %267 = arith.addi %266, %c7_i32 : i32
    %c12_i32_94 = arith.constant 12 : i32
    %268 = arith.cmpi slt, %267, %c12_i32_94 : i32
    %269 = arith.select %268, %261, %237 : vector<8x128xf32>
    %270 = arith.select %268, %259, %238 : vector<8x128xf32>
    %c8_i32_95 = arith.constant 8 : i32
    %c0_96 = arith.constant 0 : index
    %c0_97 = arith.constant 0 : index
    %271 = vector.load %arg9[%c0_96, %c0_97] : memref<8x128xf32, #tpu.memory_space<vmem>>, vector<8x128xf32>
    tpu.vector_store %arg9[%c0_96, %c0_97], %269 {strides = array<i32>} : memref<8x128xf32, #tpu.memory_space<vmem>>, vector<8x128xf32>,
    %c0_98 = arith.constant 0 : index
    %c0_99 = arith.constant 0 : index
    %272 = vector.load %arg10[%c0_98, %c0_99] : memref<8x128xf32, #tpu.memory_space<vmem>>, vector<8x128xf32>
    tpu.vector_store %arg10[%c0_98, %c0_99], %270 {strides = array<i32>} : memref<8x128xf32, #tpu.memory_space<vmem>>, vector<8x128xf32>,
    %c1_i32_100 = arith.constant 1 : i32
    %273 = arith.cmpi eq, %arg1, %c1_i32_100 : i32
    %274 = arith.extui %273 : i1 to i32
    %c0_i32_101 = arith.constant 0 : i32
    %275 = arith.cmpi ne, %274, %c0_i32_101 : i32
    scf.if %275 {
      %c0_102 = arith.constant 0 : index
      %c0_103 = arith.constant 0 : index
      %c0_104 = arith.constant 0 : index
      %276 = vector.load %arg7[%c0_102, %c0_103, %c0_104] : memref<1x8x128xf32, #tpu.memory_space<vmem>>, vector<1x8x128xf32>
      %277 = vector.shape_cast %276 : vector<1x8x128xf32> to vector<8x128xf32>
      %278 = vector.shape_cast %269 : vector<8x128xf32> to vector<1x8x128xf32>
      tpu.vector_store %arg7[%c0_102, %c0_103, %c0_104], %278 {strides = array<i32>} : memref<1x8x128xf32, #tpu.memory_space<vmem>>, vector<1x8x128xf32>,
      %c0_105 = arith.constant 0 : index
      %c0_106 = arith.constant 0 : index
      %c0_107 = arith.constant 0 : index
      %279 = vector.load %arg8[%c0_105, %c0_106, %c0_107] : memref<1x8x128xf32, #tpu.memory_space<vmem>>, vector<1x8x128xf32>
      %280 = vector.shape_cast %279 : vector<1x8x128xf32> to vector<8x128xf32>
      %281 = vector.shape_cast %270 : vector<8x128xf32> to vector<1x8x128xf32>
      tpu.vector_store %arg8[%c0_105, %c0_106, %c0_107], %281 {strides = array<i32>} : memref<1x8x128xf32, #tpu.memory_space<vmem>>, vector<1x8x128xf32>,
    } else {
    }
    return
  }
  func.func @transform_0(%arg0: i32, %arg1: i32) -> (i32, i32, i32) {
    %c0_i32 = arith.constant 0 : i32
    %c0_i32_0 = arith.constant 0 : i32
    return %arg1, %arg0, %c0_i32 : i32, i32, i32
  }
  func.func @transform_1(%arg0: i32, %arg1: i32) -> (i32, i32) {
    %c0_i32 = arith.constant 0 : i32
    %c0_i32_0 = arith.constant 0 : i32
    %c0_i32_1 = arith.constant 0 : i32
    return %c0_i32, %c0_i32_0 : i32, i32
  }
  func.func @transform_2(%arg0: i32, %arg1: i32) -> (i32, i32) {
    %c0_i32 = arith.constant 0 : i32
    %c0_i32_0 = arith.constant 0 : i32
    %c0_i32_1 = arith.constant 0 : i32
    return %c0_i32, %c0_i32_0 : i32, i32
  }
  func.func @transform_3(%arg0: i32, %arg1: i32) -> (i32, i32) {
    %c0_i32 = arith.constant 0 : i32
    %c0_i32_0 = arith.constant 0 : i32
    %c0_i32_1 = arith.constant 0 : i32
    return %c0_i32, %c0_i32_0 : i32, i32
  }
  func.func @transform_4(%arg0: i32, %arg1: i32) -> (i32, i32, i32) {
    %c0_i32 = arith.constant 0 : i32
    %c0_i32_0 = arith.constant 0 : i32
    return %arg1, %arg0, %c0_i32 : i32, i32, i32
  }
  func.func @transform_5(%arg0: i32, %arg1: i32) -> (i32, i32, i32) {
    %c0_i32 = arith.constant 0 : i32
    %c0_i32_0 = arith.constant 0 : i32
    %c0_i32_1 = arith.constant 0 : i32
    return %c0_i32, %arg0, %c0_i32_0 : i32, i32, i32
  }
  func.func @transform_6(%arg0: i32, %arg1: i32) -> (i32, i32, i32) {
    %c0_i32 = arith.constant 0 : i32
    %c0_i32_0 = arith.constant 0 : i32
    %c0_i32_1 = arith.constant 0 : i32
    return %c0_i32, %arg0, %c0_i32_0 : i32, i32, i32
  }
}

module attributes {stable_mosaic.version = 11 : i64} {
  func.func @kernel(%arg0: i32, %arg1: i32, %arg2: memref<8x8x16xf32, #tpu.memory_space<vmem>>, %arg3: memref<16x512xf32, #tpu.memory_space<vmem>>, %arg4: memref<128x512xf32, #tpu.memory_space<vmem>>, %arg5: memref<1x512xf32, #tpu.memory_space<vmem>>, %arg6: memref<8x8x128xf32, #tpu.memory_space<vmem>>, %arg7: memref<1x8x128xf32, #tpu.memory_space<vmem>>, %arg8: memref<1x8x128xf32, #tpu.memory_space<vmem>>, %arg9: memref<8x128xf32, #tpu.memory_space<vmem>>, %arg10: memref<8x128xf32, #tpu.memory_space<vmem>>, %arg11: memref<8x8x512xf32, #tpu.memory_space<vmem>>) attributes {dimension_semantics = [#tpu.dimension_semantics<parallel>, #tpu.dimension_semantics<arbitrary>], iteration_bounds = array<i64: 1, 2>, scalar_prefetch = 0 : i64, scratch_operands = 3 : i64, tpu.core_type = #tpu.core_type<tc>, window_params = [{transform_indices = @transform_0, window_bounds = array<i64: 8, 8, 16>}, {pipeline_mode = #tpu.pipeline_mode<synchronous>, transform_indices = @transform_1, window_bounds = array<i64: 16, 512>}, {pipeline_mode = #tpu.pipeline_mode<synchronous>, transform_indices = @transform_2, window_bounds = array<i64: 128, 512>}, {pipeline_mode = #tpu.pipeline_mode<synchronous>, transform_indices = @transform_3, window_bounds = array<i64: 1, 512>}, {transform_indices = @transform_4, window_bounds = array<i64: 8, 8, 128>}, {transform_indices = @transform_5, window_bounds = array<i64: 1, 8, 128>}, {transform_indices = @transform_6, window_bounds = array<i64: 1, 8, 128>}]} {
    %c0_i32 = arith.constant 0 : i32
    %0 = arith.cmpi eq, %arg1, %c0_i32 : i32
    %1 = arith.extui %0 : i1 to i32
    %c0_i32_0 = arith.constant 0 : i32
    %2 = arith.cmpi ne, %1, %c0_i32_0 : i32
    scf.if %2 {
      %cst_102 = arith.constant 0.000000e+00 : f32
      %276 = vector.broadcast %cst_102 : f32 to vector<8x128xf32>
      %c0_103 = arith.constant 0 : index
      %c0_104 = arith.constant 0 : index
      %277 = vector.load %arg9[%c0_103, %c0_104] : memref<8x128xf32, #tpu.memory_space<vmem>>, vector<8x128xf32>
      tpu.vector_store %arg9[%c0_103, %c0_104], %276 {strides = array<i32>} : memref<8x128xf32, #tpu.memory_space<vmem>>, vector<8x128xf32>,
      %cst_105 = arith.constant 0.000000e+00 : f32
      %278 = vector.broadcast %cst_105 : f32 to vector<8x128xf32>
      %c0_106 = arith.constant 0 : index
      %c0_107 = arith.constant 0 : index
      %279 = vector.load %arg10[%c0_106, %c0_107] : memref<8x128xf32, #tpu.memory_space<vmem>>, vector<8x128xf32>
      tpu.vector_store %arg10[%c0_106, %c0_107], %278 {strides = array<i32>} : memref<8x128xf32, #tpu.memory_space<vmem>>, vector<8x128xf32>,
    } else {
    }
    %c0 = arith.constant 0 : index
    %c0_1 = arith.constant 0 : index
    %c0_2 = arith.constant 0 : index
    %3 = vector.load %arg2[%c0, %c0_1, %c0_2] : memref<8x8x16xf32, #tpu.memory_space<vmem>>, vector<8x8x16xf32>
    %4 = vector.shape_cast %3 : vector<8x8x16xf32> to vector<64x16xf32>
    %c0_3 = arith.constant 0 : index
    %c0_4 = arith.constant 0 : index
    %5 = vector.load %arg3[%c0_3, %c0_4] : memref<16x512xf32, #tpu.memory_space<vmem>>, vector<16x512xf32>
    %cst = arith.constant dense<0.000000e+00> : vector<64x512xf32>
    %6 = tpu.matmul %4, %5, %cst {dimension_numbers = #tpu.dot_dimension_numbers<[1], [0], [0], [1], [0, 0, 1, 1], [], []>} : vector<64x16xf32>, vector<16x512xf32>, vector<64x512xf32> -> vector<64x512xf32>
    %c0_5 = arith.constant 0 : index
    %c0_6 = arith.constant 0 : index
    %7 = vector.load %arg5[%c0_5, %c0_6] : memref<1x512xf32, #tpu.memory_space<vmem>>, vector<1x512xf32>
    %8 = vector.broadcast %7 : vector<1x512xf32> to vector<64x512xf32>
    %9 = arith.addf %6, %8 : vector<64x512xf32>
    %10 = vector.shape_cast %9 : vector<64x512xf32> to vector<8x8x512xf32>
    %c0_7 = arith.constant 0 : index
    %c0_8 = arith.constant 0 : index
    %c0_9 = arith.constant 0 : index
    %11 = vector.load %arg11[%c0_7, %c0_8, %c0_9] : memref<8x8x512xf32, #tpu.memory_space<vmem>>, vector<8x8x512xf32>
    tpu.vector_store %arg11[%c0_7, %c0_8, %c0_9], %10 {strides = array<i32>} : memref<8x8x512xf32, #tpu.memory_space<vmem>>, vector<8x8x512xf32>,
    %c0_10 = arith.constant 0 : index
    %c0_11 = arith.constant 0 : index
    %12 = vector.load %arg4[%c0_10, %c0_11] : memref<128x512xf32, #tpu.memory_space<vmem>>, vector<128x512xf32>
    %c0_12 = arith.constant 0 : index
    %c0_13 = arith.constant 0 : index
    %13 = vector.load %arg9[%c0_12, %c0_13] : memref<8x128xf32, #tpu.memory_space<vmem>>, vector<8x128xf32>
    %c0_14 = arith.constant 0 : index
    %c0_15 = arith.constant 0 : index
    %14 = vector.load %arg10[%c0_14, %c0_15] : memref<8x128xf32, #tpu.memory_space<vmem>>, vector<8x128xf32>
    %c0_i32_16 = arith.constant 0 : i32
    %15 = arith.index_cast %c0_i32_16 : i32 to index
    %c0_17 = arith.constant 0 : index
    %c0_18 = arith.constant 0 : index
    %16 = vector.load %arg11[%15, %c0_17, %c0_18] : memref<8x8x512xf32, #tpu.memory_space<vmem>>, vector<1x8x512xf32>
    %17 = vector.shape_cast %16 : vector<1x8x512xf32> to vector<8x512xf32>
    %cst_19 = arith.constant dense<0.000000e+00> : vector<8x512xf32>
    %18 = tpu.matmul %13, %12, %cst_19 {dimension_numbers = #tpu.dot_dimension_numbers<[1], [0], [0], [1], [0, 0, 1, 1], [], []>} : vector<8x128xf32>, vector<128x512xf32>, vector<8x512xf32> -> vector<8x512xf32>
    %19 = arith.addf %17, %18 : vector<8x512xf32>
    %20 = vector.extract_strided_slice %19 {offsets = [0, 0], sizes = [8, 384], strides = [1, 1]} : vector<8x512xf32> to vector<8x384xf32>
    %cst_20 = arith.constant 0.000000e+00 : f32
    %21 = vector.broadcast %cst_20 : f32 to vector<8x384xf32>
    %22 = arith.subf %21, %20 : vector<8x384xf32>
    %23 = math.exp %22 : vector<8x384xf32>
    %cst_21 = arith.constant 1.000000e+00 : f32
    %24 = vector.broadcast %cst_21 : f32 to vector<8x384xf32>
    %25 = arith.addf %24, %23 : vector<8x384xf32>
    %cst_22 = arith.constant 1.000000e+00 : f32
    %26 = vector.broadcast %cst_22 : f32 to vector<8x384xf32>
    %27 = arith.divf %26, %25 : vector<8x384xf32>
    %28 = vector.extract_strided_slice %19 {offsets = [0, 384], sizes = [8, 128], strides = [1, 1]} : vector<8x512xf32> to vector<8x128xf32>
    %29 = math.tanh %28 : vector<8x128xf32>
    %30 = vector.extract_strided_slice %27 {offsets = [0, 0], sizes = [8, 128], strides = [1, 1]} : vector<8x384xf32> to vector<8x128xf32>
    %31 = vector.extract_strided_slice %27 {offsets = [0, 128], sizes = [8, 128], strides = [1, 1]} : vector<8x384xf32> to vector<8x128xf32>
    %32 = vector.extract_strided_slice %27 {offsets = [0, 256], sizes = [8, 128], strides = [1, 1]} : vector<8x384xf32> to vector<8x128xf32>
    %33 = arith.mulf %31, %14 : vector<8x128xf32>
    %34 = arith.mulf %30, %29 : vector<8x128xf32>
    %35 = arith.addf %33, %34 : vector<8x128xf32>
    %36 = math.tanh %35 : vector<8x128xf32>
    %37 = arith.mulf %32, %36 : vector<8x128xf32>
    %38 = arith.index_cast %c0_i32_16 : i32 to index
    %c0_23 = arith.constant 0 : index
    %c0_24 = arith.constant 0 : index
    %39 = vector.load %arg6[%38, %c0_23, %c0_24] : memref<8x8x128xf32, #tpu.memory_space<vmem>>, vector<1x8x128xf32>
    %40 = vector.shape_cast %39 : vector<1x8x128xf32> to vector<8x128xf32>
    %41 = vector.shape_cast %37 : vector<8x128xf32> to vector<1x8x128xf32>
    tpu.vector_store %arg6[%38, %c0_23, %c0_24], %41 {strides = array<i32>} : memref<8x8x128xf32, #tpu.memory_space<vmem>>, vector<1x8x128xf32>,
    %c8_i32 = arith.constant 8 : i32
    %42 = arith.muli %arg1, %c8_i32 : i32
    %43 = arith.addi %42, %c0_i32_16 : i32
    %c12_i32 = arith.constant 12 : i32
    %44 = arith.cmpi slt, %43, %c12_i32 : i32
    %45 = arith.select %44, %37, %13 : vector<8x128xf32>
    %46 = arith.select %44, %35, %14 : vector<8x128xf32>
    %c1_i32 = arith.constant 1 : i32
    %47 = arith.index_cast %c1_i32 : i32 to index
    %c0_25 = arith.constant 0 : index
    %c0_26 = arith.constant 0 : index
    %48 = vector.load %arg11[%47, %c0_25, %c0_26] : memref<8x8x512xf32, #tpu.memory_space<vmem>>, vector<1x8x512xf32>
    %49 = vector.shape_cast %48 : vector<1x8x512xf32> to vector<8x512xf32>
    %cst_27 = arith.constant dense<0.000000e+00> : vector<8x512xf32>
    %50 = tpu.matmul %45, %12, %cst_27 {dimension_numbers = #tpu.dot_dimension_numbers<[1], [0], [0], [1], [0, 0, 1, 1], [], []>} : vector<8x128xf32>, vector<128x512xf32>, vector<8x512xf32> -> vector<8x512xf32>
    %51 = arith.addf %49, %50 : vector<8x512xf32>
    %52 = vector.extract_strided_slice %51 {offsets = [0, 0], sizes = [8, 384], strides = [1, 1]} : vector<8x512xf32> to vector<8x384xf32>
    %cst_28 = arith.constant 0.000000e+00 : f32
    %53 = vector.broadcast %cst_28 : f32 to vector<8x384xf32>
    %54 = arith.subf %53, %52 : vector<8x384xf32>
    %55 = math.exp %54 : vector<8x384xf32>
    %cst_29 = arith.constant 1.000000e+00 : f32
    %56 = vector.broadcast %cst_29 : f32 to vector<8x384xf32>
    %57 = arith.addf %56, %55 : vector<8x384xf32>
    %cst_30 = arith.constant 1.000000e+00 : f32
    %58 = vector.broadcast %cst_30 : f32 to vector<8x384xf32>
    %59 = arith.divf %58, %57 : vector<8x384xf32>
    %60 = vector.extract_strided_slice %51 {offsets = [0, 384], sizes = [8, 128], strides = [1, 1]} : vector<8x512xf32> to vector<8x128xf32>
    %61 = math.tanh %60 : vector<8x128xf32>
    %62 = vector.extract_strided_slice %59 {offsets = [0, 0], sizes = [8, 128], strides = [1, 1]} : vector<8x384xf32> to vector<8x128xf32>
    %63 = vector.extract_strided_slice %59 {offsets = [0, 128], sizes = [8, 128], strides = [1, 1]} : vector<8x384xf32> to vector<8x128xf32>
    %64 = vector.extract_strided_slice %59 {offsets = [0, 256], sizes = [8, 128], strides = [1, 1]} : vector<8x384xf32> to vector<8x128xf32>
    %65 = arith.mulf %63, %46 : vector<8x128xf32>
    %66 = arith.mulf %62, %61 : vector<8x128xf32>
    %67 = arith.addf %65, %66 : vector<8x128xf32>
    %68 = math.tanh %67 : vector<8x128xf32>
    %69 = arith.mulf %64, %68 : vector<8x128xf32>
    %70 = arith.index_cast %c1_i32 : i32 to index
    %c0_31 = arith.constant 0 : index
    %c0_32 = arith.constant 0 : index
    %71 = vector.load %arg6[%70, %c0_31, %c0_32] : memref<8x8x128xf32, #tpu.memory_space<vmem>>, vector<1x8x128xf32>
    %72 = vector.shape_cast %71 : vector<1x8x128xf32> to vector<8x128xf32>
    %73 = vector.shape_cast %69 : vector<8x128xf32> to vector<1x8x128xf32>
    tpu.vector_store %arg6[%70, %c0_31, %c0_32], %73 {strides = array<i32>} : memref<8x8x128xf32, #tpu.memory_space<vmem>>, vector<1x8x128xf32>,
    %c8_i32_33 = arith.constant 8 : i32
    %74 = arith.muli %arg1, %c8_i32_33 : i32
    %75 = arith.addi %74, %c1_i32 : i32
    %c12_i32_34 = arith.constant 12 : i32
    %76 = arith.cmpi slt, %75, %c12_i32_34 : i32
    %77 = arith.select %76, %69, %45 : vector<8x128xf32>
    %78 = arith.select %76, %67, %46 : vector<8x128xf32>
    %c2_i32 = arith.constant 2 : i32
    %79 = arith.index_cast %c2_i32 : i32 to index
    %c0_35 = arith.constant 0 : index
    %c0_36 = arith.constant 0 : index
    %80 = vector.load %arg11[%79, %c0_35, %c0_36] : memref<8x8x512xf32, #tpu.memory_space<vmem>>, vector<1x8x512xf32>
    %81 = vector.shape_cast %80 : vector<1x8x512xf32> to vector<8x512xf32>
    %cst_37 = arith.constant dense<0.000000e+00> : vector<8x512xf32>
    %82 = tpu.matmul %77, %12, %cst_37 {dimension_numbers = #tpu.dot_dimension_numbers<[1], [0], [0], [1], [0, 0, 1, 1], [], []>} : vector<8x128xf32>, vector<128x512xf32>, vector<8x512xf32> -> vector<8x512xf32>
    %83 = arith.addf %81, %82 : vector<8x512xf32>
    %84 = vector.extract_strided_slice %83 {offsets = [0, 0], sizes = [8, 384], strides = [1, 1]} : vector<8x512xf32> to vector<8x384xf32>
    %cst_38 = arith.constant 0.000000e+00 : f32
    %85 = vector.broadcast %cst_38 : f32 to vector<8x384xf32>
    %86 = arith.subf %85, %84 : vector<8x384xf32>
    %87 = math.exp %86 : vector<8x384xf32>
    %cst_39 = arith.constant 1.000000e+00 : f32
    %88 = vector.broadcast %cst_39 : f32 to vector<8x384xf32>
    %89 = arith.addf %88, %87 : vector<8x384xf32>
    %cst_40 = arith.constant 1.000000e+00 : f32
    %90 = vector.broadcast %cst_40 : f32 to vector<8x384xf32>
    %91 = arith.divf %90, %89 : vector<8x384xf32>
    %92 = vector.extract_strided_slice %83 {offsets = [0, 384], sizes = [8, 128], strides = [1, 1]} : vector<8x512xf32> to vector<8x128xf32>
    %93 = math.tanh %92 : vector<8x128xf32>
    %94 = vector.extract_strided_slice %91 {offsets = [0, 0], sizes = [8, 128], strides = [1, 1]} : vector<8x384xf32> to vector<8x128xf32>
    %95 = vector.extract_strided_slice %91 {offsets = [0, 128], sizes = [8, 128], strides = [1, 1]} : vector<8x384xf32> to vector<8x128xf32>
    %96 = vector.extract_strided_slice %91 {offsets = [0, 256], sizes = [8, 128], strides = [1, 1]} : vector<8x384xf32> to vector<8x128xf32>
    %97 = arith.mulf %95, %78 : vector<8x128xf32>
    %98 = arith.mulf %94, %93 : vector<8x128xf32>
    %99 = arith.addf %97, %98 : vector<8x128xf32>
    %100 = math.tanh %99 : vector<8x128xf32>
    %101 = arith.mulf %96, %100 : vector<8x128xf32>
    %102 = arith.index_cast %c2_i32 : i32 to index
    %c0_41 = arith.constant 0 : index
    %c0_42 = arith.constant 0 : index
    %103 = vector.load %arg6[%102, %c0_41, %c0_42] : memref<8x8x128xf32, #tpu.memory_space<vmem>>, vector<1x8x128xf32>
    %104 = vector.shape_cast %103 : vector<1x8x128xf32> to vector<8x128xf32>
    %105 = vector.shape_cast %101 : vector<8x128xf32> to vector<1x8x128xf32>
    tpu.vector_store %arg6[%102, %c0_41, %c0_42], %105 {strides = array<i32>} : memref<8x8x128xf32, #tpu.memory_space<vmem>>, vector<1x8x128xf32>,
    %c8_i32_43 = arith.constant 8 : i32
    %106 = arith.muli %arg1, %c8_i32_43 : i32
    %107 = arith.addi %106, %c2_i32 : i32
    %c12_i32_44 = arith.constant 12 : i32
    %108 = arith.cmpi slt, %107, %c12_i32_44 : i32
    %109 = arith.select %108, %101, %77 : vector<8x128xf32>
    %110 = arith.select %108, %99, %78 : vector<8x128xf32>
    %c3_i32 = arith.constant 3 : i32
    %111 = arith.index_cast %c3_i32 : i32 to index
    %c0_45 = arith.constant 0 : index
    %c0_46 = arith.constant 0 : index
    %112 = vector.load %arg11[%111, %c0_45, %c0_46] : memref<8x8x512xf32, #tpu.memory_space<vmem>>, vector<1x8x512xf32>
    %113 = vector.shape_cast %112 : vector<1x8x512xf32> to vector<8x512xf32>
    %cst_47 = arith.constant dense<0.000000e+00> : vector<8x512xf32>
    %114 = tpu.matmul %109, %12, %cst_47 {dimension_numbers = #tpu.dot_dimension_numbers<[1], [0], [0], [1], [0, 0, 1, 1], [], []>} : vector<8x128xf32>, vector<128x512xf32>, vector<8x512xf32> -> vector<8x512xf32>
    %115 = arith.addf %113, %114 : vector<8x512xf32>
    %116 = vector.extract_strided_slice %115 {offsets = [0, 0], sizes = [8, 384], strides = [1, 1]} : vector<8x512xf32> to vector<8x384xf32>
    %cst_48 = arith.constant 0.000000e+00 : f32
    %117 = vector.broadcast %cst_48 : f32 to vector<8x384xf32>
    %118 = arith.subf %117, %116 : vector<8x384xf32>
    %119 = math.exp %118 : vector<8x384xf32>
    %cst_49 = arith.constant 1.000000e+00 : f32
    %120 = vector.broadcast %cst_49 : f32 to vector<8x384xf32>
    %121 = arith.addf %120, %119 : vector<8x384xf32>
    %cst_50 = arith.constant 1.000000e+00 : f32
    %122 = vector.broadcast %cst_50 : f32 to vector<8x384xf32>
    %123 = arith.divf %122, %121 : vector<8x384xf32>
    %124 = vector.extract_strided_slice %115 {offsets = [0, 384], sizes = [8, 128], strides = [1, 1]} : vector<8x512xf32> to vector<8x128xf32>
    %125 = math.tanh %124 : vector<8x128xf32>
    %126 = vector.extract_strided_slice %123 {offsets = [0, 0], sizes = [8, 128], strides = [1, 1]} : vector<8x384xf32> to vector<8x128xf32>
    %127 = vector.extract_strided_slice %123 {offsets = [0, 128], sizes = [8, 128], strides = [1, 1]} : vector<8x384xf32> to vector<8x128xf32>
    %128 = vector.extract_strided_slice %123 {offsets = [0, 256], sizes = [8, 128], strides = [1, 1]} : vector<8x384xf32> to vector<8x128xf32>
    %129 = arith.mulf %127, %110 : vector<8x128xf32>
    %130 = arith.mulf %126, %125 : vector<8x128xf32>
    %131 = arith.addf %129, %130 : vector<8x128xf32>
    %132 = math.tanh %131 : vector<8x128xf32>
    %133 = arith.mulf %128, %132 : vector<8x128xf32>
    %134 = arith.index_cast %c3_i32 : i32 to index
    %c0_51 = arith.constant 0 : index
    %c0_52 = arith.constant 0 : index
    %135 = vector.load %arg6[%134, %c0_51, %c0_52] : memref<8x8x128xf32, #tpu.memory_space<vmem>>, vector<1x8x128xf32>
    %136 = vector.shape_cast %135 : vector<1x8x128xf32> to vector<8x128xf32>
    %137 = vector.shape_cast %133 : vector<8x128xf32> to vector<1x8x128xf32>
    tpu.vector_store %arg6[%134, %c0_51, %c0_52], %137 {strides = array<i32>} : memref<8x8x128xf32, #tpu.memory_space<vmem>>, vector<1x8x128xf32>,
    %c8_i32_53 = arith.constant 8 : i32
    %138 = arith.muli %arg1, %c8_i32_53 : i32
    %139 = arith.addi %138, %c3_i32 : i32
    %c12_i32_54 = arith.constant 12 : i32
    %140 = arith.cmpi slt, %139, %c12_i32_54 : i32
    %141 = arith.select %140, %133, %109 : vector<8x128xf32>
    %142 = arith.select %140, %131, %110 : vector<8x128xf32>
    %c4_i32 = arith.constant 4 : i32
    %143 = arith.index_cast %c4_i32 : i32 to index
    %c0_55 = arith.constant 0 : index
    %c0_56 = arith.constant 0 : index
    %144 = vector.load %arg11[%143, %c0_55, %c0_56] : memref<8x8x512xf32, #tpu.memory_space<vmem>>, vector<1x8x512xf32>
    %145 = vector.shape_cast %144 : vector<1x8x512xf32> to vector<8x512xf32>
    %cst_57 = arith.constant dense<0.000000e+00> : vector<8x512xf32>
    %146 = tpu.matmul %141, %12, %cst_57 {dimension_numbers = #tpu.dot_dimension_numbers<[1], [0], [0], [1], [0, 0, 1, 1], [], []>} : vector<8x128xf32>, vector<128x512xf32>, vector<8x512xf32> -> vector<8x512xf32>
    %147 = arith.addf %145, %146 : vector<8x512xf32>
    %148 = vector.extract_strided_slice %147 {offsets = [0, 0], sizes = [8, 384], strides = [1, 1]} : vector<8x512xf32> to vector<8x384xf32>
    %cst_58 = arith.constant 0.000000e+00 : f32
    %149 = vector.broadcast %cst_58 : f32 to vector<8x384xf32>
    %150 = arith.subf %149, %148 : vector<8x384xf32>
    %151 = math.exp %150 : vector<8x384xf32>
    %cst_59 = arith.constant 1.000000e+00 : f32
    %152 = vector.broadcast %cst_59 : f32 to vector<8x384xf32>
    %153 = arith.addf %152, %151 : vector<8x384xf32>
    %cst_60 = arith.constant 1.000000e+00 : f32
    %154 = vector.broadcast %cst_60 : f32 to vector<8x384xf32>
    %155 = arith.divf %154, %153 : vector<8x384xf32>
    %156 = vector.extract_strided_slice %147 {offsets = [0, 384], sizes = [8, 128], strides = [1, 1]} : vector<8x512xf32> to vector<8x128xf32>
    %157 = math.tanh %156 : vector<8x128xf32>
    %158 = vector.extract_strided_slice %155 {offsets = [0, 0], sizes = [8, 128], strides = [1, 1]} : vector<8x384xf32> to vector<8x128xf32>
    %159 = vector.extract_strided_slice %155 {offsets = [0, 128], sizes = [8, 128], strides = [1, 1]} : vector<8x384xf32> to vector<8x128xf32>
    %160 = vector.extract_strided_slice %155 {offsets = [0, 256], sizes = [8, 128], strides = [1, 1]} : vector<8x384xf32> to vector<8x128xf32>
    %161 = arith.mulf %159, %142 : vector<8x128xf32>
    %162 = arith.mulf %158, %157 : vector<8x128xf32>
    %163 = arith.addf %161, %162 : vector<8x128xf32>
    %164 = math.tanh %163 : vector<8x128xf32>
    %165 = arith.mulf %160, %164 : vector<8x128xf32>
    %166 = arith.index_cast %c4_i32 : i32 to index
    %c0_61 = arith.constant 0 : index
    %c0_62 = arith.constant 0 : index
    %167 = vector.load %arg6[%166, %c0_61, %c0_62] : memref<8x8x128xf32, #tpu.memory_space<vmem>>, vector<1x8x128xf32>
    %168 = vector.shape_cast %167 : vector<1x8x128xf32> to vector<8x128xf32>
    %169 = vector.shape_cast %165 : vector<8x128xf32> to vector<1x8x128xf32>
    tpu.vector_store %arg6[%166, %c0_61, %c0_62], %169 {strides = array<i32>} : memref<8x8x128xf32, #tpu.memory_space<vmem>>, vector<1x8x128xf32>,
    %c8_i32_63 = arith.constant 8 : i32
    %170 = arith.muli %arg1, %c8_i32_63 : i32
    %171 = arith.addi %170, %c4_i32 : i32
    %c12_i32_64 = arith.constant 12 : i32
    %172 = arith.cmpi slt, %171, %c12_i32_64 : i32
    %173 = arith.select %172, %165, %141 : vector<8x128xf32>
    %174 = arith.select %172, %163, %142 : vector<8x128xf32>
    %c5_i32 = arith.constant 5 : i32
    %175 = arith.index_cast %c5_i32 : i32 to index
    %c0_65 = arith.constant 0 : index
    %c0_66 = arith.constant 0 : index
    %176 = vector.load %arg11[%175, %c0_65, %c0_66] : memref<8x8x512xf32, #tpu.memory_space<vmem>>, vector<1x8x512xf32>
    %177 = vector.shape_cast %176 : vector<1x8x512xf32> to vector<8x512xf32>
    %cst_67 = arith.constant dense<0.000000e+00> : vector<8x512xf32>
    %178 = tpu.matmul %173, %12, %cst_67 {dimension_numbers = #tpu.dot_dimension_numbers<[1], [0], [0], [1], [0, 0, 1, 1], [], []>} : vector<8x128xf32>, vector<128x512xf32>, vector<8x512xf32> -> vector<8x512xf32>
    %179 = arith.addf %177, %178 : vector<8x512xf32>
    %180 = vector.extract_strided_slice %179 {offsets = [0, 0], sizes = [8, 384], strides = [1, 1]} : vector<8x512xf32> to vector<8x384xf32>
    %cst_68 = arith.constant 0.000000e+00 : f32
    %181 = vector.broadcast %cst_68 : f32 to vector<8x384xf32>
    %182 = arith.subf %181, %180 : vector<8x384xf32>
    %183 = math.exp %182 : vector<8x384xf32>
    %cst_69 = arith.constant 1.000000e+00 : f32
    %184 = vector.broadcast %cst_69 : f32 to vector<8x384xf32>
    %185 = arith.addf %184, %183 : vector<8x384xf32>
    %cst_70 = arith.constant 1.000000e+00 : f32
    %186 = vector.broadcast %cst_70 : f32 to vector<8x384xf32>
    %187 = arith.divf %186, %185 : vector<8x384xf32>
    %188 = vector.extract_strided_slice %179 {offsets = [0, 384], sizes = [8, 128], strides = [1, 1]} : vector<8x512xf32> to vector<8x128xf32>
    %189 = math.tanh %188 : vector<8x128xf32>
    %190 = vector.extract_strided_slice %187 {offsets = [0, 0], sizes = [8, 128], strides = [1, 1]} : vector<8x384xf32> to vector<8x128xf32>
    %191 = vector.extract_strided_slice %187 {offsets = [0, 128], sizes = [8, 128], strides = [1, 1]} : vector<8x384xf32> to vector<8x128xf32>
    %192 = vector.extract_strided_slice %187 {offsets = [0, 256], sizes = [8, 128], strides = [1, 1]} : vector<8x384xf32> to vector<8x128xf32>
    %193 = arith.mulf %191, %174 : vector<8x128xf32>
    %194 = arith.mulf %190, %189 : vector<8x128xf32>
    %195 = arith.addf %193, %194 : vector<8x128xf32>
    %196 = math.tanh %195 : vector<8x128xf32>
    %197 = arith.mulf %192, %196 : vector<8x128xf32>
    %198 = arith.index_cast %c5_i32 : i32 to index
    %c0_71 = arith.constant 0 : index
    %c0_72 = arith.constant 0 : index
    %199 = vector.load %arg6[%198, %c0_71, %c0_72] : memref<8x8x128xf32, #tpu.memory_space<vmem>>, vector<1x8x128xf32>
    %200 = vector.shape_cast %199 : vector<1x8x128xf32> to vector<8x128xf32>
    %201 = vector.shape_cast %197 : vector<8x128xf32> to vector<1x8x128xf32>
    tpu.vector_store %arg6[%198, %c0_71, %c0_72], %201 {strides = array<i32>} : memref<8x8x128xf32, #tpu.memory_space<vmem>>, vector<1x8x128xf32>,
    %c8_i32_73 = arith.constant 8 : i32
    %202 = arith.muli %arg1, %c8_i32_73 : i32
    %203 = arith.addi %202, %c5_i32 : i32
    %c12_i32_74 = arith.constant 12 : i32
    %204 = arith.cmpi slt, %203, %c12_i32_74 : i32
    %205 = arith.select %204, %197, %173 : vector<8x128xf32>
    %206 = arith.select %204, %195, %174 : vector<8x128xf32>
    %c6_i32 = arith.constant 6 : i32
    %207 = arith.index_cast %c6_i32 : i32 to index
    %c0_75 = arith.constant 0 : index
    %c0_76 = arith.constant 0 : index
    %208 = vector.load %arg11[%207, %c0_75, %c0_76] : memref<8x8x512xf32, #tpu.memory_space<vmem>>, vector<1x8x512xf32>
    %209 = vector.shape_cast %208 : vector<1x8x512xf32> to vector<8x512xf32>
    %cst_77 = arith.constant dense<0.000000e+00> : vector<8x512xf32>
    %210 = tpu.matmul %205, %12, %cst_77 {dimension_numbers = #tpu.dot_dimension_numbers<[1], [0], [0], [1], [0, 0, 1, 1], [], []>} : vector<8x128xf32>, vector<128x512xf32>, vector<8x512xf32> -> vector<8x512xf32>
    %211 = arith.addf %209, %210 : vector<8x512xf32>
    %212 = vector.extract_strided_slice %211 {offsets = [0, 0], sizes = [8, 384], strides = [1, 1]} : vector<8x512xf32> to vector<8x384xf32>
    %cst_78 = arith.constant 0.000000e+00 : f32
    %213 = vector.broadcast %cst_78 : f32 to vector<8x384xf32>
    %214 = arith.subf %213, %212 : vector<8x384xf32>
    %215 = math.exp %214 : vector<8x384xf32>
    %cst_79 = arith.constant 1.000000e+00 : f32
    %216 = vector.broadcast %cst_79 : f32 to vector<8x384xf32>
    %217 = arith.addf %216, %215 : vector<8x384xf32>
    %cst_80 = arith.constant 1.000000e+00 : f32
    %218 = vector.broadcast %cst_80 : f32 to vector<8x384xf32>
    %219 = arith.divf %218, %217 : vector<8x384xf32>
    %220 = vector.extract_strided_slice %211 {offsets = [0, 384], sizes = [8, 128], strides = [1, 1]} : vector<8x512xf32> to vector<8x128xf32>
    %221 = math.tanh %220 : vector<8x128xf32>
    %222 = vector.extract_strided_slice %219 {offsets = [0, 0], sizes = [8, 128], strides = [1, 1]} : vector<8x384xf32> to vector<8x128xf32>
    %223 = vector.extract_strided_slice %219 {offsets = [0, 128], sizes = [8, 128], strides = [1, 1]} : vector<8x384xf32> to vector<8x128xf32>
    %224 = vector.extract_strided_slice %219 {offsets = [0, 256], sizes = [8, 128], strides = [1, 1]} : vector<8x384xf32> to vector<8x128xf32>
    %225 = arith.mulf %223, %206 : vector<8x128xf32>
    %226 = arith.mulf %222, %221 : vector<8x128xf32>
    %227 = arith.addf %225, %226 : vector<8x128xf32>
    %228 = math.tanh %227 : vector<8x128xf32>
    %229 = arith.mulf %224, %228 : vector<8x128xf32>
    %230 = arith.index_cast %c6_i32 : i32 to index
    %c0_81 = arith.constant 0 : index
    %c0_82 = arith.constant 0 : index
    %231 = vector.load %arg6[%230, %c0_81, %c0_82] : memref<8x8x128xf32, #tpu.memory_space<vmem>>, vector<1x8x128xf32>
    %232 = vector.shape_cast %231 : vector<1x8x128xf32> to vector<8x128xf32>
    %233 = vector.shape_cast %229 : vector<8x128xf32> to vector<1x8x128xf32>
    tpu.vector_store %arg6[%230, %c0_81, %c0_82], %233 {strides = array<i32>} : memref<8x8x128xf32, #tpu.memory_space<vmem>>, vector<1x8x128xf32>,
    %c8_i32_83 = arith.constant 8 : i32
    %234 = arith.muli %arg1, %c8_i32_83 : i32
    %235 = arith.addi %234, %c6_i32 : i32
    %c12_i32_84 = arith.constant 12 : i32
    %236 = arith.cmpi slt, %235, %c12_i32_84 : i32
    %237 = arith.select %236, %229, %205 : vector<8x128xf32>
    %238 = arith.select %236, %227, %206 : vector<8x128xf32>
    %c7_i32 = arith.constant 7 : i32
    %239 = arith.index_cast %c7_i32 : i32 to index
    %c0_85 = arith.constant 0 : index
    %c0_86 = arith.constant 0 : index
    %240 = vector.load %arg11[%239, %c0_85, %c0_86] : memref<8x8x512xf32, #tpu.memory_space<vmem>>, vector<1x8x512xf32>
    %241 = vector.shape_cast %240 : vector<1x8x512xf32> to vector<8x512xf32>
    %cst_87 = arith.constant dense<0.000000e+00> : vector<8x512xf32>
    %242 = tpu.matmul %237, %12, %cst_87 {dimension_numbers = #tpu.dot_dimension_numbers<[1], [0], [0], [1], [0, 0, 1, 1], [], []>} : vector<8x128xf32>, vector<128x512xf32>, vector<8x512xf32> -> vector<8x512xf32>
    %243 = arith.addf %241, %242 : vector<8x512xf32>
    %244 = vector.extract_strided_slice %243 {offsets = [0, 0], sizes = [8, 384], strides = [1, 1]} : vector<8x512xf32> to vector<8x384xf32>
    %cst_88 = arith.constant 0.000000e+00 : f32
    %245 = vector.broadcast %cst_88 : f32 to vector<8x384xf32>
    %246 = arith.subf %245, %244 : vector<8x384xf32>
    %247 = math.exp %246 : vector<8x384xf32>
    %cst_89 = arith.constant 1.000000e+00 : f32
    %248 = vector.broadcast %cst_89 : f32 to vector<8x384xf32>
    %249 = arith.addf %248, %247 : vector<8x384xf32>
    %cst_90 = arith.constant 1.000000e+00 : f32
    %250 = vector.broadcast %cst_90 : f32 to vector<8x384xf32>
    %251 = arith.divf %250, %249 : vector<8x384xf32>
    %252 = vector.extract_strided_slice %243 {offsets = [0, 384], sizes = [8, 128], strides = [1, 1]} : vector<8x512xf32> to vector<8x128xf32>
    %253 = math.tanh %252 : vector<8x128xf32>
    %254 = vector.extract_strided_slice %251 {offsets = [0, 0], sizes = [8, 128], strides = [1, 1]} : vector<8x384xf32> to vector<8x128xf32>
    %255 = vector.extract_strided_slice %251 {offsets = [0, 128], sizes = [8, 128], strides = [1, 1]} : vector<8x384xf32> to vector<8x128xf32>
    %256 = vector.extract_strided_slice %251 {offsets = [0, 256], sizes = [8, 128], strides = [1, 1]} : vector<8x384xf32> to vector<8x128xf32>
    %257 = arith.mulf %255, %238 : vector<8x128xf32>
    %258 = arith.mulf %254, %253 : vector<8x128xf32>
    %259 = arith.addf %257, %258 : vector<8x128xf32>
    %260 = math.tanh %259 : vector<8x128xf32>
    %261 = arith.mulf %256, %260 : vector<8x128xf32>
    %262 = arith.index_cast %c7_i32 : i32 to index
    %c0_91 = arith.constant 0 : index
    %c0_92 = arith.constant 0 : index
    %263 = vector.load %arg6[%262, %c0_91, %c0_92] : memref<8x8x128xf32, #tpu.memory_space<vmem>>, vector<1x8x128xf32>
    %264 = vector.shape_cast %263 : vector<1x8x128xf32> to vector<8x128xf32>
    %265 = vector.shape_cast %261 : vector<8x128xf32> to vector<1x8x128xf32>
    tpu.vector_store %arg6[%262, %c0_91, %c0_92], %265 {strides = array<i32>} : memref<8x8x128xf32, #tpu.memory_space<vmem>>, vector<1x8x128xf32>,
    %c8_i32_93 = arith.constant 8 : i32
    %266 = arith.muli %arg1, %c8_i32_93 : i32
    %267 = arith.addi %266, %c7_i32 : i32
    %c12_i32_94 = arith.constant 12 : i32
    %268 = arith.cmpi slt, %267, %c12_i32_94 : i32
    %269 = arith.select %268, %261, %237 : vector<8x128xf32>
    %270 = arith.select %268, %259, %238 : vector<8x128xf32>
    %c8_i32_95 = arith.constant 8 : i32
    %c0_96 = arith.constant 0 : index
    %c0_97 = arith.constant 0 : index
    %271 = vector.load %arg9[%c0_96, %c0_97] : memref<8x128xf32, #tpu.memory_space<vmem>>, vector<8x128xf32>
    tpu.vector_store %arg9[%c0_96, %c0_97], %269 {strides = array<i32>} : memref<8x128xf32, #tpu.memory_space<vmem>>, vector<8x128xf32>,
    %c0_98 = arith.constant 0 : index
    %c0_99 = arith.constant 0 : index
    %272 = vector.load %arg10[%c0_98, %c0_99] : memref<8x128xf32, #tpu.memory_space<vmem>>, vector<8x128xf32>
    tpu.vector_store %arg10[%c0_98, %c0_99], %270 {strides = array<i32>} : memref<8x128xf32, #tpu.memory_space<vmem>>, vector<8x128xf32>,
    %c1_i32_100 = arith.constant 1 : i32
    %273 = arith.cmpi eq, %arg1, %c1_i32_100 : i32
    %274 = arith.extui %273 : i1 to i32
    %c0_i32_101 = arith.constant 0 : i32
    %275 = arith.cmpi ne, %274, %c0_i32_101 : i32
    scf.if %275 {
      %c0_102 = arith.constant 0 : index
      %c0_103 = arith.constant 0 : index
      %c0_104 = arith.constant 0 : index
      %276 = vector.load %arg7[%c0_102, %c0_103, %c0_104] : memref<1x8x128xf32, #tpu.memory_space<vmem>>, vector<1x8x128xf32>
      %277 = vector.shape_cast %276 : vector<1x8x128xf32> to vector<8x128xf32>
      %278 = vector.shape_cast %269 : vector<8x128xf32> to vector<1x8x128xf32>
      tpu.vector_store %arg7[%c0_102, %c0_103, %c0_104], %278 {strides = array<i32>} : memref<1x8x128xf32, #tpu.memory_space<vmem>>, vector<1x8x128xf32>,
      %c0_105 = arith.constant 0 : index
      %c0_106 = arith.constant 0 : index
      %c0_107 = arith.constant 0 : index
      %279 = vector.load %arg8[%c0_105, %c0_106, %c0_107] : memref<1x8x128xf32, #tpu.memory_space<vmem>>, vector<1x8x128xf32>
      %280 = vector.shape_cast %279 : vector<1x8x128xf32> to vector<8x128xf32>
      %281 = vector.shape_cast %270 : vector<8x128xf32> to vector<1x8x128xf32>
      tpu.vector_store %arg8[%c0_105, %c0_106, %c0_107], %281 {strides = array<i32>} : memref<1x8x128xf32, #tpu.memory_space<vmem>>, vector<1x8x128xf32>,
    } else {
    }
    return
  }
  func.func @transform_0(%arg0: i32, %arg1: i32) -> (i32, i32, i32) {
    %c0_i32 = arith.constant 0 : i32
    %c0_i32_0 = arith.constant 0 : i32
    return %arg1, %arg0, %c0_i32 : i32, i32, i32
  }
  func.func @transform_1(%arg0: i32, %arg1: i32) -> (i32, i32) {
    %c0_i32 = arith.constant 0 : i32
    %c0_i32_0 = arith.constant 0 : i32
    %c0_i32_1 = arith.constant 0 : i32
    return %c0_i32, %c0_i32_0 : i32, i32
  }
  func.func @transform_2(%arg0: i32, %arg1: i32) -> (i32, i32) {
    %c0_i32 = arith.constant 0 : i32
    %c0_i32_0 = arith.constant 0 : i32
    %c0_i32_1 = arith.constant 0 : i32
    return %c0_i32, %c0_i32_0 : i32, i32
  }
  func.func @transform_3(%arg0: i32, %arg1: i32) -> (i32, i32) {
    %c0_i32 = arith.constant 0 : i32
    %c0_i32_0 = arith.constant 0 : i32
    %c0_i32_1 = arith.constant 0 : i32
    return %c0_i32, %c0_i32_0 : i32, i32
  }
  func.func @transform_4(%arg0: i32, %arg1: i32) -> (i32, i32, i32) {
    %c0_i32 = arith.constant 0 : i32
    %c0_i32_0 = arith.constant 0 : i32
    return %arg1, %arg0, %c0_i32 : i32, i32, i32
  }
  func.func @transform_5(%arg0: i32, %arg1: i32) -> (i32, i32, i32) {
    %c0_i32 = arith.constant 0 : i32
    %c0_i32_0 = arith.constant 0 : i32
    %c0_i32_1 = arith.constant 0 : i32
    return %c0_i32, %arg0, %c0_i32_0 : i32, i32, i32
  }
  func.func @transform_6(%arg0: i32, %arg1: i32) -> (i32, i32, i32) {
    %c0_i32 = arith.constant 0 : i32
    %c0_i32_0 = arith.constant 0 : i32
    %c0_i32_1 = arith.constant 0 : i32
    return %c0_i32, %arg0, %c0_i32_0 : i32, i32, i32
  }
}

</mosaic_0001>

<bundles_post_ra>
// kernel: tpu_custom_call.1
= control target key start
LH: loop header
LB: loop body
LE: loop exit
PB: predicated region body
PF: predicated region fallthrough
CT: control target
= control target key end

     0   :  { %s4274_s0 = inlined_call_operand.hbm [shape: f32[12,8,16], index: 0, kind: input, shape index: {}]   ;;  %s4275_s1 = inlined_call_operand.hbm [shape: f32[16,512], index: 1, kind: input, shape index: {}]   ;;  %s4276_s2 = inlined_call_operand.hbm [shape: f32[128,512], index: 2, kind: input, shape index: {}]   ;;  %s4277_s3 = inlined_call_operand.vmem [shape: f32[1,512], index: 3, kind: input, shape index: {}]   ;;  %s4278_s4 = inlined_call_operand.hbm [shape: f32[12,8,128], index: 4, kind: output, shape index: {0}]   ;;  %s4279_s5 = inlined_call_operand.hbm [shape: f32[1,8,128], index: 5, kind: output, shape index: {1}]   ;;  %s4280_s6 = inlined_call_operand.hbm [shape: f32[1,8,128], index: 6, kind: output, shape index: {2}]  }
   0x1   :  { %4388 = sst [smem:[#allocation72_spill]] %s4275_s1 }
   0x2   :  { %12 = vsyncpa [#allocation6], 0 }
   0x3   :  { %14 = vsyncpa [#allocation6 + $0x1], 0 }
   0x4   :  { %15 = vsyncpa [#allocation9], 0 }
   0x5   :  { %16 = vsyncpa [#allocation7], 0 }
   0x6   :  { %18 = vsyncpa [#allocation7 + $0x1], 0 }
   0x7   :  { %19 = vsyncpa [#allocation13], 0  ;;  %s2999_s21 = smov 0   ;;  %s3001_s22 = smov 0  }
   0x8   :  { %s3003_s23 = smov 0   ;;  %s3005_s24 = smov 0  }
   0x9   :  { %s3007_s25 = smov 0   ;;  %s3009_s26 = smov 0  }
   0xa LB: > { %s2385_s27 = sadd.s32 4294967295, %s2948_s26   ;;  %s2386_s28 = sadd.s32 4294967294, %s2948_s26   ;;  %s2948_s26 = sphi %s3009_s26, %s25_s26   ;;  %s2944_s25 = sphi %s3007_s25, %s4609_s25   ;;  %s2940_s24 = sphi %s3005_s24, %s4608_s24   ;;  %s2936_s23 = sphi %s3003_s23, %s4607_s23   ;;  %s2932_s22 = sphi %s3001_s22, %s4606_s22   ;;  %s2928_s21 = sphi %s2999_s21, %s4605_s21  }
   0xb   : > { %s34_s29 = sadd.s32 1, %s2944_s25  ;;  %s46_s30 = sadd.s32 1, %s2936_s23 }
   0xc   : > { %p35_p0 = scmp.ge.s32.totalorder %s34_s29, 2  ;;  %p53_p1 = scmp.ne.s32.totalorder %s2936_s23, %s2932_s22 }
   0xd   : > { %p54_p2 = scmp.eq.s32.totalorder %s2948_s26, 0  ;;  %p59_p3 = scmp.ne.s32.totalorder %s2932_s22, %s2928_s21 }
   0xe   : > { %s4611_s29 = smov (%p35_p0, %s34_s29), 0  ;;  %p3044_p5 = scmp.eq.s32.totalorder %s2385_s27, 0 }
   0xf   : > { %4389 = sst [smem:[#allocation19_spill]] %s4611_s29  ;;  %p3040_p4 = por %p54_p2, %p53_p1 }
  0x10   : > { %s4391_s8 = scalar_select %p3044_p5, 1, 0 }
  0x11   : > { %s41_s9 = ssub.s32 %s2944_s25, %s4611_s29  ;;  %p3050_p6 = scmp.eq.s32.totalorder %s2385_s27, 1 }
  0x12   : > { %p44_p7 = scmp.eq.s32.totalorder %s41_s9, 0  ;;  %p3056_p8 = por %p3044_p5, %p59_p3 }
  0x13   : > { %s4392_s10 = scalar_select %p3050_p6, 1, 0 }
  0x14   : > { %s4393_s11 = scalar_select %p3056_p8, 1, 0 }
  0x15   : > { %p3062_p9 = por %p3050_p6, %p53_p1  ;;  %p154_p10 = scmp.eq.s32.totalorder %s2386_s28, 1 }
  0x16   : > { %s3067_s13 = scalar_select %p44_p7, %s2936_s23, %s46_s30  }
  0x17   : > { %s4394_s12 = scalar_select %p3062_p9, 1, 0 }
  0x18   : > { %p3069_p11 = por %p154_p10, %p59_p3  ;;  %p2387_p12 = scmp.ge.s32.totalorder %s2948_s26, 1 }
  0x19   : > { %p213_p13 = scmp.lt.s32.totalorder %s2948_s26, 3  ;;  %s2950_s16 = smov [#allocation8]  }
  0x1a   : > { %s4395_s14 = scalar_select %p3069_p11, 1, 0 }
  0x1b   : > { %p3075_p0 = pnand %p2387_p12, %p213_p13  ;;  %s225_s17 = sshll.u32 %s2950_s16, 4  ;;  %s226_s17 = int_to_ptr.vmem [resolvable:$true] %s225_s17 }
  0x1c   : > { %s2951_s18 = smov [#allocation10]   ;;  %s2745_s27 = scalar_lea.vmem %s226_s17, 1024 }
  0x1d   : > { %p2462_p1 = pneg %p3075_p0  ;;  %s238_s19 = sshll.u32 %s2951_s18, 4  ;;  %s239_s19 = int_to_ptr.vmem [resolvable:$true] %s238_s19 }
  0x1e   : > { %p2746_p7 = scmp.ne.s32.totalorder %s226_s17, %s2745_s27  ;;  %p2753_p13 = scmp.lt.s32.totalorder %s226_s17, %s226_s17 }
  0x1f   : > { %p3083_p2 = pnand %p2462_p1, %p3044_p5  ;;  %p2754_p11 = scmp.lt.s32.totalorder %s2745_s27, %s2745_s27 }
  0x21   : > { %p2736_p3 = pneg %p3083_p2  ;;  %p2755_p6 = por %p2754_p11, %p2753_p13 }
  0x23   : > { %p2748_p10 = pnand %p2746_p7, %p2736_p3 }
  0x25   : > { %p2749_p12 = pneg %p2748_p10 }
  0x27   : > { %p2756_p9 = pnand %p2755_p6, %p2749_p12 }
  0x29   : > { %2759 = shalt.err (!%p2756_p9)
}
  0x2a   : > { %s2952_s28 = smov 512   ;;  %s2953_s30 = smov 32  }
  0x2b   : > { %s4398_s1 = sld [smem:[#allocation72_spill]]  ;;  %s2771_s18 = scalar_lea.vmem %s239_s19, 8192 }
  0x2c   : > { %p2772_p1 = scmp.ne.s32.totalorder %s239_s19, %s2771_s18  ;;  %p2779_p5 = scmp.lt.s32.totalorder %s239_s19, %s239_s19 }
  0x2d   : > { %p2780_p8 = scmp.lt.s32.totalorder %s2771_s18, %s2771_s18 }
  0x2e   : > { %p2774_p7 = pnand %p2772_p1, %p2736_p3 }
  0x2f   : > { %p2781_p11 = por %p2780_p8, %p2779_p5 }
  0x30   : > { %p2775_p10 = pneg %p2774_p7 }
  0x31   : > { %2465 = dma.hbm_to_vmem [thread:$0]  (!%p3083_p2), %s4398_s1, 1024, %s226_s17, [#allocation9], %s2952_s28, %s2952_s28, %s2953_s30  }
  0x32   : > { %p2782_p6 = pnand %p2781_p11, %p2775_p10 }
  0x34   : > { %2785 = shalt.err (!%p2782_p6)
}
  0x35   : > { %2468 = dma.hbm_to_vmem [thread:$0]  (!%p3083_p2), %s4276_s2, 8192, %s239_s19, [#allocation9], %s2952_s28, %s2952_s28, %s2953_s30  }
  0x36   : > { %p2390_p9 = scmp.ge.s32.totalorder %s2948_s26, 2 }
  0x38   : > { %251 = sbr.rel (%p2390_p9) target bundleno = 93 (0x5d), region = 28 }
  0x3d   : > { %254 = sbr.rel (!%p3040_p4) target bundleno = 93 (0x5d), region = 32  ;;  %s255_s17 = sand.u32 (%p3040_p4), 1, %s2936_s23  }
  0x3e   : > { %s2392_s9 = sshll.u32 (%p3040_p4), %s2944_s25, 3  ;;  %s2391_s16 = sshll.u32 (%p3040_p4), %s255_s17, 6 }
  0x3f   : > { %s261_s18 = ssub.s32 (%p3040_p4), 12, %s2392_s9  ;;  %s3115_s19 = scalar_lea.sflag (%p3040_p4), [#allocation6], %s255_s17 }
  0x40   : > { %p262_p5 = scmp.lt.s32.totalorder (%p3040_p4), %s261_s18, 8  ;;  %s259_s28 = scalar_lea.vmem (%p3040_p4), [#allocation5], %s2391_s16 }
  0x42   : > { %s4613_s18 = smov (!%p262_p5, %s261_s18), 8 }
  0x43   : > { %s3112_s20 = sshll.u32 %s4613_s18, 7 }
  0x44   : > { %s266_s29 = ssub.s32 1024, %s3112_s20 }
  0x45   : > { %267 = vsyncadd %s3115_s19, %s266_s29  ;;  %p2394_p4 = scmp.ne.s32.totalorder %s3112_s20, 0  ;;  %s2442_s7 = sshll.u32 %s2944_s25, 10 }
  0x46   : > { %s3123_s9 = scalar_lea.hbm %s4274_s0, %s2442_s7  ;;  %s273_s18 = sshll.u32 %s259_s28, 4  ;;  %s3125_s18 = int_to_ptr.vmem [resolvable:$true] %s273_s18 }
  0x47   : > { %s2786_s17 = scalar_lea.hbm %s3123_s9, %s3112_s20  ;;  %s2790_s1 = scalar_lea.hbm %s4274_s0, 1536 }
  0x48   : > { %p2787_p8 = scmp.ne.s32.totalorder %s3123_s9, %s2786_s17  ;;  %p2792_p12 = scmp.lt.s32.totalorder %s2790_s1, %s2786_s17 }
  0x4a   : > { %p2788_p2 = pnand %p2787_p8, %p2394_p4 }
  0x4c   : > { %p2789_p3 = pneg %p2788_p2 }
  0x4e   : > { %p2794_p13 = pnand %p2792_p12, %p2789_p3 }
  0x50   : > { %2797 = shalt.err (!%p2794_p13)
}
  0x51   : > { %s2798_s28 = scalar_lea.vmem %s3125_s18, %s3112_s20  ;;  %s2954_s7 = smov [#allocation5]  }
  0x52   : > { %p2799_p1 = scmp.ne.s32.totalorder %s3125_s18, %s2798_s28  ;;  %s2802_s30 = sshll.u32 %s2954_s7, 4  ;;  %s2803_s30 = int_to_ptr.vmem [resolvable:$false] %s2802_s30 }
  0x53   : > { %s2804_s27 = scalar_lea.vmem %s2803_s30, 2048  ;;  %p2805_p11 = scmp.lt.s32.totalorder %s3125_s18, %s2803_s30 }
  0x54   : > { %p2800_p7 = pnand %p2799_p1, %p2394_p4  ;;  %p2806_p6 = scmp.lt.s32.totalorder %s2804_s27, %s2798_s28 }
  0x56   : > { %p2801_p10 = pneg %p2800_p7  ;;  %p2807_p5 = por %p2806_p6, %p2805_p11 }
  0x58   : > { %p2808_p8 = pnand %p2807_p5, %p2801_p10 }
  0x5a   : > { %2811 = shalt.err (!%p2808_p8)
}
  0x5b   : > { %s2955_s1 = smov 128   ;;  %s2956_s17 = smov 8  }
  0x5c   : > { %279 = dma.hbm_to_vmem [thread:$0]  (%p2394_p4), %s3123_s9, %s3112_s20, %s3125_s18, %s3115_s19, %s2955_s1, %s2955_s1, %s2956_s17  }
  0x5d PF: > { %285 = sbr.rel (%p3075_p0) target bundleno = 2246 (0x8c6), region = 36 }
  0x62   : > { %s3150_s16 = sand.u32 1, %s2932_s22   ;;  %p4399_p2 = scmp.ne.s32.totalorder %s4393_s11, 0 }
  0x63   : > { %s2399_s29 = sshll.u32 %s3150_s16, 6  ;;  %s288_s28 = scalar_lea.sflag [#allocation6], %s3150_s16 }
  0x64   : > { %s3154_s7 = scalar_lea.vmem [#allocation5], %s2399_s29 }
  0x65   : > { %2911 = dma.done.wait (%p4399_p2), %s288_s28, 1024  }
  0x66   : > { %2913 = vsyncadd (%p4399_p2), %s288_s28, 4294966272  ;;  %p4400_p4 = scmp.ne.s32.totalorder %s4391_s8, 0 }
  0x68   : > { %2915 = dma.done.wait (%p4400_p4), [#allocation9], 9216  }
  0x69   : > { %2917 = vsyncadd (%p4400_p4), [#allocation9], 4294958080  ;;  %s3164_s15 = scalar_lea.vmem [#allocation11], %s2399_s29  ;;  %p2403_p0 = scmp.ne.s32.totalorder %s2940_s24, 0 }
  0x6b   : > { %341 = sbr.rel (%p2403_p0) target bundleno = 114 (0x72), region = 52 }
  0x70   : > { %v2957_v0 = vmov 0.0  }
  0x71   : > { %342 = vst [vmem:[#allocation2] sm:$0xff] %v2957_v0  ;;  %343 = vst [vmem:[#allocation3] sm:$0xff] %v2957_v0 }
  0x72 PF: > { %v357_v1 = vld [vmem:[#allocation8 + $0x28] sm:$0xff]  ;;  %v359_v2 = vld [vmem:[#allocation8 + $0x38] sm:$0xff]  ;;  %v356_v3 = vld [vmem:[#allocation8 + $0x20] sm:$0xff]  ;;  %vm382_vm0 = vcmask 130048   ;;  %v4287_v10 = vmov 0.0   ;;  %s3565_s20 = sshll.u32 %s2940_s24, 3 }
  0x73   : > { %435 = vmatprep.subr.mxu0 %v357_v1  ;;  %548 = vmatprep.subr.mxu1 %v359_v2  ;;  %v358_v4 = vld [vmem:[#allocation8 + $0x30] sm:$0xff]  ;;  %v353_v5 = vld [vmem:[#allocation8 + $0x8] sm:$0xff]  ;;  %v355_v6 = vld [vmem:[#allocation8 + $0x18] sm:$0xff]  ;;  %p907_p3 = scmp.lt.s32.totalorder %s3565_s20, 12  ;;  %s1090_s9 = sadd.s32 1, %s3565_s20 }
  0x74   : > { %436 = vmatpush1.msra.mxu0 %v356_v3  ;;  %549 = vmatpush1.msra.mxu1 %v358_v4  ;;  %v352_v7 = vld [vmem:[#allocation8] sm:$0xff]  ;;  %v354_v8 = vld [vmem:[#allocation8 + $0x10] sm:$0xff]  ;;  %v3169_v11 = vld [vmem:[#allocation10 + $0x1e8] sm:$0xff]  ;;  %p1091_p12 = scmp.lt.s32.totalorder %s1090_s9, 12  ;;  %s1274_s30 = sadd.s32 2, %s3565_s20 }
  0x75   : > { %437 = vmatprep.subr.mxu0 %v353_v5  ;;  %550 = vmatprep.subr.mxu1 %v355_v6  ;;  %v344_v9 = vld [vmem:[%s3154_s7] sm:$0xff]  ;;  %4401 = vst [vmem:[#allocation20_spill] sm:$0xff] %v3169_v11  ;;  %v3171_v12 = vld [vmem:[#allocation10 + $0x1f8] sm:$0xff]  ;;  %v3176_v14 = vld [vmem:[#allocation10 + $0x1f0] sm:$0xff]  ;;  %s908_s19 = scalar_select %p907_p3, 1, 0 }
  0x76   : > { %438 = vmatpush1.msra.mxu0 %v352_v7  ;;  %471 = vmatprep.mubr.f32.mxu0 %v4287_v10  ;;  %4402 = vst [vmem:[#allocation21_spill] sm:$0xff] %v3171_v12  ;;  %v3174_v13 = vld [vmem:[#allocation10 + $0x1e0] sm:$0xff]  ;;  %v3180_v15 = vld [vmem:[#allocation10 + $0x1c8] sm:$0xff]  ;;  %v3182_v16 = vld [vmem:[#allocation10 + $0x1d8] sm:$0xff]  ;;  %s1092_s18 = scalar_select %p1091_p12, 1, 0 }
  0x77   : > { %551 = vmatpush1.msra.mxu1 %v354_v8  ;;  %584 = vmatprep.mubr.f32.mxu1 %v4287_v10  ;;  %v3188_v17 = vld [vmem:[#allocation10 + $0x1c0] sm:$0xff]  ;;  %v3190_v18 = vld [vmem:[#allocation10 + $0x1d0] sm:$0xff]  ;;  %v345_v19 = vld [vmem:[%s3154_s7 + $0x8] sm:$0xff]  ;;  %p1275_p13 = scmp.lt.s32.totalorder %s1274_s30, 12  ;;  %s1458_s1 = sadd.s32 3, %s3565_s20 }
  0x78   : > { %2404 = vmatmul.mubr.msk.f32.vlgmr.msra.gmra.mxu0 %vm382_vm0, %v344_v9  ;;  %2412 = vmatmul.mubr.msk.f32.vlgmr.msra.gmra.mxu1 %vm382_vm0, %v344_v9  ;;  %v3197_v20 = vld [vmem:[#allocation10 + $0x1a8] sm:$0xff]  ;;  %v3199_v21 = vld [vmem:[#allocation10 + $0x1b8] sm:$0xff]  ;;  %v3203_v22 = vld [vmem:[#allocation10 + $0x1a0] sm:$0xff]  ;;  %p1459_p1 = scmp.lt.s32.totalorder %s1458_s1, 12  ;;  %s1642_s29 = sadd.s32 4, %s3565_s20 }
  0x79   : > { %735 = vmatprep.subr.mxu0 %v3169_v11  ;;  %806 = vmatprep.subr.mxu1 %v3171_v12  ;;  %v3205_v23 = vld [vmem:[#allocation10 + $0x1b0] sm:$0xff]  ;;  %v3209_v24 = vld [vmem:[#allocation10 + $0x188] sm:$0xff]  ;;  %v3211_v25 = vld [vmem:[#allocation10 + $0x198] sm:$0xff]  ;;  %s1276_s27 = scalar_select %p1275_p13, 1, 0 }
  0x7a   : > { %736 = vmatpush1.msra.mxu0 %v3174_v13  ;;  %807 = vmatpush1.msra.mxu1 %v3176_v14  ;;  %v3217_v26 = vld [vmem:[#allocation10 + $0x180] sm:$0xff]  ;;  %v3219_v27 = vld [vmem:[#allocation10 + $0x190] sm:$0xff]  ;;  %v3226_v29 = vld [vmem:[#allocation10 + $0x168] sm:$0xff]  ;;  %s1460_s17 = scalar_select %p1459_p1, 1, 0 }
  0x7b   : > { %737 = vmatprep.subr.mxu0 %v3180_v15  ;;  %808 = vmatprep.subr.mxu1 %v3182_v16  ;;  %v346_v28 = vld [vmem:[%s3154_s7 + $0x10] sm:$0xff]  ;;  %v3228_v30 = vld [vmem:[#allocation10 + $0x178] sm:$0xff]  ;;  %v3232_v31 = vld [vmem:[#allocation10 + $0x160] sm:$0xff]  ;;  %p1643_p7 = scmp.lt.s32.totalorder %s1642_s29, 12  ;;  %s2010_s11 = sadd.s32 6, %s3565_s20 }
  0x7c   : > { %477 = vmatprep.mubr.f32.mxu0 %v4287_v10  ;;  %590 = vmatprep.mubr.f32.mxu1 %v4287_v10  ;;  %v3234_v32 = vld [vmem:[#allocation10 + $0x170] sm:$0xff]  ;;  %v3238_v33 = vld [vmem:[#allocation10 + $0x148] sm:$0xff]  ;;  %v3240_v34 = vld [vmem:[#allocation10 + $0x158] sm:$0xff]  ;;  %p2011_p11 = scmp.lt.s32.totalorder %s2010_s11, 12  ;;  %s2194_s9 = sadd.s32 7, %s3565_s20 }
  0x7d   : > { %738 = vmatpush1.msra.mxu0 %v3188_v17  ;;  %809 = vmatpush1.msra.mxu1 %v3190_v18  ;;  %v3246_v35 = vld [vmem:[#allocation10 + $0x140] sm:$0xff]  ;;  %v3248_v36 = vld [vmem:[#allocation10 + $0x150] sm:$0xff]  ;;  %v347_v37 = vld [vmem:[%s3154_s7 + $0x18] sm:$0xff]  ;;  %s1644_s28 = scalar_select %p1643_p7, 1, 0 }
  0x7e   : > { %2405 = vmatmul.mubr.msk.f32.gmra.mxu0 %vm382_vm0, %v345_v19  ;;  %2413 = vmatmul.mubr.msk.f32.gmra.mxu1 %vm382_vm0, %v345_v19  ;;  %v3255_v38 = vld [vmem:[#allocation10 + $0x128] sm:$0xff]  ;;  %v3257_v39 = vld [vmem:[#allocation10 + $0x138] sm:$0xff]  ;;  %v3261_v40 = vld [vmem:[#allocation10 + $0x120] sm:$0xff]  ;;  %p2195_p6 = scmp.lt.s32.totalorder %s2194_s9, 12  ;;  %p2428_p5 = scmp.ne.s32.totalorder %s2940_s24, 1 }
  0x7f   : > { %739 = vmatprep.subr.mxu0 %v3197_v20  ;;  %810 = vmatprep.subr.mxu1 %v3199_v21  ;;  %v3263_v41 = vld [vmem:[#allocation10 + $0x130] sm:$0xff]  ;;  %v3267_v42 = vld [vmem:[#allocation10 + $0x108] sm:$0xff]  ;;  %v3269_v43 = vld [vmem:[#allocation10 + $0x118] sm:$0xff] }
  0x80   : > { %740 = vmatpush1.msra.mxu0 %v3203_v22  ;;  %811 = vmatpush1.msra.mxu1 %v3205_v23  ;;  %v3275_v44 = vld [vmem:[#allocation10 + $0x100] sm:$0xff]  ;;  %v3277_v45 = vld [vmem:[#allocation10 + $0x110] sm:$0xff]  ;;  %v3284_v47 = vld [vmem:[#allocation10 + $0xe8] sm:$0xff] }
  0x81   : > { %741 = vmatprep.subr.mxu0 %v3209_v24  ;;  %812 = vmatprep.subr.mxu1 %v3211_v25  ;;  %v348_v46 = vld [vmem:[%s3154_s7 + $0x20] sm:$0xff]  ;;  %v3286_v48 = vld [vmem:[#allocation10 + $0xf8] sm:$0xff]  ;;  %v3292_v50 = vld [vmem:[#allocation10 + $0xf0] sm:$0xff] }
  0x82   : > { %483 = vmatprep.mubr.f32.mxu0 %v4287_v10  ;;  %596 = vmatprep.mubr.f32.mxu1 %v4287_v10  ;;  %v3290_v49 = vld [vmem:[#allocation10 + $0xe0] sm:$0xff]  ;;  %v3296_v51 = vld [vmem:[#allocation10 + $0xc8] sm:$0xff]  ;;  %v3298_v52 = vld [vmem:[#allocation10 + $0xd8] sm:$0xff] }
  0x83   : > { %742 = vmatpush1.msra.mxu0 %v3217_v26  ;;  %813 = vmatpush1.msra.mxu1 %v3219_v27  ;;  %v3304_v53 = vld [vmem:[#allocation10 + $0xc0] sm:$0xff]  ;;  %v3306_v54 = vld [vmem:[#allocation10 + $0xd0] sm:$0xff]  ;;  %v349_v55 = vld [vmem:[%s3154_s7 + $0x28] sm:$0xff] }
  0x84   : > { %2406 = vmatmul.mubr.msk.f32.gmra.mxu0 %vm382_vm0, %v346_v28  ;;  %2414 = vmatmul.mubr.msk.f32.gmra.mxu1 %vm382_vm0, %v346_v28  ;;  %v3313_v56 = vld [vmem:[#allocation10 + $0xa8] sm:$0xff]  ;;  %v3315_v57 = vld [vmem:[#allocation10 + $0xb8] sm:$0xff]  ;;  %v3319_v58 = vld [vmem:[#allocation10 + $0xa0] sm:$0xff] }
  0x85   : > { %743 = vmatprep.subr.mxu0 %v3226_v29  ;;  %814 = vmatprep.subr.mxu1 %v3228_v30  ;;  %4403 = vst [vmem:[#allocation22_spill] sm:$0xff] %v3319_v58  ;;  %v3321_v59 = vld [vmem:[#allocation10 + $0xb0] sm:$0xff]  ;;  %v3325_v60 = vld [vmem:[#allocation10 + $0x88] sm:$0xff]  ;;  %v3327_v61 = vld [vmem:[#allocation10 + $0x98] sm:$0xff] }
  0x86   : > { %744 = vmatpush1.msra.mxu0 %v3232_v31  ;;  %815 = vmatpush1.msra.mxu1 %v3234_v32  ;;  %4404 = vst [vmem:[#allocation23_spill] sm:$0xff] %v3321_v59  ;;  %4405 = vst [vmem:[#allocation24_spill] sm:$0xff] %v3325_v60  ;;  %v3333_v62 = vld [vmem:[#allocation10 + $0x80] sm:$0xff]  ;;  %v3335_v63 = vld [vmem:[#allocation10 + $0x90] sm:$0xff] }
  0x87   : > { %745 = vmatprep.subr.mxu0 %v3238_v33  ;;  %816 = vmatprep.subr.mxu1 %v3240_v34  ;;  %4406 = vst [vmem:[#allocation25_spill] sm:$0xff] %v3327_v61  ;;  %4407 = vst [vmem:[#allocation26_spill] sm:$0xff] %v3333_v62  ;;  %v350_v0 = vld [vmem:[%s3154_s7 + $0x30] sm:$0xff]  ;;  %v3342_v1 = vld [vmem:[#allocation10 + $0x68] sm:$0xff] }
  0x88   : > { %489 = vmatprep.mubr.f32.mxu0 %v4287_v10  ;;  %602 = vmatprep.mubr.f32.mxu1 %v4287_v10  ;;  %4408 = vst [vmem:[#allocation27_spill] sm:$0xff] %v3335_v63  ;;  %4409 = vst [vmem:[#allocation28_spill] sm:$0xff] %v3342_v1  ;;  %v3344_v2 = vld [vmem:[#allocation10 + $0x78] sm:$0xff]  ;;  %v3348_v3 = vld [vmem:[#allocation10 + $0x60] sm:$0xff] }
  0x89   : > { %746 = vmatpush1.msra.mxu0 %v3246_v35  ;;  %817 = vmatpush1.msra.mxu1 %v3248_v36  ;;  %4410 = vst [vmem:[#allocation29_spill] sm:$0xff] %v3344_v2  ;;  %4411 = vst [vmem:[#allocation30_spill] sm:$0xff] %v3348_v3  ;;  %v3350_v4 = vld [vmem:[#allocation10 + $0x70] sm:$0xff]  ;;  %v3354_v5 = vld [vmem:[#allocation10 + $0x48] sm:$0xff] }
  0x8a   : > { %2407 = vmatmul.mubr.msk.f32.gmra.mxu0 %vm382_vm0, %v347_v37  ;;  %2415 = vmatmul.mubr.msk.f32.gmra.mxu1 %vm382_vm0, %v347_v37  ;;  %4412 = vst [vmem:[#allocation31_spill] sm:$0xff] %v3350_v4  ;;  %4413 = vst [vmem:[#allocation32_spill] sm:$0xff] %v3354_v5  ;;  %v3356_v6 = vld [vmem:[#allocation10 + $0x58] sm:$0xff]  ;;  %v3362_v7 = vld [vmem:[#allocation10 + $0x40] sm:$0xff] }
  0x8b   : > { %747 = vmatprep.subr.mxu0 %v3255_v38  ;;  %818 = vmatprep.subr.mxu1 %v3257_v39  ;;  %4414 = vst [vmem:[#allocation33_spill] sm:$0xff] %v3356_v6  ;;  %4415 = vst [vmem:[#allocation34_spill] sm:$0xff] %v3362_v7  ;;  %v3364_v8 = vld [vmem:[#allocation10 + $0x50] sm:$0xff]  ;;  %v351_v9 = vld [vmem:[%s3154_s7 + $0x38] sm:$0xff]  ;;  %s1826_s7 = sadd.s32 5, %s3565_s20 }
  0x8c   : > { %748 = vmatpush1.msra.mxu0 %v3261_v40  ;;  %819 = vmatpush1.msra.mxu1 %v3263_v41  ;;  %4416 = vst [vmem:[#allocation35_spill] sm:$0xff] %v3364_v8  ;;  %v3371_v19 = vld [vmem:[#allocation10 + $0x28] sm:$0xff]  ;;  %v3373_v28 = vld [vmem:[#allocation10 + $0x38] sm:$0xff]  ;;  %v3377_v37 = vld [vmem:[#allocation10 + $0x20] sm:$0xff]  ;;  %p1827_p10 = scmp.lt.s32.totalorder %s1826_s7, 12 }
  0x8d   : > { %749 = vmatprep.subr.mxu0 %v3267_v42  ;;  %820 = vmatprep.subr.mxu1 %v3269_v43  ;;  %4417 = vst [vmem:[#allocation36_spill] sm:$0xff] %v3371_v19  ;;  %4418 = vst [vmem:[#allocation37_spill] sm:$0xff] %v3373_v28 }
  0x8e   : > { %495 = vmatprep.mubr.f32.mxu0 %v4287_v10  ;;  %608 = vmatprep.mubr.f32.mxu1 %v4287_v10  ;;  %4419 = vst [vmem:[#allocation38_spill] sm:$0xff] %v3377_v37  ;;  %s1828_s8 = scalar_select %p1827_p10, 1, 0 }
  0x8f   : > { %750 = vmatpush1.msra.mxu0 %v3275_v44  ;;  %821 = vmatpush1.msra.mxu1 %v3277_v45 }
  0x90   : > { %2408 = vmatmul.mubr.msk.f32.gmra.mxu0 %vm382_vm0, %v348_v46  ;;  %2416 = vmatmul.mubr.msk.f32.gmra.mxu1 %vm382_vm0, %v348_v46  ;;  %v3379_v46 = vld [vmem:[#allocation10 + $0x30] sm:$0xff] }
  0x91   : > { %751 = vmatprep.subr.mxu0 %v3284_v47  ;;  %822 = vmatprep.subr.mxu1 %v3286_v48  ;;  %4420 = vst [vmem:[#allocation39_spill] sm:$0xff] %v3379_v46 }
  0x92   : > { %752 = vmatpush1.msra.mxu0 %v3290_v49  ;;  %823 = vmatpush1.msra.mxu1 %v3292_v50 }
  0x93   : > { %753 = vmatprep.subr.mxu0 %v3296_v51  ;;  %824 = vmatprep.subr.mxu1 %v3298_v52 }
  0x94   : > { %501 = vmatprep.mubr.f32.mxu0 %v4287_v10  ;;  %614 = vmatprep.mubr.f32.mxu1 %v4287_v10 }
  0x95   : > { %754 = vmatpush1.msra.mxu0 %v3304_v53  ;;  %825 = vmatpush1.msra.mxu1 %v3306_v54 }
  0x96   : > { %2409 = vmatmul.mubr.msk.f32.gmra.mxu0 %vm382_vm0, %v349_v55  ;;  %2417 = vmatmul.mubr.msk.f32.gmra.mxu1 %vm382_vm0, %v349_v55  ;;  %v3383_v55 = vld [vmem:[#allocation10 + $0x8] sm:$0xff] }
  0x97   : > { %755 = vmatprep.subr.mxu0 %v3313_v56  ;;  %826 = vmatprep.subr.mxu1 %v3315_v57  ;;  %4421 = vst [vmem:[#allocation40_spill] sm:$0xff] %v3383_v55 }
  0x98   : > { %756 = vmatpush1.msra.mxu0 %v3319_v58  ;;  %827 = vmatpush1.msra.mxu1 %v3321_v59 }
  0x99   : > { %757 = vmatprep.subr.mxu0 %v3325_v60  ;;  %828 = vmatprep.subr.mxu1 %v3327_v61 }
  0x9a   : > { %507 = vmatprep.mubr.f32.mxu0 %v4287_v10  ;;  %620 = vmatprep.mubr.f32.mxu1 %v4287_v10 }
  0x9b   : > { %758 = vmatpush1.msra.mxu0 %v3333_v62  ;;  %829 = vmatpush1.msra.mxu1 %v3335_v63 }
  0x9c   : > { %2410 = vmatmul.mubr.msk.f32.gmra.mxu0 %vm382_vm0, %v350_v0  ;;  %2418 = vmatmul.mubr.msk.f32.gmra.mxu1 %vm382_vm0, %v350_v0  ;;  %v3385_v0 = vld [vmem:[#allocation10 + $0x18] sm:$0xff] }
  0x9d   : > { %759 = vmatprep.subr.mxu0 %v3342_v1  ;;  %830 = vmatprep.subr.mxu1 %v3344_v2  ;;  %4422 = vst [vmem:[#allocation41_spill] sm:$0xff] %v3385_v0 }
  0x9e   : > { %760 = vmatpush1.msra.mxu0 %v3348_v3  ;;  %831 = vmatpush1.msra.mxu1 %v3350_v4 }
  0x9f   : > { %761 = vmatprep.subr.mxu0 %v3354_v5  ;;  %832 = vmatprep.subr.mxu1 %v3356_v6 }
  0xa0   : > { %513 = vmatprep.mubr.f32.mxu0 %v4287_v10  ;;  %626 = vmatprep.mubr.f32.mxu1 %v4287_v10  ;;  %v3389_v10 = vld [vmem:[#allocation10] sm:$0xff] }
  0xa1   : > { %762 = vmatpush1.msra.mxu0 %v3362_v7  ;;  %833 = vmatpush1.msra.mxu1 %v3364_v8  ;;  %4423 = vst [vmem:[#allocation42_spill] sm:$0xff] %v3389_v10  ;;  %v3393_v8 = vld [vmem:[#allocation10 + $0x10] sm:$0xff]  ;;  %v4425_v7 = vmov 0.0  }
  0xa2   : > { %2411 = vmatmul.mubr.msk.f32.gmra.mxu0 %vm382_vm0, %v351_v9  ;;  %2419 = vmatmul.mubr.msk.f32.gmra.mxu1 %vm382_vm0, %v351_v9  ;;  %4424 = vst [vmem:[#allocation43_spill] sm:$0xff] %v3393_v8  ;;  %v3397_v9 = vld [vmem:[#allocation2] sm:$0xff] }
  0xa3   : > { %763 = vmatprep.subr.mxu0 %v3371_v19  ;;  %834 = vmatprep.subr.mxu1 %v3373_v28 }
  0xa4   : > { %764 = vmatpush1.msra.mxu0 %v3377_v37  ;;  %835 = vmatpush1.msra.mxu1 %v3379_v46 }
  0xa5   : > { %765 = vmatprep.subr.mxu0 %v3383_v55  ;;  %836 = vmatprep.subr.mxu1 %v3385_v0 }
  0xa6   : > { %766 = vmatpush1.msra.mxu0 %v3389_v10  ;;  %799 = vmatprep.mubr.f32.mxu0 %v4425_v7 }
  0xa7   : > { %837 = vmatpush1.msra.mxu1 %v3393_v8  ;;  %870 = vmatprep.mubr.f32.mxu1 %v4425_v7 }
  0xa8   : > { %800 = vmatmul.mubr.f32.vlgmr.msra.gmra.mxu0 %v3397_v9  ;;  %871 = vmatmul.mubr.f32.vlgmr.msra.gmra.mxu1 %v3397_v9 }
  0xa9   : > { %918 = vmatprep.subr.mxu0 %v3169_v11  ;;  %989 = vmatprep.subr.mxu1 %v3171_v12 }
  0xaa   : > { %919 = vmatpush1.msra.mxu0 %v3174_v13  ;;  %990 = vmatpush1.msra.mxu1 %v3176_v14 }
  0xab   : > { %920 = vmatprep.subr.mxu0 %v3180_v15  ;;  %991 = vmatprep.subr.mxu1 %v3182_v16 }
  0xac   : > { %921 = vmatpush1.msra.mxu0 %v3188_v17  ;;  %992 = vmatpush1.msra.mxu1 %v3190_v18 }
  0xad   : > { %922 = vmatprep.subr.mxu0 %v3197_v20  ;;  %993 = vmatprep.subr.mxu1 %v3199_v21 }
  0xae   : > { %923 = vmatpush1.msra.mxu0 %v3203_v22  ;;  %994 = vmatpush1.msra.mxu1 %v3205_v23 }
  0xaf   : > { %924 = vmatprep.subr.mxu0 %v3209_v24  ;;  %995 = vmatprep.subr.mxu1 %v3211_v25 }
  0xb0   : > { %925 = vmatpush1.msra.mxu0 %v3217_v26  ;;  %996 = vmatpush1.msra.mxu1 %v3219_v27 }
  0xb1   : > { %926 = vmatprep.subr.mxu0 %v3226_v29  ;;  %997 = vmatprep.subr.mxu1 %v3228_v30 }
  0xb2   : > { %927 = vmatpush1.msra.mxu0 %v3232_v31  ;;  %998 = vmatpush1.msra.mxu1 %v3234_v32 }
  0xb3   : > { %928 = vmatprep.subr.mxu0 %v3238_v33  ;;  %999 = vmatprep.subr.mxu1 %v3240_v34 }
  0xb4   : > { %929 = vmatpush1.msra.mxu0 %v3246_v35  ;;  %1000 = vmatpush1.msra.mxu1 %v3248_v36 }
  0xb5   : > { %930 = vmatprep.subr.mxu0 %v3255_v38  ;;  %1001 = vmatprep.subr.mxu1 %v3257_v39 }
  0xb6   : > { %931 = vmatpush1.msra.mxu0 %v3261_v40  ;;  %1002 = vmatpush1.msra.mxu1 %v3263_v41 }
  0xb7   : > { %932 = vmatprep.subr.mxu0 %v3267_v42  ;;  %1003 = vmatprep.subr.mxu1 %v3269_v43 }
  0xb8   : > { %933 = vmatpush1.msra.mxu0 %v3275_v44  ;;  %1004 = vmatpush1.msra.mxu1 %v3277_v45 }
  0xb9   : > { %934 = vmatprep.subr.mxu0 %v3284_v47  ;;  %1005 = vmatprep.subr.mxu1 %v3286_v48 }
  0xba   : > { %935 = vmatpush1.msra.mxu0 %v3290_v49  ;;  %1006 = vmatpush1.msra.mxu1 %v3292_v50 }
  0xbb   : > { %936 = vmatprep.subr.mxu0 %v3296_v51  ;;  %1007 = vmatprep.subr.mxu1 %v3298_v52 }
  0xbc   : > { %937 = vmatpush1.msra.mxu0 %v3304_v53  ;;  %1008 = vmatpush1.msra.mxu1 %v3306_v54 }
  0xbd   : > { %938 = vmatprep.subr.mxu0 %v3313_v56  ;;  %1009 = vmatprep.subr.mxu1 %v3315_v57 }
  0xbe   : > { %939 = vmatpush1.msra.mxu0 %v3319_v58  ;;  %1010 = vmatpush1.msra.mxu1 %v3321_v59  ;;  %v4426_v59 = vld [vmem:[#allocation34_spill] sm:$0xff] }
  0xbf   : > { %940 = vmatprep.subr.mxu0 %v3325_v60  ;;  %1011 = vmatprep.subr.mxu1 %v3327_v61  ;;  %v4427_v60 = vld [vmem:[#allocation35_spill] sm:$0xff] }
  0xc0   : > { %941 = vmatpush1.msra.mxu0 %v3333_v62  ;;  %1012 = vmatpush1.msra.mxu1 %v3335_v63 }
  0xc1   : > { %942 = vmatprep.subr.mxu0 %v3342_v1  ;;  %1013 = vmatprep.subr.mxu1 %v3344_v2 }
  0xc2   : > { %943 = vmatpush1.msra.mxu0 %v3348_v3  ;;  %1014 = vmatpush1.msra.mxu1 %v3350_v4 }
  0xc3   : > { %944 = vmatprep.subr.mxu0 %v3354_v5  ;;  %1015 = vmatprep.subr.mxu1 %v3356_v6 }
  0xc4   : > { %945 = vmatpush1.msra.mxu0 %v4426_v59  ;;  %1016 = vmatpush1.msra.mxu1 %v4427_v60 }
  0xc5   : > { %946 = vmatprep.subr.mxu0 %v3371_v19  ;;  %1017 = vmatprep.subr.mxu1 %v3373_v28  ;;  %v362_v28 = vlaneseq }
  0xc6   : > { %947 = vmatpush1.msra.mxu0 %v3377_v37  ;;  %1018 = vmatpush1.msra.mxu1 %v3379_v46 }
  0xc7   : > { %948 = vmatprep.subr.mxu0 %v3383_v55  ;;  %1019 = vmatprep.subr.mxu1 %v3385_v0  ;;  %v363_v37 = vshrl.u32 %v362_v28, 7 }
  0xc8   : > { %949 = vmatpush1.msra.mxu0 %v3389_v10  ;;  %982 = vmatprep.mubr.f32.mxu0 %v4425_v7  ;;  %v360_v10 = vld [vmem:[%s4277_s3] sm:$0xf] }
  0xc9   : > { %1020 = vmatpush1.msra.mxu1 %v3393_v8  ;;  %1053 = vmatprep.mubr.f32.mxu1 %v4425_v7  ;;  %v364_v55 = vsub.s32 0, %v363_v37  ;;  %v372_v0 = vsub.s32 2, %v363_v37  ;;  %v368_v7 = vsub.s32 1, %v363_v37 }
  0xca   : > { %1102 = vmatprep.subr.mxu0 %v3169_v11  ;;  %1173 = vmatprep.subr.mxu1 %v3171_v12  ;;  %v376_v11 = vsub.s32 3, %v363_v37 }
  0xcb   : > { %v365_v59 = vrot.slane %v360_v10, %v364_v55  ;;  %v3484_v12 = vrot.slane %v360_v10, %v372_v0  ;;  %v369_v5 = vrot.slane %v360_v10, %v368_v7 }
  0xcc   : > { %v3486_v4 = vrot.slane %v360_v10, %v376_v11 }
 0x138   : > { %v3473_v19 = vpop.f32.mrf.mxu0  ;;  %v3475_v46 = vpop.f32.mrf.mxu1 }
 0x13a   : > { %v3480_v60 = vpop.f32.mrf.mxu0  ;;  %v3482_v8 = vpop.f32.mrf.mxu1 }
 0x13e   : > { %v479_v28 = vpop.f32.mrf.mxu0  ;;  %v592_v6 = vpop.f32.mrf.mxu1 }
 0x13f   : > { %v3488_v3 = vadd.f32 %v479_v28, %v365_v59  ;;  %v3491_v2 = vadd.f32 %v592_v6, %v3484_v12 }
 0x140   : > { %v481_v1 = vpop.f32.mrf.mxu0  ;;  %v594_v63 = vpop.f32.mrf.mxu1 }
 0x141   : > { %4428 = vst [vmem:[#allocation44_spill] sm:$0xff] %v3488_v3  ;;  %4429 = vst [vmem:[#allocation45_spill] sm:$0xff] %v3491_v2  ;;  %v3493_v62 = vadd.f32 %v481_v1, %v369_v5  ;;  %v3496_v61 = vadd.f32 %v594_v63, %v3486_v4 }
 0x143   : > { %4430 = vst [vmem:[#allocation46_spill] sm:$0xff] %v3493_v62  ;;  %4431 = vst [vmem:[#allocation47_spill] sm:$0xff] %v3496_v61 }
 0x144   : > { %v485_v37 = vpop.f32.mrf.mxu0  ;;  %v598_v55 = vpop.f32.mrf.mxu1 }
 0x145   : > { %v3498_v0 = vadd.f32 %v485_v37, %v365_v59  ;;  %v3501_v7 = vadd.f32 %v598_v55, %v3484_v12 }
 0x146   : > { %v487_v10 = vpop.f32.mrf.mxu0  ;;  %v600_v11 = vpop.f32.mrf.mxu1 }
 0x147   : > { %4432 = vst [vmem:[#allocation48_spill] sm:$0xff] %v3498_v0  ;;  %4433 = vst [vmem:[#allocation49_spill] sm:$0xff] %v3501_v7  ;;  %v3503_v28 = vadd.f32 %v487_v10, %v369_v5  ;;  %v3506_v6 = vadd.f32 %v600_v11, %v3486_v4 }
 0x149   : > { %4434 = vst [vmem:[#allocation50_spill] sm:$0xff] %v3503_v28  ;;  %4435 = vst [vmem:[#allocation51_spill] sm:$0xff] %v3506_v6 }
 0x14a   : > { %v491_v2 = vpop.f32.mrf.mxu0  ;;  %v604_v1 = vpop.f32.mrf.mxu1 }
 0x14b   : > { %v3508_v62 = vadd.f32 %v491_v2, %v365_v59  ;;  %v3511_v63 = vadd.f32 %v604_v1, %v3484_v12 }
 0x14c   : > { %v493_v61 = vpop.f32.mrf.mxu0  ;;  %v606_v37 = vpop.f32.mrf.mxu1 }
 0x14d   : > { %4436 = vst [vmem:[#allocation52_spill] sm:$0xff] %v3508_v62  ;;  %4437 = vst [vmem:[#allocation53_spill] sm:$0xff] %v3511_v63  ;;  %v3513_v0 = vadd.f32 %v493_v61, %v369_v5  ;;  %v3516_v55 = vadd.f32 %v606_v37, %v3486_v4 }
 0x14f   : > { %4438 = vst [vmem:[#allocation54_spill] sm:$0xff] %v3513_v0  ;;  %4439 = vst [vmem:[#allocation55_spill] sm:$0xff] %v3516_v55 }
 0x150   : > { %v497_v7 = vpop.f32.mrf.mxu0  ;;  %v610_v10 = vpop.f32.mrf.mxu1 }
 0x151   : > { %v3518_v28 = vadd.f32 %v497_v7, %v365_v59  ;;  %v3521_v11 = vadd.f32 %v610_v10, %v3484_v12 }
 0x152   : > { %v499_v6 = vpop.f32.mrf.mxu0  ;;  %v612_v2 = vpop.f32.mrf.mxu1 }
 0x153   : > { %4440 = vst [vmem:[#allocation56_spill] sm:$0xff] %v3518_v28  ;;  %4441 = vst [vmem:[#allocation57_spill] sm:$0xff] %v3521_v11  ;;  %v3523_v62 = vadd.f32 %v499_v6, %v369_v5  ;;  %v3526_v1 = vadd.f32 %v612_v2, %v3486_v4 }
 0x155   : > { %4442 = vst [vmem:[#allocation58_spill] sm:$0xff] %v3523_v62  ;;  %4443 = vst [vmem:[#allocation59_spill] sm:$0xff] %v3526_v1 }
 0x156   : > { %v503_v63 = vpop.f32.mrf.mxu0  ;;  %v616_v61 = vpop.f32.mrf.mxu1 }
 0x157   : > { %v3528_v0 = vadd.f32 %v503_v63, %v365_v59  ;;  %v3531_v37 = vadd.f32 %v616_v61, %v3484_v12 }
 0x158   : > { %v505_v55 = vpop.f32.mrf.mxu0  ;;  %v618_v7 = vpop.f32.mrf.mxu1 }
 0x159   : > { %4444 = vst [vmem:[#allocation60_spill] sm:$0xff] %v3528_v0  ;;  %4445 = vst [vmem:[#allocation61_spill] sm:$0xff] %v3531_v37  ;;  %v3533_v28 = vadd.f32 %v505_v55, %v369_v5  ;;  %v3536_v10 = vadd.f32 %v618_v7, %v3486_v4 }
 0x15b   : > { %4446 = vst [vmem:[#allocation62_spill] sm:$0xff] %v3533_v28  ;;  %4447 = vst [vmem:[#allocation63_spill] sm:$0xff] %v3536_v10 }
 0x15c   : > { %v509_v11 = vpop.f32.mrf.mxu0  ;;  %v622_v6 = vpop.f32.mrf.mxu1 }
 0x15d   : > { %v3538_v62 = vadd.f32 %v509_v11, %v365_v59  ;;  %v3541_v2 = vadd.f32 %v622_v6, %v3484_v12 }
 0x15e   : > { %v511_v1 = vpop.f32.mrf.mxu0  ;;  %v624_v63 = vpop.f32.mrf.mxu1 }
 0x15f   : > { %4448 = vst [vmem:[#allocation64_spill] sm:$0xff] %v3538_v62  ;;  %4449 = vst [vmem:[#allocation65_spill] sm:$0xff] %v3541_v2  ;;  %v3543_v0 = vadd.f32 %v511_v1, %v369_v5  ;;  %v3546_v61 = vadd.f32 %v624_v63, %v3486_v4  ;;  %v474_v1 = vadd.f32 %v3473_v19, %v365_v59 }
 0x160   : > { %v476_v63 = vadd.f32 %v3480_v60, %v369_v5  ;;  %v589_v60 = vadd.f32 %v3482_v8, %v3486_v4  ;;  %v909_v8 = vstv %s908_s19  ;;  %s2012_s19 = scalar_select %p2011_p11, 1, 0 }
 0x161   : > { %4450 = vst [vmem:[#allocation66_spill] sm:$0xff] %v3543_v0  ;;  %4451 = vst [vmem:[#allocation67_spill] sm:$0xff] %v3546_v61  ;;  %vm910_vm1 = vcmp.eq.s32.totalorder %v909_v8, 1  ;;  %v4468_v8 = vld [vmem:[#allocation34_spill] sm:$0xff] }
 0x162   : > { %v515_v37 = vpop.f32.mrf.mxu0  ;;  %v628_v55 = vpop.f32.mrf.mxu1 }
 0x163   : > { %v3548_v28 = vadd.f32 %v515_v37, %v365_v59  ;;  %v3551_v7 = vadd.f32 %v628_v55, %v3484_v12 }
 0x164   : > { %v517_v10 = vpop.f32.mrf.mxu0  ;;  %v630_v11 = vpop.f32.mrf.mxu1 }
 0x165   : > { %4452 = vst [vmem:[#allocation68_spill] sm:$0xff] %v3548_v28  ;;  %4453 = vst [vmem:[#allocation69_spill] sm:$0xff] %v3551_v7  ;;  %v3553_v62 = vadd.f32 %v517_v10, %v369_v5  ;;  %v3556_v6 = vadd.f32 %v630_v11, %v3486_v4  ;;  %v587_v10 = vadd.f32 %v3475_v46, %v3484_v12  ;;  %v730_v46 = vld [vmem:[#allocation3] sm:$0xff] }
 0x167   : > { %4454 = vst [vmem:[#allocation70_spill] sm:$0xff] %v3553_v62  ;;  %4455 = vst [vmem:[#allocation71_spill] sm:$0xff] %v3556_v6  ;;  %v4477_v62 = vmov 0.0  }
 0x168   : > { %v801_v2 = vpop.f32.mrf.mxu0  ;;  %v872_v55 = vpop.f32.mrf.mxu1 }
 0x169   : > { %v877_v61 = vadd.f32 %v801_v2, %v474_v1  ;;  %v879_v11 = vadd.f32 %v872_v55, %v587_v10 }
 0x16a   : > { %v803_v0 = vpop.f32.mrf.mxu0  ;;  %v874_v59 = vpop.f32.mrf.mxu1 }
 0x16b   : > { %v881_v3 = vsub.f32 0.0, %v877_v61  ;;  %v878_v37 = vadd.f32 %v803_v0, %v476_v63  ;;  %v883_v6 = vsub.f32 0.0, %v879_v11  ;;  %v880_v2 = vadd.f32 %v874_v59, %v589_v60  ;;  %v4457_v60 = vld [vmem:[#allocation23_spill] sm:$0xff] }
 0x16d   : > { %v884_v28 = vmul.f32 1.442695, %v881_v3  ;;  %v882_v58 = vsub.f32 0.0, %v878_v37  ;;  %v888_v5 = vmul.f32 1.442695, %v883_v6 }
 0x16f   : > { %2542 = vpow2.f32 %v884_v28  ;;  %v886_v7 = vmul.f32 1.442695, %v882_v58 }
 0x171   : > { %2544 = vpow2.f32 %v886_v7 }
 0x172   : > { %2546 = vpow2.f32 %v888_v5  ;;  %v4458_v5 = vld [vmem:[#allocation24_spill] sm:$0xff] }
 0x17c   : > { %v2543_v19 = vpop.eup %2542 }
 0x17d   : > { %v890_v0 = vadd.f32 1.0, %v2543_v19  ;;  %v4459_v19 = vld [vmem:[#allocation25_spill] sm:$0xff] }
 0x17e   : > { %v2545_v3 = vpop.eup %2544 }
 0x17f   : > { %2548 = vrcp.f32 %v890_v0  ;;  %v891_v28 = vadd.f32 1.0, %v2545_v3  ;;  %v2547_v12 = vpop.eup %2546  ;;  %v4461_v0 = vld [vmem:[#allocation27_spill] sm:$0xff]  ;;  %v4462_v3 = vld [vmem:[#allocation28_spill] sm:$0xff] }
 0x180   : > { %2550 = vtanh.f32 %v880_v2  ;;  %v892_v7 = vadd.f32 1.0, %v2547_v12  ;;  %v4460_v2 = vld [vmem:[#allocation26_spill] sm:$0xff] }
 0x181   : > { %2552 = vrcp.f32 %v891_v28  ;;  %v4463_v28 = vld [vmem:[#allocation29_spill] sm:$0xff]  ;;  %v4464_v12 = vld [vmem:[#allocation30_spill] sm:$0xff] }
 0x182   : > { %2554 = vrcp.f32 %v892_v7  ;;  %v4470_v7 = vld [vmem:[#allocation36_spill] sm:$0xff] }
 0x18c   : > { %v2549_v58 = vpop.eup %2548 }
 0x18d   : > { %v2551_v4 = vpop.eup %2550 }
 0x18e   : > { %v2553_v61 = vpop.eup %2552  ;;  %v901_v1 = vmul.f32 %v2551_v4, %v2549_v58  ;;  %v4465_v58 = vld [vmem:[#allocation31_spill] sm:$0xff]  ;;  %v4467_v4 = vld [vmem:[#allocation33_spill] sm:$0xff] }
 0x18f   : > { %v900_v6 = vmul.f32 %v2553_v61, %v730_v46  ;;  %v2555_v55 = vpop.eup %2554  ;;  %v4469_v61 = vld [vmem:[#allocation35_spill] sm:$0xff] }
 0x191   : > { %v902_v63 = vadd.f32 %v901_v1, %v900_v6  ;;  %v4471_v6 = vld [vmem:[#allocation37_spill] sm:$0xff]  ;;  %v4472_v1 = vld [vmem:[#allocation38_spill] sm:$0xff] }
 0x193   : > { %2556 = vtanh.f32 %v902_v63  ;;  %v3568_v37 = vsel %vm910_vm1, %v902_v63, %v730_v46  ;;  %v4466_v46 = vld [vmem:[#allocation32_spill] sm:$0xff]  ;;  %v4473_v63 = vld [vmem:[#allocation39_spill] sm:$0xff] }
 0x1a0   : > { %v2557_v10 = vpop.eup %2556 }
 0x1a1   : > { %v904_v11 = vmul.f32 %v2557_v10, %v2555_v55  ;;  %v4474_v55 = vld [vmem:[#allocation40_spill] sm:$0xff]  ;;  %v4475_v10 = vld [vmem:[#allocation41_spill] sm:$0xff] }
 0x1a3   : > { %905 = vst [vmem:[%s3164_s15] sm:$0xff] %v904_v11  ;;  %v3572_v59 = vsel %vm910_vm1, %v904_v11, %v3397_v9  ;;  %v4456_v9 = vld [vmem:[#allocation22_spill] sm:$0xff] }
 0x1a4   : > { %983 = vmatmul.mubr.f32.vlgmr.msra.gmra.mxu0 %v3572_v59  ;;  %1054 = vmatmul.mubr.f32.vlgmr.msra.gmra.mxu1 %v3572_v59  ;;  %v4476_v11 = vld [vmem:[#allocation42_spill] sm:$0xff] }
 0x1a5   : > { %1103 = vmatpush1.msra.mxu0 %v3174_v13  ;;  %1174 = vmatpush1.msra.mxu1 %v3176_v14 }
 0x1a6   : > { %1104 = vmatprep.subr.mxu0 %v3180_v15  ;;  %1175 = vmatprep.subr.mxu1 %v3182_v16 }
 0x1a7   : > { %1105 = vmatpush1.msra.mxu0 %v3188_v17  ;;  %1176 = vmatpush1.msra.mxu1 %v3190_v18 }
 0x1a8   : > { %1106 = vmatprep.subr.mxu0 %v3197_v20  ;;  %1177 = vmatprep.subr.mxu1 %v3199_v21 }
 0x1a9   : > { %1107 = vmatpush1.msra.mxu0 %v3203_v22  ;;  %1178 = vmatpush1.msra.mxu1 %v3205_v23 }
 0x1aa   : > { %1108 = vmatprep.subr.mxu0 %v3209_v24  ;;  %1179 = vmatprep.subr.mxu1 %v3211_v25 }
 0x1ab   : > { %1109 = vmatpush1.msra.mxu0 %v3217_v26  ;;  %1180 = vmatpush1.msra.mxu1 %v3219_v27 }
 0x1ac   : > { %1110 = vmatprep.subr.mxu0 %v3226_v29  ;;  %1181 = vmatprep.subr.mxu1 %v3228_v30 }
 0x1ad   : > { %1111 = vmatpush1.msra.mxu0 %v3232_v31  ;;  %1182 = vmatpush1.msra.mxu1 %v3234_v32 }
 0x1ae   : > { %1112 = vmatprep.subr.mxu0 %v3238_v33  ;;  %1183 = vmatprep.subr.mxu1 %v3240_v34 }
 0x1af   : > { %1113 = vmatpush1.msra.mxu0 %v3246_v35  ;;  %1184 = vmatpush1.msra.mxu1 %v3248_v36 }
 0x1b0   : > { %1114 = vmatprep.subr.mxu0 %v3255_v38  ;;  %1185 = vmatprep.subr.mxu1 %v3257_v39 }
 0x1b1   : > { %1115 = vmatpush1.msra.mxu0 %v3261_v40  ;;  %1186 = vmatpush1.msra.mxu1 %v3263_v41 }
 0x1b2   : > { %1116 = vmatprep.subr.mxu0 %v3267_v42  ;;  %1187 = vmatprep.subr.mxu1 %v3269_v43 }
 0x1b3   : > { %1117 = vmatpush1.msra.mxu0 %v3275_v44  ;;  %1188 = vmatpush1.msra.mxu1 %v3277_v45 }
 0x1b4   : > { %1118 = vmatprep.subr.mxu0 %v3284_v47  ;;  %1189 = vmatprep.subr.mxu1 %v3286_v48 }
 0x1b5   : > { %1119 = vmatpush1.msra.mxu0 %v3290_v49  ;;  %1190 = vmatpush1.msra.mxu1 %v3292_v50 }
 0x1b6   : > { %1120 = vmatprep.subr.mxu0 %v3296_v51  ;;  %1191 = vmatprep.subr.mxu1 %v3298_v52 }
 0x1b7   : > { %1121 = vmatpush1.msra.mxu0 %v3304_v53  ;;  %1192 = vmatpush1.msra.mxu1 %v3306_v54 }
 0x1b8   : > { %1122 = vmatprep.subr.mxu0 %v3313_v56  ;;  %1193 = vmatprep.subr.mxu1 %v3315_v57 }
 0x1b9   : > { %1123 = vmatpush1.msra.mxu0 %v4456_v9  ;;  %1194 = vmatpush1.msra.mxu1 %v4457_v60 }
 0x1ba   : > { %1124 = vmatprep.subr.mxu0 %v4458_v5  ;;  %1195 = vmatprep.subr.mxu1 %v4459_v19 }
 0x1bb   : > { %1125 = vmatpush1.msra.mxu0 %v4460_v2  ;;  %1196 = vmatpush1.msra.mxu1 %v4461_v0  ;;  %v4484_v0 = vld [vmem:[#allocation47_spill] sm:$0xff] }
 0x1bc   : > { %1126 = vmatprep.subr.mxu0 %v4462_v3  ;;  %1197 = vmatprep.subr.mxu1 %v4463_v28 }
 0x1bd   : > { %1127 = vmatpush1.msra.mxu0 %v4464_v12  ;;  %1198 = vmatpush1.msra.mxu1 %v4465_v58 }
 0x1be   : > { %1128 = vmatprep.subr.mxu0 %v4466_v46  ;;  %1199 = vmatprep.subr.mxu1 %v4467_v4  ;;  %v4478_v4 = vld [vmem:[#allocation43_spill] sm:$0xff] }
 0x1bf   : > { %1129 = vmatpush1.msra.mxu0 %v4468_v8  ;;  %1200 = vmatpush1.msra.mxu1 %v4469_v61  ;;  %v4479_v61 = vld [vmem:[#allocation20_spill] sm:$0xff] }
 0x1c0   : > { %1130 = vmatprep.subr.mxu0 %v4470_v7  ;;  %1201 = vmatprep.subr.mxu1 %v4471_v6  ;;  %v4480_v7 = vld [vmem:[#allocation21_spill] sm:$0xff] }
 0x1c1   : > { %1131 = vmatpush1.msra.mxu0 %v4472_v1  ;;  %1202 = vmatpush1.msra.mxu1 %v4473_v63  ;;  %v4481_v1 = vld [vmem:[#allocation44_spill] sm:$0xff] }
 0x1c2   : > { %1132 = vmatprep.subr.mxu0 %v4474_v55  ;;  %1203 = vmatprep.subr.mxu1 %v4475_v10  ;;  %v4482_v55 = vld [vmem:[#allocation46_spill] sm:$0xff] }
 0x1c3   : > { %1133 = vmatpush1.msra.mxu0 %v4476_v11  ;;  %1166 = vmatprep.mubr.f32.mxu0 %v4477_v62 }
 0x1c4   : > { %1204 = vmatpush1.msra.mxu1 %v4478_v4  ;;  %1237 = vmatprep.mubr.f32.mxu1 %v4477_v62  ;;  %v4483_v4 = vld [vmem:[#allocation45_spill] sm:$0xff] }
 0x1c5   : > { %1286 = vmatprep.subr.mxu0 %v4479_v61  ;;  %1357 = vmatprep.subr.mxu1 %v4480_v7 }
 0x264   : > { %v984_v6 = vpop.f32.mrf.mxu0  ;;  %v1055_v11 = vpop.f32.mrf.mxu1 }
 0x265   : > { %v1060_v8 = vadd.f32 %v984_v6, %v4481_v1  ;;  %v1062_v62 = vadd.f32 %v1055_v11, %v4483_v4  ;;  %v1093_v4 = vstv %s1092_s18  ;;  %s2196_s18 = scalar_select %p2195_p6, 1, 0 }
 0x266   : > { %v986_v63 = vpop.f32.mrf.mxu0  ;;  %v1057_v61 = vpop.f32.mrf.mxu1  ;;  %vm1094_vm2 = vcmp.eq.s32.totalorder %v1093_v4, 1 }
 0x267   : > { %v1064_v46 = vsub.f32 0.0, %v1060_v8  ;;  %v1061_v58 = vadd.f32 %v986_v63, %v4482_v55  ;;  %v1066_v3 = vsub.f32 0.0, %v1062_v62  ;;  %v1063_v7 = vadd.f32 %v1057_v61, %v4484_v0 }
 0x269   : > { %v1067_v10 = vmul.f32 1.442695, %v1064_v46  ;;  %v1065_v12 = vsub.f32 0.0, %v1061_v58  ;;  %v1071_v2 = vmul.f32 1.442695, %v1066_v3 }
 0x26b   : > { %2558 = vpow2.f32 %v1067_v10  ;;  %v1069_v28 = vmul.f32 1.442695, %v1065_v12 }
 0x26d   : > { %2560 = vpow2.f32 %v1069_v28 }
 0x26e   : > { %2562 = vtanh.f32 %v1063_v7 }
 0x26f   : > { %2564 = vpow2.f32 %v1071_v2 }
 0x278   : > { %v2559_v19 = vpop.eup %2558 }
 0x279   : > { %v1073_v6 = vadd.f32 1.0, %v2559_v19 }
 0x27a   : > { %v2561_v8 = vpop.eup %2560 }
 0x27b   : > { %2566 = vrcp.f32 %v1073_v6  ;;  %v1074_v46 = vadd.f32 1.0, %v2561_v8  ;;  %v2563_v12 = vpop.eup %2562  ;;  %v1277_v8 = vstv %s1276_s27 }
 0x27c   : > { %v2565_v28 = vpop.eup %2564  ;;  %vm1278_vm3 = vcmp.eq.s32.totalorder %v1277_v8, 1  ;;  %v3847_v8 = vld [vmem:[#allocation10 + $0xd8] sm:$0xff] }
 0x27d   : > { %2568 = vrcp.f32 %v1074_v46  ;;  %v1075_v0 = vadd.f32 1.0, %v2565_v28 }
 0x27f   : > { %2570 = vrcp.f32 %v1075_v0 }
 0x288   : > { %v2567_v58 = vpop.eup %2566 }
 0x289   : > { %v1084_v62 = vmul.f32 %v2567_v58, %v2563_v12 }
 0x28a   : > { %v2569_v1 = vpop.eup %2568 }
 0x28b   : > { %v1083_v3 = vmul.f32 %v2569_v1, %v3568_v37 }
 0x28c   : > { %v2571_v63 = vpop.eup %2570 }
 0x28d   : > { %v1085_v19 = vadd.f32 %v1084_v62, %v1083_v3 }
 0x28f   : > { %2572 = vtanh.f32 %v1085_v19  ;;  %v3649_v2 = vsel %vm1094_vm2, %v1085_v19, %v3568_v37  ;;  %v3742_v19 = vld [vmem:[#allocation10 + $0x1e0] sm:$0xff] }
 0x29c   : > { %v2573_v55 = vpop.eup %2572 }
 0x29d   : > { %v1087_v10 = vmul.f32 %v2573_v55, %v2571_v63  ;;  %v3745_v63 = vld [vmem:[#allocation10 + $0x1f0] sm:$0xff]  ;;  %v3751_v55 = vld [vmem:[#allocation10 + $0x1d8] sm:$0xff] }
 0x29f   : > { %2421 = vst [vmem:[%s3164_s15 + $0x8] sm:$0xff] %v1087_v10  ;;  %v3653_v11 = vsel %vm1094_vm2, %v1087_v10, %v3572_v59  ;;  %v3754_v10 = vld [vmem:[#allocation10 + $0x1c0] sm:$0xff] }
 0x2a0   : > { %1167 = vmatmul.mubr.f32.vlgmr.msra.gmra.mxu0 %v3653_v11  ;;  %1238 = vmatmul.mubr.f32.vlgmr.msra.gmra.mxu1 %v3653_v11 }
 0x2a1   : > { %1287 = vmatpush1.msra.mxu0 %v3174_v13  ;;  %1358 = vmatpush1.msra.mxu1 %v3176_v14  ;;  %v4485_v13 = vld [vmem:[#allocation25_spill] sm:$0xff]  ;;  %v4486_v14 = vld [vmem:[#allocation26_spill] sm:$0xff] }
 0x2a2   : > { %1288 = vmatprep.subr.mxu0 %v3180_v15  ;;  %1359 = vmatprep.subr.mxu1 %v3182_v16  ;;  %v4487_v15 = vld [vmem:[#allocation27_spill] sm:$0xff]  ;;  %v4488_v16 = vld [vmem:[#allocation28_spill] sm:$0xff] }
 0x2a3   : > { %1289 = vmatpush1.msra.mxu0 %v3188_v17  ;;  %1360 = vmatpush1.msra.mxu1 %v3190_v18  ;;  %v4489_v17 = vld [vmem:[#allocation29_spill] sm:$0xff]  ;;  %v4490_v18 = vld [vmem:[#allocation30_spill] sm:$0xff] }
 0x2a4   : > { %1290 = vmatprep.subr.mxu0 %v3197_v20  ;;  %1361 = vmatprep.subr.mxu1 %v3199_v21  ;;  %v4491_v20 = vld [vmem:[#allocation31_spill] sm:$0xff]  ;;  %v4492_v21 = vld [vmem:[#allocation32_spill] sm:$0xff] }
 0x2a5   : > { %1291 = vmatpush1.msra.mxu0 %v3203_v22  ;;  %1362 = vmatpush1.msra.mxu1 %v3205_v23  ;;  %v4493_v22 = vld [vmem:[#allocation33_spill] sm:$0xff]  ;;  %v4494_v23 = vld [vmem:[#allocation34_spill] sm:$0xff] }
 0x2a6   : > { %1292 = vmatprep.subr.mxu0 %v3209_v24  ;;  %1363 = vmatprep.subr.mxu1 %v3211_v25  ;;  %v4495_v24 = vld [vmem:[#allocation35_spill] sm:$0xff]  ;;  %v4496_v25 = vld [vmem:[#allocation36_spill] sm:$0xff] }
 0x2a7   : > { %1293 = vmatpush1.msra.mxu0 %v3217_v26  ;;  %1364 = vmatpush1.msra.mxu1 %v3219_v27  ;;  %v4497_v26 = vld [vmem:[#allocation37_spill] sm:$0xff]  ;;  %v4498_v27 = vld [vmem:[#allocation38_spill] sm:$0xff] }
 0x2a8   : > { %1294 = vmatprep.subr.mxu0 %v3226_v29  ;;  %1365 = vmatprep.subr.mxu1 %v3228_v30  ;;  %v4499_v29 = vld [vmem:[#allocation39_spill] sm:$0xff]  ;;  %v4500_v30 = vld [vmem:[#allocation40_spill] sm:$0xff] }
 0x2a9   : > { %1295 = vmatpush1.msra.mxu0 %v3232_v31  ;;  %1366 = vmatpush1.msra.mxu1 %v3234_v32  ;;  %v4501_v31 = vld [vmem:[#allocation41_spill] sm:$0xff]  ;;  %v4502_v32 = vld [vmem:[#allocation42_spill] sm:$0xff] }
 0x2aa   : > { %1296 = vmatprep.subr.mxu0 %v3238_v33  ;;  %1367 = vmatprep.subr.mxu1 %v3240_v34  ;;  %v4503_v33 = vmov 0.0   ;;  %v4504_v34 = vld [vmem:[#allocation43_spill] sm:$0xff] }
 0x2ab   : > { %1297 = vmatpush1.msra.mxu0 %v3246_v35  ;;  %1368 = vmatpush1.msra.mxu1 %v3248_v36  ;;  %v3721_v35 = vld [vmem:[#allocation10 + $0x1e8] sm:$0xff]  ;;  %v3724_v36 = vld [vmem:[#allocation10 + $0x1f8] sm:$0xff] }
 0x2ac   : > { %1298 = vmatprep.subr.mxu0 %v3255_v38  ;;  %1369 = vmatprep.subr.mxu1 %v3257_v39  ;;  %4505 = vst [vmem:[#allocation22_spill] sm:$0xff] %v3721_v35  ;;  %4506 = vst [vmem:[#allocation23_spill] sm:$0xff] %v3724_v36  ;;  %v4507_v39 = vld [vmem:[#allocation48_spill] sm:$0xff] }
 0x2ad   : > { %1299 = vmatpush1.msra.mxu0 %v3261_v40  ;;  %1370 = vmatpush1.msra.mxu1 %v3263_v41 }
 0x2ae   : > { %1300 = vmatprep.subr.mxu0 %v3267_v42  ;;  %1371 = vmatprep.subr.mxu1 %v3269_v43  ;;  %v4508_v43 = vld [vmem:[#allocation50_spill] sm:$0xff] }
 0x2af   : > { %1301 = vmatpush1.msra.mxu0 %v3275_v44  ;;  %1372 = vmatpush1.msra.mxu1 %v3277_v45 }
 0x2b0   : > { %1302 = vmatprep.subr.mxu0 %v3284_v47  ;;  %1373 = vmatprep.subr.mxu1 %v3286_v48 }
 0x2b1   : > { %1303 = vmatpush1.msra.mxu0 %v3290_v49  ;;  %1374 = vmatpush1.msra.mxu1 %v3292_v50  ;;  %v4509_v50 = vld [vmem:[#allocation49_spill] sm:$0xff] }
 0x2b2   : > { %1304 = vmatprep.subr.mxu0 %v3296_v51  ;;  %1375 = vmatprep.subr.mxu1 %v3298_v52 }
 0x2b3   : > { %1305 = vmatpush1.msra.mxu0 %v3304_v53  ;;  %1376 = vmatpush1.msra.mxu1 %v3306_v54  ;;  %v4510_v54 = vld [vmem:[#allocation51_spill] sm:$0xff] }
 0x2b4   : > { %1306 = vmatprep.subr.mxu0 %v3313_v56  ;;  %1377 = vmatprep.subr.mxu1 %v3315_v57 }
 0x2b5   : > { %1307 = vmatpush1.msra.mxu0 %v4456_v9  ;;  %1378 = vmatpush1.msra.mxu1 %v4457_v60 }
 0x2b6   : > { %1308 = vmatprep.subr.mxu0 %v4458_v5  ;;  %1379 = vmatprep.subr.mxu1 %v4485_v13  ;;  %v3760_v13 = vld [vmem:[#allocation10 + $0x1a8] sm:$0xff] }
 0x2b7   : > { %1309 = vmatpush1.msra.mxu0 %v4486_v14  ;;  %1380 = vmatpush1.msra.mxu1 %v4487_v15  ;;  %v3763_v14 = vld [vmem:[#allocation10 + $0x1b8] sm:$0xff]  ;;  %v3766_v15 = vld [vmem:[#allocation10 + $0x1a0] sm:$0xff] }
 0x2b8   : > { %1310 = vmatprep.subr.mxu0 %v4488_v16  ;;  %1381 = vmatprep.subr.mxu1 %v4489_v17 }
 0x2b9   : > { %1311 = vmatpush1.msra.mxu0 %v4490_v18  ;;  %1382 = vmatpush1.msra.mxu1 %v4491_v20 }
 0x2ba   : > { %1312 = vmatprep.subr.mxu0 %v4492_v21  ;;  %1383 = vmatprep.subr.mxu1 %v4493_v22 }
 0x2bb   : > { %1313 = vmatpush1.msra.mxu0 %v4494_v23  ;;  %1384 = vmatpush1.msra.mxu1 %v4495_v24 }
 0x2bc   : > { %1314 = vmatprep.subr.mxu0 %v4496_v25  ;;  %1385 = vmatprep.subr.mxu1 %v4497_v26 }
 0x2bd   : > { %1315 = vmatpush1.msra.mxu0 %v4498_v27  ;;  %1386 = vmatpush1.msra.mxu1 %v4499_v29 }
 0x2be   : > { %1316 = vmatprep.subr.mxu0 %v4500_v30  ;;  %1387 = vmatprep.subr.mxu1 %v4501_v31 }
 0x2bf   : > { %1317 = vmatpush1.msra.mxu0 %v4502_v32  ;;  %1350 = vmatprep.mubr.f32.mxu0 %v4503_v33 }
 0x2c0   : > { %1388 = vmatpush1.msra.mxu1 %v4504_v34  ;;  %1421 = vmatprep.mubr.f32.mxu1 %v4503_v33 }
 0x2c1   : > { %1470 = vmatprep.subr.mxu0 %v3721_v35  ;;  %1541 = vmatprep.subr.mxu1 %v3724_v36 }
 0x360   : > { %v1168_v38 = vpop.f32.mrf.mxu0  ;;  %v1239_v48 = vpop.f32.mrf.mxu1 }
 0x361   : > { %v1244_v40 = vadd.f32 %v1168_v38, %v4507_v39  ;;  %v1246_v51 = vadd.f32 %v1239_v48, %v4509_v50  ;;  %v3769_v38 = vld [vmem:[#allocation10 + $0x1b0] sm:$0xff]  ;;  %v3772_v39 = vld [vmem:[#allocation10 + $0x188] sm:$0xff]  ;;  %v3802_v50 = vld [vmem:[#allocation10 + $0x140] sm:$0xff] }
 0x362   : > { %v1170_v41 = vpop.f32.mrf.mxu0  ;;  %v1241_v53 = vpop.f32.mrf.mxu1  ;;  %v3796_v48 = vld [vmem:[#allocation10 + $0x148] sm:$0xff] }
 0x363   : > { %v1248_v42 = vsub.f32 0.0, %v1244_v40  ;;  %v1245_v44 = vadd.f32 %v1170_v41, %v4508_v43  ;;  %v1250_v52 = vsub.f32 0.0, %v1246_v51  ;;  %v1247_v56 = vadd.f32 %v1241_v53, %v4510_v54  ;;  %v3775_v40 = vld [vmem:[#allocation10 + $0x198] sm:$0xff]  ;;  %v3778_v41 = vld [vmem:[#allocation10 + $0x180] sm:$0xff]  ;;  %v3784_v43 = vld [vmem:[#allocation10 + $0x168] sm:$0xff] }
 0x364   : > { %v3805_v51 = vld [vmem:[#allocation10 + $0x150] sm:$0xff]  ;;  %v3811_v53 = vld [vmem:[#allocation10 + $0x138] sm:$0xff]  ;;  %v3814_v54 = vld [vmem:[#allocation10 + $0x120] sm:$0xff] }
 0x365   : > { %v1251_v45 = vmul.f32 1.442695, %v1248_v42  ;;  %v1249_v47 = vsub.f32 0.0, %v1245_v44  ;;  %v1255_v57 = vmul.f32 1.442695, %v1250_v52  ;;  %v3781_v42 = vld [vmem:[#allocation10 + $0x190] sm:$0xff] }
 0x366   : > { %v3787_v44 = vld [vmem:[#allocation10 + $0x178] sm:$0xff]  ;;  %v3808_v52 = vld [vmem:[#allocation10 + $0x128] sm:$0xff] }
 0x367   : > { %2574 = vpow2.f32 %v1251_v45  ;;  %v1253_v49 = vmul.f32 1.442695, %v1249_v47  ;;  %v3790_v45 = vld [vmem:[#allocation10 + $0x160] sm:$0xff]  ;;  %v3793_v47 = vld [vmem:[#allocation10 + $0x170] sm:$0xff] }
 0x369   : > { %2576 = vpow2.f32 %v1253_v49  ;;  %v3799_v49 = vld [vmem:[#allocation10 + $0x158] sm:$0xff] }
 0x36a   : > { %2578 = vtanh.f32 %v1247_v56  ;;  %v3817_v56 = vld [vmem:[#allocation10 + $0x130] sm:$0xff] }
 0x36b   : > { %2580 = vpow2.f32 %v1255_v57  ;;  %v3820_v57 = vld [vmem:[#allocation10 + $0x108] sm:$0xff] }
 0x374   : > { %v2575_v37 = vpop.eup %2574 }
 0x375   : > { %v1257_v59 = vadd.f32 1.0, %v2575_v37  ;;  %v3823_v37 = vld [vmem:[#allocation10 + $0x118] sm:$0xff] }
 0x376   : > { %v2577_v9 = vpop.eup %2576 }
 0x377   : > { %2582 = vrcp.f32 %v1257_v59  ;;  %v1258_v60 = vadd.f32 1.0, %v2577_v9  ;;  %v2579_v5 = vpop.eup %2578  ;;  %v3826_v59 = vld [vmem:[#allocation10 + $0x100] sm:$0xff]  ;;  %v3829_v9 = vld [vmem:[#allocation10 + $0x110] sm:$0xff] }
 0x378   : > { %v2581_v61 = vpop.eup %2580 }
 0x379   : > { %2584 = vrcp.f32 %v1258_v60  ;;  %v1259_v12 = vadd.f32 1.0, %v2581_v61  ;;  %v3832_v60 = vld [vmem:[#allocation10 + $0xe8] sm:$0xff]  ;;  %v3838_v61 = vld [vmem:[#allocation10 + $0xe0] sm:$0xff] }
 0x37b   : > { %2586 = vrcp.f32 %v1259_v12  ;;  %v3853_v12 = vld [vmem:[#allocation10 + $0xd0] sm:$0xff] }
 0x37c   : > { %4511 = vst [vmem:[#allocation24_spill] sm:$0xff] %v3853_v12 }
 0x384   : > { %v2583_v7 = vpop.eup %2582 }
 0x385   : > { %v1268_v6 = vmul.f32 %v2583_v7, %v2579_v5  ;;  %v3835_v5 = vld [vmem:[#allocation10 + $0xf8] sm:$0xff]  ;;  %v3841_v7 = vld [vmem:[#allocation10 + $0xf0] sm:$0xff] }
 0x386   : > { %v2585_v46 = vpop.eup %2584 }
 0x387   : > { %v1267_v28 = vmul.f32 %v2585_v46, %v3649_v2  ;;  %v3850_v46 = vld [vmem:[#allocation10 + $0xc0] sm:$0xff] }
 0x388   : > { %v2587_v4 = vpop.eup %2586 }
 0x389   : > { %v1269_v58 = vadd.f32 %v1268_v6, %v1267_v28  ;;  %v3844_v6 = vld [vmem:[#allocation10 + $0xc8] sm:$0xff] }
 0x38a   : > { %v3856_v28 = vld [vmem:[#allocation10 + $0xa8] sm:$0xff] }
 0x38b   : > { %2588 = vtanh.f32 %v1269_v58  ;;  %v3734_v62 = vsel %vm1278_vm3, %v1269_v58, %v3649_v2  ;;  %v3748_v2 = vld [vmem:[#allocation10 + $0x1c8] sm:$0xff]  ;;  %4512 = vst [vmem:[#allocation20_spill] sm:$0xff] %v3856_v28  ;;  %v3859_v58 = vld [vmem:[#allocation10 + $0xb8] sm:$0xff] }
 0x38c   : > { %4513 = vst [vmem:[#allocation21_spill] sm:$0xff] %v3859_v58 }
 0x398   : > { %v2589_v1 = vpop.eup %2588 }
 0x399   : > { %v1271_v0 = vmul.f32 %v2589_v1, %v2587_v4  ;;  %v3862_v4 = vld [vmem:[#allocation10 + $0xa0] sm:$0xff]  ;;  %v3865_v1 = vld [vmem:[#allocation10 + $0xb0] sm:$0xff] }
 0x39b   : > { %2422 = vst [vmem:[%s3164_s15 + $0x10] sm:$0xff] %v1271_v0  ;;  %v3738_v3 = vsel %vm1278_vm3, %v1271_v0, %v3653_v11  ;;  %v3757_v11 = vld [vmem:[#allocation10 + $0x1d0] sm:$0xff]  ;;  %v3868_v0 = vld [vmem:[#allocation10 + $0x88] sm:$0xff] }
 0x39c   : > { %1351 = vmatmul.mubr.f32.vlgmr.msra.gmra.mxu0 %v3738_v3  ;;  %1422 = vmatmul.mubr.f32.vlgmr.msra.gmra.mxu1 %v3738_v3 }
 0x39d   : > { %1471 = vmatpush1.msra.mxu0 %v3742_v19  ;;  %1542 = vmatpush1.msra.mxu1 %v3745_v63 }
 0x39e   : > { %1472 = vmatprep.subr.mxu0 %v3748_v2  ;;  %1543 = vmatprep.subr.mxu1 %v3751_v55 }
 0x39f   : > { %1473 = vmatpush1.msra.mxu0 %v3754_v10  ;;  %1544 = vmatpush1.msra.mxu1 %v3757_v11 }
 0x3a0   : > { %1474 = vmatprep.subr.mxu0 %v3760_v13  ;;  %1545 = vmatprep.subr.mxu1 %v3763_v14 }
 0x3a1   : > { %1475 = vmatpush1.msra.mxu0 %v3766_v15  ;;  %1546 = vmatpush1.msra.mxu1 %v3769_v38 }
 0x3a2   : > { %1476 = vmatprep.subr.mxu0 %v3772_v39  ;;  %1547 = vmatprep.subr.mxu1 %v3775_v40 }
 0x3a3   : > { %1477 = vmatpush1.msra.mxu0 %v3778_v41  ;;  %1548 = vmatpush1.msra.mxu1 %v3781_v42 }
 0x3a4   : > { %1478 = vmatprep.subr.mxu0 %v3784_v43  ;;  %1549 = vmatprep.subr.mxu1 %v3787_v44 }
 0x3a5   : > { %1479 = vmatpush1.msra.mxu0 %v3790_v45  ;;  %1550 = vmatpush1.msra.mxu1 %v3793_v47 }
 0x3a6   : > { %1480 = vmatprep.subr.mxu0 %v3796_v48  ;;  %1551 = vmatprep.subr.mxu1 %v3799_v49 }
 0x3a7   : > { %1481 = vmatpush1.msra.mxu0 %v3802_v50  ;;  %1552 = vmatpush1.msra.mxu1 %v3805_v51 }
 0x3a8   : > { %1482 = vmatprep.subr.mxu0 %v3808_v52  ;;  %1553 = vmatprep.subr.mxu1 %v3811_v53 }
 0x3a9   : > { %1483 = vmatpush1.msra.mxu0 %v3814_v54  ;;  %1554 = vmatpush1.msra.mxu1 %v3817_v56 }
 0x3aa   : > { %1484 = vmatprep.subr.mxu0 %v3820_v57  ;;  %1555 = vmatprep.subr.mxu1 %v3823_v37 }
 0x3ab   : > { %1485 = vmatpush1.msra.mxu0 %v3826_v59  ;;  %1556 = vmatpush1.msra.mxu1 %v3829_v9 }
 0x3ac   : > { %1486 = vmatprep.subr.mxu0 %v3832_v60  ;;  %1557 = vmatprep.subr.mxu1 %v3835_v5 }
 0x3ad   : > { %1487 = vmatpush1.msra.mxu0 %v3838_v61  ;;  %1558 = vmatpush1.msra.mxu1 %v3841_v7 }
 0x3ae   : > { %1488 = vmatprep.subr.mxu0 %v3844_v6  ;;  %1559 = vmatprep.subr.mxu1 %v3847_v8 }
 0x3af   : > { %1489 = vmatpush1.msra.mxu0 %v3850_v46  ;;  %1560 = vmatpush1.msra.mxu1 %v3853_v12  ;;  %v3871_v12 = vld [vmem:[#allocation10 + $0x98] sm:$0xff] }
 0x3b0   : > { %1490 = vmatprep.subr.mxu0 %v3856_v28  ;;  %1561 = vmatprep.subr.mxu1 %v3859_v58  ;;  %4514 = vst [vmem:[#allocation44_spill] sm:$0xff] %v3871_v12  ;;  %v3874_v28 = vld [vmem:[#allocation10 + $0x80] sm:$0xff]  ;;  %v3877_v58 = vld [vmem:[#allocation10 + $0x90] sm:$0xff] }
 0x3b1   : > { %1491 = vmatpush1.msra.mxu0 %v3862_v4  ;;  %1562 = vmatpush1.msra.mxu1 %v3865_v1  ;;  %4515 = vst [vmem:[#allocation46_spill] sm:$0xff] %v3874_v28  ;;  %4516 = vst [vmem:[#allocation45_spill] sm:$0xff] %v3877_v58 }
 0x3b2   : > { %1492 = vmatprep.subr.mxu0 %v3868_v0  ;;  %1563 = vmatprep.subr.mxu1 %v3871_v12 }
 0x3b3   : > { %1493 = vmatpush1.msra.mxu0 %v3874_v28  ;;  %1564 = vmatpush1.msra.mxu1 %v3877_v58 }
 0x3b4   : > { %1494 = vmatprep.subr.mxu0 %v4488_v16  ;;  %1565 = vmatprep.subr.mxu1 %v4489_v17  ;;  %v4517_v17 = vld [vmem:[#allocation52_spill] sm:$0xff] }
 0x3b5   : > { %1495 = vmatpush1.msra.mxu0 %v4490_v18  ;;  %1566 = vmatpush1.msra.mxu1 %v4491_v20 }
 0x3b6   : > { %1496 = vmatprep.subr.mxu0 %v4492_v21  ;;  %1567 = vmatprep.subr.mxu1 %v4493_v22  ;;  %v4518_v22 = vld [vmem:[#allocation54_spill] sm:$0xff] }
 0x3b7   : > { %1497 = vmatpush1.msra.mxu0 %v4494_v23  ;;  %1568 = vmatpush1.msra.mxu1 %v4495_v24 }
 0x3b8   : > { %1498 = vmatprep.subr.mxu0 %v4496_v25  ;;  %1569 = vmatprep.subr.mxu1 %v4497_v26 }
 0x3b9   : > { %1499 = vmatpush1.msra.mxu0 %v4498_v27  ;;  %1570 = vmatpush1.msra.mxu1 %v4499_v29  ;;  %v4519_v29 = vld [vmem:[#allocation53_spill] sm:$0xff] }
 0x3ba   : > { %1500 = vmatprep.subr.mxu0 %v4500_v30  ;;  %1571 = vmatprep.subr.mxu1 %v4501_v31 }
 0x3bb   : > { %1501 = vmatpush1.msra.mxu0 %v4502_v32  ;;  %1534 = vmatprep.mubr.f32.mxu0 %v4503_v33 }
 0x3bc   : > { %1572 = vmatpush1.msra.mxu1 %v4504_v34  ;;  %1605 = vmatprep.mubr.f32.mxu1 %v4503_v33  ;;  %v4520_v34 = vld [vmem:[#allocation55_spill] sm:$0xff] }
 0x3bd   : > { %1654 = vmatprep.subr.mxu0 %v3721_v35  ;;  %1725 = vmatprep.subr.mxu1 %v3724_v36 }
 0x45c   : > { %v1352_v16 = vpop.f32.mrf.mxu0  ;;  %v1423_v26 = vpop.f32.mrf.mxu1 }
 0x45d   : > { %v1428_v18 = vadd.f32 %v1352_v16, %v4517_v17  ;;  %v1430_v30 = vadd.f32 %v1423_v26, %v4519_v29 }
 0x45e   : > { %v1354_v20 = vpop.f32.mrf.mxu0  ;;  %v1425_v32 = vpop.f32.mrf.mxu1 }
 0x45f   : > { %v1432_v21 = vsub.f32 0.0, %v1428_v18  ;;  %v1429_v23 = vadd.f32 %v1354_v20, %v4518_v22  ;;  %v1434_v31 = vsub.f32 0.0, %v1430_v30  ;;  %v1431_v36 = vadd.f32 %v1425_v32, %v4520_v34  ;;  %v4523_v32 = vld [vmem:[#allocation21_spill] sm:$0xff]  ;;  %v3961_v34 = vld [vmem:[#allocation10 + $0x68] sm:$0xff] }
 0x460   : > { %4524 = vst [vmem:[#allocation47_spill] sm:$0xff] %v3961_v34 }
 0x461   : > { %v1435_v24 = vmul.f32 1.442695, %v1432_v21  ;;  %v1433_v25 = vsub.f32 0.0, %v1429_v23  ;;  %v1439_v35 = vmul.f32 1.442695, %v1434_v31 }
 0x463   : > { %2590 = vpow2.f32 %v1435_v24  ;;  %v1437_v27 = vmul.f32 1.442695, %v1433_v25  ;;  %v1461_v24 = vstv %s1460_s17 }
 0x464   : > { %vm1462_vm4 = vcmp.eq.s32.totalorder %v1461_v24, 1  ;;  %v3985_v24 = vld [vmem:[#allocation10 + $0x28] sm:$0xff] }
 0x465   : > { %2592 = vpow2.f32 %v1437_v27  ;;  %4532 = vst [vmem:[#allocation32_spill] sm:$0xff] %v3985_v24 }
 0x466   : > { %2594 = vtanh.f32 %v1431_v36 }
 0x467   : > { %2596 = vpow2.f32 %v1439_v35 }
 0x470   : > { %v2591_v33 = vpop.eup %2590 }
 0x471   : > { %v1441_v16 = vadd.f32 1.0, %v2591_v33 }
 0x472   : > { %v2593_v17 = vpop.eup %2592 }
 0x473   : > { %2598 = vrcp.f32 %v1441_v16  ;;  %v1442_v18 = vadd.f32 1.0, %v2593_v17  ;;  %v2595_v20 = vpop.eup %2594  ;;  %v3964_v16 = vld [vmem:[#allocation10 + $0x78] sm:$0xff]  ;;  %v3967_v17 = vld [vmem:[#allocation10 + $0x60] sm:$0xff] }
 0x474   : > { %v2597_v21 = vpop.eup %2596  ;;  %4525 = vst [vmem:[#allocation25_spill] sm:$0xff] %v3964_v16  ;;  %4526 = vst [vmem:[#allocation26_spill] sm:$0xff] %v3967_v17 }
 0x475   : > { %2600 = vrcp.f32 %v1442_v18  ;;  %v1443_v26 = vadd.f32 1.0, %v2597_v21  ;;  %v3970_v18 = vld [vmem:[#allocation10 + $0x70] sm:$0xff]  ;;  %v3976_v21 = vld [vmem:[#allocation10 + $0x58] sm:$0xff] }
 0x476   : > { %4527 = vst [vmem:[#allocation27_spill] sm:$0xff] %v3970_v18  ;;  %4529 = vst [vmem:[#allocation29_spill] sm:$0xff] %v3976_v21 }
 0x477   : > { %2602 = vrcp.f32 %v1443_v26  ;;  %v3991_v26 = vld [vmem:[#allocation10 + $0x20] sm:$0xff] }
 0x478   : > { %4534 = vst [vmem:[#allocation34_spill] sm:$0xff] %v3991_v26 }
 0x480   : > { %v2599_v22 = vpop.eup %2598 }
 0x481   : > { %v1452_v23 = vmul.f32 %v2599_v22, %v2595_v20  ;;  %v3973_v20 = vld [vmem:[#allocation10 + $0x48] sm:$0xff]  ;;  %v3979_v22 = vld [vmem:[#allocation10 + $0x40] sm:$0xff] }
 0x482   : > { %v2601_v25 = vpop.eup %2600  ;;  %4528 = vst [vmem:[#allocation28_spill] sm:$0xff] %v3973_v20  ;;  %4530 = vst [vmem:[#allocation30_spill] sm:$0xff] %v3979_v22 }
 0x483   : > { %v1451_v27 = vmul.f32 %v2601_v25, %v3734_v62  ;;  %v3988_v25 = vld [vmem:[#allocation10 + $0x38] sm:$0xff] }
 0x484   : > { %v2603_v36 = vpop.eup %2602  ;;  %4533 = vst [vmem:[#allocation33_spill] sm:$0xff] %v3988_v25 }
 0x485   : > { %v1453_v33 = vadd.f32 %v1452_v23, %v1451_v27  ;;  %v3982_v23 = vld [vmem:[#allocation10 + $0x50] sm:$0xff] }
 0x486   : > { %4531 = vst [vmem:[#allocation31_spill] sm:$0xff] %v3982_v23  ;;  %v3994_v27 = vld [vmem:[#allocation10 + $0x30] sm:$0xff] }
 0x487   : > { %2604 = vtanh.f32 %v1453_v33  ;;  %v3907_v35 = vsel %vm1462_vm4, %v1453_v33, %v3734_v62  ;;  %v4521_v62 = vld [vmem:[#allocation24_spill] sm:$0xff]  ;;  %4535 = vst [vmem:[#allocation35_spill] sm:$0xff] %v3994_v27  ;;  %v3997_v33 = vld [vmem:[#allocation10 + $0x8] sm:$0xff] }
 0x488   : > { %4536 = vst [vmem:[#allocation36_spill] sm:$0xff] %v3997_v33 }
 0x494   : > { %v2605_v29 = vpop.eup %2604 }
 0x495   : > { %v1455_v30 = vmul.f32 %v2605_v29, %v2603_v36  ;;  %v4000_v36 = vld [vmem:[#allocation10 + $0x18] sm:$0xff]  ;;  %v4003_v29 = vld [vmem:[#allocation10] sm:$0xff] }
 0x496   : > { %4537 = vst [vmem:[#allocation37_spill] sm:$0xff] %v4000_v36  ;;  %4538 = vst [vmem:[#allocation38_spill] sm:$0xff] %v4003_v29 }
 0x497   : > { %2423 = vst [vmem:[%s3164_s15 + $0x18] sm:$0xff] %v1455_v30  ;;  %v3911_v31 = vsel %vm1462_vm4, %v1455_v30, %v3738_v3  ;;  %v4522_v3 = vld [vmem:[#allocation20_spill] sm:$0xff]  ;;  %v4539_v30 = vmov 0.0  }
 0x498   : > { %1535 = vmatmul.mubr.f32.vlgmr.msra.gmra.mxu0 %v3911_v31  ;;  %1606 = vmatmul.mubr.f32.vlgmr.msra.gmra.mxu1 %v3911_v31 }
 0x499   : > { %1655 = vmatpush1.msra.mxu0 %v3742_v19  ;;  %1726 = vmatpush1.msra.mxu1 %v3745_v63 }
 0x49a   : > { %1656 = vmatprep.subr.mxu0 %v3748_v2  ;;  %1727 = vmatprep.subr.mxu1 %v3751_v55 }
 0x49b   : > { %1657 = vmatpush1.msra.mxu0 %v3754_v10  ;;  %1728 = vmatpush1.msra.mxu1 %v3757_v11 }
 0x49c   : > { %1658 = vmatprep.subr.mxu0 %v3760_v13  ;;  %1729 = vmatprep.subr.mxu1 %v3763_v14 }
 0x49d   : > { %1659 = vmatpush1.msra.mxu0 %v3766_v15  ;;  %1730 = vmatpush1.msra.mxu1 %v3769_v38 }
 0x49e   : > { %1660 = vmatprep.subr.mxu0 %v3772_v39  ;;  %1731 = vmatprep.subr.mxu1 %v3775_v40 }
 0x49f   : > { %1661 = vmatpush1.msra.mxu0 %v3778_v41  ;;  %1732 = vmatpush1.msra.mxu1 %v3781_v42 }
 0x4a0   : > { %1662 = vmatprep.subr.mxu0 %v3784_v43  ;;  %1733 = vmatprep.subr.mxu1 %v3787_v44 }
 0x4a1   : > { %1663 = vmatpush1.msra.mxu0 %v3790_v45  ;;  %1734 = vmatpush1.msra.mxu1 %v3793_v47 }
 0x4a2   : > { %1664 = vmatprep.subr.mxu0 %v3796_v48  ;;  %1735 = vmatprep.subr.mxu1 %v3799_v49 }
 0x4a3   : > { %1665 = vmatpush1.msra.mxu0 %v3802_v50  ;;  %1736 = vmatpush1.msra.mxu1 %v3805_v51 }
 0x4a4   : > { %1666 = vmatprep.subr.mxu0 %v3808_v52  ;;  %1737 = vmatprep.subr.mxu1 %v3811_v53 }
 0x4a5   : > { %1667 = vmatpush1.msra.mxu0 %v3814_v54  ;;  %1738 = vmatpush1.msra.mxu1 %v3817_v56 }
 0x4a6   : > { %1668 = vmatprep.subr.mxu0 %v3820_v57  ;;  %1739 = vmatprep.subr.mxu1 %v3823_v37 }
 0x4a7   : > { %1669 = vmatpush1.msra.mxu0 %v3826_v59  ;;  %1740 = vmatpush1.msra.mxu1 %v3829_v9 }
 0x4a8   : > { %1670 = vmatprep.subr.mxu0 %v3832_v60  ;;  %1741 = vmatprep.subr.mxu1 %v3835_v5 }
 0x4a9   : > { %1671 = vmatpush1.msra.mxu0 %v3838_v61  ;;  %1742 = vmatpush1.msra.mxu1 %v3841_v7 }
 0x4aa   : > { %1672 = vmatprep.subr.mxu0 %v3844_v6  ;;  %1743 = vmatprep.subr.mxu1 %v3847_v8 }
 0x4ab   : > { %1673 = vmatpush1.msra.mxu0 %v3850_v46  ;;  %1744 = vmatpush1.msra.mxu1 %v4521_v62 }
 0x4ac   : > { %1674 = vmatprep.subr.mxu0 %v4522_v3  ;;  %1745 = vmatprep.subr.mxu1 %v4523_v32 }
 0x4ad   : > { %1675 = vmatpush1.msra.mxu0 %v3862_v4  ;;  %1746 = vmatpush1.msra.mxu1 %v3865_v1 }
 0x4ae   : > { %1676 = vmatprep.subr.mxu0 %v3868_v0  ;;  %1747 = vmatprep.subr.mxu1 %v3871_v12 }
 0x4af   : > { %1677 = vmatpush1.msra.mxu0 %v3874_v28  ;;  %1748 = vmatpush1.msra.mxu1 %v3877_v58  ;;  %v4546_v58 = vld [vmem:[#allocation59_spill] sm:$0xff] }
 0x4b0   : > { %1678 = vmatprep.subr.mxu0 %v3961_v34  ;;  %1749 = vmatprep.subr.mxu1 %v3964_v16 }
 0x4b1   : > { %1679 = vmatpush1.msra.mxu0 %v3967_v17  ;;  %1750 = vmatpush1.msra.mxu1 %v3970_v18 }
 0x4b2   : > { %1680 = vmatprep.subr.mxu0 %v3973_v20  ;;  %1751 = vmatprep.subr.mxu1 %v3976_v21  ;;  %v4544_v21 = vld [vmem:[#allocation58_spill] sm:$0xff] }
 0x4b3   : > { %1681 = vmatpush1.msra.mxu0 %v3979_v22  ;;  %1752 = vmatpush1.msra.mxu1 %v3982_v23 }
 0x4b4   : > { %1682 = vmatprep.subr.mxu0 %v3985_v24  ;;  %1753 = vmatprep.subr.mxu1 %v3988_v25  ;;  %v4007_v25 = vld [vmem:[#allocation10 + $0x10] sm:$0xff] }
 0x4b5   : > { %1683 = vmatpush1.msra.mxu0 %v3991_v26  ;;  %1754 = vmatpush1.msra.mxu1 %v3994_v27  ;;  %4540 = vst [vmem:[#allocation39_spill] sm:$0xff] %v4007_v25  ;;  %v4541_v27 = vld [vmem:[#allocation22_spill] sm:$0xff]  ;;  %v4542_v26 = vld [vmem:[#allocation23_spill] sm:$0xff]  ;;  %v4543_v24 = vld [vmem:[#allocation56_spill] sm:$0xff] }
 0x4b6   : > { %1684 = vmatprep.subr.mxu0 %v3997_v33  ;;  %1755 = vmatprep.subr.mxu1 %v4000_v36 }
 0x4b7   : > { %1685 = vmatpush1.msra.mxu0 %v4003_v29  ;;  %1718 = vmatprep.mubr.f32.mxu0 %v4539_v30 }
 0x4b8   : > { %1756 = vmatpush1.msra.mxu1 %v4007_v25  ;;  %1789 = vmatprep.mubr.f32.mxu1 %v4539_v30  ;;  %v4545_v25 = vld [vmem:[#allocation57_spill] sm:$0xff] }
 0x4b9   : > { %1838 = vmatprep.subr.mxu0 %v4541_v27  ;;  %1909 = vmatprep.subr.mxu1 %v4542_v26 }
 0x558   : > { %v1536_v33 = vpop.f32.mrf.mxu0  ;;  %v1607_v17 = vpop.f32.mrf.mxu1 }
 0x559   : > { %v1612_v23 = vadd.f32 %v1536_v33, %v4543_v24  ;;  %v1614_v30 = vadd.f32 %v1607_v17, %v4545_v25 }
 0x55a   : > { %v1538_v36 = vpop.f32.mrf.mxu0  ;;  %v1609_v27 = vpop.f32.mrf.mxu1 }
 0x55b   : > { %v1616_v22 = vsub.f32 0.0, %v1612_v23  ;;  %v1613_v20 = vadd.f32 %v1538_v36, %v4544_v21  ;;  %v1618_v34 = vsub.f32 0.0, %v1614_v30  ;;  %v1615_v26 = vadd.f32 %v1609_v27, %v4546_v58  ;;  %v4550_v30 = vld [vmem:[#allocation47_spill] sm:$0xff] }
 0x55d   : > { %v1619_v29 = vmul.f32 1.442695, %v1616_v22  ;;  %v1617_v18 = vsub.f32 0.0, %v1613_v20  ;;  %v1623_v28 = vmul.f32 1.442695, %v1618_v34  ;;  %v1645_v22 = vstv %s1644_s28 }
 0x55e   : > { %vm1646_vm5 = vcmp.eq.s32.totalorder %v1645_v22, 1  ;;  %v4558_v22 = vld [vmem:[#allocation32_spill] sm:$0xff] }
 0x55f   : > { %2606 = vpow2.f32 %v1619_v29  ;;  %v1621_v16 = vmul.f32 1.442695, %v1617_v18  ;;  %v4549_v29 = vld [vmem:[#allocation45_spill] sm:$0xff] }
 0x561   : > { %2608 = vpow2.f32 %v1621_v16 }
 0x562   : > { %2610 = vtanh.f32 %v1615_v26 }
 0x563   : > { %2612 = vpow2.f32 %v1623_v28 }
 0x56c   : > { %v2607_v12 = vpop.eup %2606 }
 0x56d   : > { %v1625_v24 = vadd.f32 1.0, %v2607_v12 }
 0x56e   : > { %v2609_v23 = vpop.eup %2608 }
 0x56f   : > { %2614 = vrcp.f32 %v1625_v24  ;;  %v1626_v21 = vadd.f32 1.0, %v2609_v23  ;;  %v2611_v18 = vpop.eup %2610  ;;  %v4551_v24 = vld [vmem:[#allocation25_spill] sm:$0xff]  ;;  %v4552_v23 = vld [vmem:[#allocation26_spill] sm:$0xff] }
 0x570   : > { %v2613_v16 = vpop.eup %2612 }
 0x571   : > { %2616 = vrcp.f32 %v1626_v21  ;;  %v1627_v58 = vadd.f32 1.0, %v2613_v16  ;;  %v4553_v21 = vld [vmem:[#allocation27_spill] sm:$0xff]  ;;  %v4555_v16 = vld [vmem:[#allocation29_spill] sm:$0xff] }
 0x573   : > { %2618 = vrcp.f32 %v1627_v58  ;;  %v4560_v58 = vld [vmem:[#allocation34_spill] sm:$0xff] }
 0x57c   : > { %v2615_v17 = vpop.eup %2614 }
 0x57d   : > { %v1636_v20 = vmul.f32 %v2615_v17, %v2611_v18  ;;  %v4554_v18 = vld [vmem:[#allocation28_spill] sm:$0xff]  ;;  %v4556_v17 = vld [vmem:[#allocation30_spill] sm:$0xff] }
 0x57e   : > { %v2617_v25 = vpop.eup %2616 }
 0x57f   : > { %v1635_v34 = vmul.f32 %v2617_v25, %v3907_v35  ;;  %v4559_v25 = vld [vmem:[#allocation33_spill] sm:$0xff] }
 0x580   : > { %v2619_v26 = vpop.eup %2618 }
 0x581   : > { %v1637_v12 = vadd.f32 %v1636_v20, %v1635_v34  ;;  %v4557_v20 = vld [vmem:[#allocation31_spill] sm:$0xff] }
 0x582   : > { %v4561_v34 = vld [vmem:[#allocation35_spill] sm:$0xff] }
 0x583   : > { %2620 = vtanh.f32 %v1637_v12  ;;  %v4020_v28 = vsel %vm1646_vm5, %v1637_v12, %v3907_v35  ;;  %v4547_v35 = vld [vmem:[#allocation44_spill] sm:$0xff] }
 0x584   : > { %v4562_v12 = vld [vmem:[#allocation36_spill] sm:$0xff] }
 0x590   : > { %v2621_v27 = vpop.eup %2620 }
 0x591   : > { %v1639_v33 = vmul.f32 %v2621_v27, %v2619_v26  ;;  %v4563_v26 = vld [vmem:[#allocation37_spill] sm:$0xff]  ;;  %v4564_v27 = vld [vmem:[#allocation38_spill] sm:$0xff] }
 0x593   : > { %2424 = vst [vmem:[%s3164_s15 + $0x20] sm:$0xff] %v1639_v33  ;;  %v4024_v36 = vsel %vm1646_vm5, %v1639_v33, %v3911_v31  ;;  %v4548_v31 = vld [vmem:[#allocation46_spill] sm:$0xff]  ;;  %v4565_v33 = vmov 0.0  }
 0x594   : > { %1719 = vmatmul.mubr.f32.vlgmr.msra.gmra.mxu0 %v4024_v36  ;;  %1790 = vmatmul.mubr.f32.vlgmr.msra.gmra.mxu1 %v4024_v36 }
 0x595   : > { %1839 = vmatpush1.msra.mxu0 %v3742_v19  ;;  %1910 = vmatpush1.msra.mxu1 %v3745_v63 }
 0x596   : > { %1840 = vmatprep.subr.mxu0 %v3748_v2  ;;  %1911 = vmatprep.subr.mxu1 %v3751_v55 }
 0x597   : > { %1841 = vmatpush1.msra.mxu0 %v3754_v10  ;;  %1912 = vmatpush1.msra.mxu1 %v3757_v11 }
 0x598   : > { %1842 = vmatprep.subr.mxu0 %v3760_v13  ;;  %1913 = vmatprep.subr.mxu1 %v3763_v14 }
 0x599   : > { %1843 = vmatpush1.msra.mxu0 %v3766_v15  ;;  %1914 = vmatpush1.msra.mxu1 %v3769_v38 }
 0x59a   : > { %1844 = vmatprep.subr.mxu0 %v3772_v39  ;;  %1915 = vmatprep.subr.mxu1 %v3775_v40 }
 0x59b   : > { %1845 = vmatpush1.msra.mxu0 %v3778_v41  ;;  %1916 = vmatpush1.msra.mxu1 %v3781_v42 }
 0x59c   : > { %1846 = vmatprep.subr.mxu0 %v3784_v43  ;;  %1917 = vmatprep.subr.mxu1 %v3787_v44 }
 0x59d   : > { %1847 = vmatpush1.msra.mxu0 %v3790_v45  ;;  %1918 = vmatpush1.msra.mxu1 %v3793_v47 }
 0x59e   : > { %1848 = vmatprep.subr.mxu0 %v3796_v48  ;;  %1919 = vmatprep.subr.mxu1 %v3799_v49 }
 0x59f   : > { %1849 = vmatpush1.msra.mxu0 %v3802_v50  ;;  %1920 = vmatpush1.msra.mxu1 %v3805_v51 }
 0x5a0   : > { %1850 = vmatprep.subr.mxu0 %v3808_v52  ;;  %1921 = vmatprep.subr.mxu1 %v3811_v53 }
 0x5a1   : > { %1851 = vmatpush1.msra.mxu0 %v3814_v54  ;;  %1922 = vmatpush1.msra.mxu1 %v3817_v56 }
 0x5a2   : > { %1852 = vmatprep.subr.mxu0 %v3820_v57  ;;  %1923 = vmatprep.subr.mxu1 %v3823_v37 }
 0x5a3   : > { %1853 = vmatpush1.msra.mxu0 %v3826_v59  ;;  %1924 = vmatpush1.msra.mxu1 %v3829_v9 }
 0x5a4   : > { %1854 = vmatprep.subr.mxu0 %v3832_v60  ;;  %1925 = vmatprep.subr.mxu1 %v3835_v5 }
 0x5a5   : > { %1855 = vmatpush1.msra.mxu0 %v3838_v61  ;;  %1926 = vmatpush1.msra.mxu1 %v3841_v7 }
 0x5a6   : > { %1856 = vmatprep.subr.mxu0 %v3844_v6  ;;  %1927 = vmatprep.subr.mxu1 %v3847_v8 }
 0x5a7   : > { %1857 = vmatpush1.msra.mxu0 %v3850_v46  ;;  %1928 = vmatpush1.msra.mxu1 %v4521_v62 }
 0x5a8   : > { %1858 = vmatprep.subr.mxu0 %v4522_v3  ;;  %1929 = vmatprep.subr.mxu1 %v4523_v32 }
 0x5a9   : > { %1859 = vmatpush1.msra.mxu0 %v3862_v4  ;;  %1930 = vmatpush1.msra.mxu1 %v3865_v1 }
 0x5aa   : > { %1860 = vmatprep.subr.mxu0 %v3868_v0  ;;  %1931 = vmatprep.subr.mxu1 %v4547_v35 }
 0x5ab   : > { %1861 = vmatpush1.msra.mxu0 %v4548_v31  ;;  %1932 = vmatpush1.msra.mxu1 %v4549_v29  ;;  %v4572_v29 = vld [vmem:[#allocation63_spill] sm:$0xff] }
 0x5ac   : > { %1862 = vmatprep.subr.mxu0 %v4550_v30  ;;  %1933 = vmatprep.subr.mxu1 %v4551_v24 }
 0x5ad   : > { %1863 = vmatpush1.msra.mxu0 %v4552_v23  ;;  %1934 = vmatpush1.msra.mxu1 %v4553_v21 }
 0x5ae   : > { %1864 = vmatprep.subr.mxu0 %v4554_v18  ;;  %1935 = vmatprep.subr.mxu1 %v4555_v16  ;;  %v4566_v16 = vld [vmem:[#allocation39_spill] sm:$0xff] }
 0x5af   : > { %1865 = vmatpush1.msra.mxu0 %v4556_v17  ;;  %1936 = vmatpush1.msra.mxu1 %v4557_v20  ;;  %v4567_v20 = vld [vmem:[#allocation22_spill] sm:$0xff] }
 0x5b0   : > { %1866 = vmatprep.subr.mxu0 %v4558_v22  ;;  %1937 = vmatprep.subr.mxu1 %v4559_v25  ;;  %v4568_v22 = vld [vmem:[#allocation23_spill] sm:$0xff] }
 0x5b1   : > { %1867 = vmatpush1.msra.mxu0 %v4560_v58  ;;  %1938 = vmatpush1.msra.mxu1 %v4561_v34  ;;  %v4569_v58 = vld [vmem:[#allocation60_spill] sm:$0xff] }
 0x5b2   : > { %1868 = vmatprep.subr.mxu0 %v4562_v12  ;;  %1939 = vmatprep.subr.mxu1 %v4563_v26  ;;  %v4570_v12 = vld [vmem:[#allocation62_spill] sm:$0xff] }
 0x5b3   : > { %1869 = vmatpush1.msra.mxu0 %v4564_v27  ;;  %1902 = vmatprep.mubr.f32.mxu0 %v4565_v33 }
 0x5b4   : > { %1940 = vmatpush1.msra.mxu1 %v4566_v16  ;;  %1973 = vmatprep.mubr.f32.mxu1 %v4565_v33  ;;  %v4571_v16 = vld [vmem:[#allocation61_spill] sm:$0xff] }
 0x5b5   : > { %2022 = vmatprep.subr.mxu0 %v4567_v20  ;;  %2093 = vmatprep.subr.mxu1 %v4568_v22 }
 0x654   : > { %v1720_v25 = vpop.f32.mrf.mxu0  ;;  %v1791_v27 = vpop.f32.mrf.mxu1 }
 0x655   : > { %v1796_v17 = vadd.f32 %v1720_v25, %v4569_v58  ;;  %v1798_v33 = vadd.f32 %v1791_v27, %v4571_v16  ;;  %v1829_v58 = vstv %s1828_s8 }
 0x656   : > { %v1722_v34 = vpop.f32.mrf.mxu0  ;;  %v1793_v20 = vpop.f32.mrf.mxu1  ;;  %vm1830_vm6 = vcmp.eq.s32.totalorder %v1829_v58, 1 }
 0x657   : > { %v1800_v18 = vsub.f32 0.0, %v1796_v17  ;;  %v1797_v21 = vadd.f32 %v1722_v34, %v4570_v12  ;;  %v1802_v30 = vsub.f32 0.0, %v1798_v33  ;;  %v1799_v22 = vadd.f32 %v1793_v20, %v4572_v29 }
 0x659   : > { %v1803_v26 = vmul.f32 1.442695, %v1800_v18  ;;  %v1801_v23 = vsub.f32 0.0, %v1797_v21  ;;  %v1807_v31 = vmul.f32 1.442695, %v1802_v30 }
 0x65b   : > { %2622 = vpow2.f32 %v1803_v26  ;;  %v1805_v24 = vmul.f32 1.442695, %v1801_v23 }
 0x65d   : > { %2624 = vpow2.f32 %v1805_v24 }
 0x65e   : > { %2626 = vtanh.f32 %v1799_v22  ;;  %v2013_v22 = vstv %s2012_s19 }
 0x65f   : > { %2628 = vpow2.f32 %v1807_v31  ;;  %vm2014_vm7 = vcmp.eq.s32.totalorder %v2013_v22, 1 }
 0x668   : > { %v2623_v35 = vpop.eup %2622 }
 0x669   : > { %v1809_v25 = vadd.f32 1.0, %v2623_v35 }
 0x66a   : > { %v2625_v17 = vpop.eup %2624 }
 0x66b   : > { %2630 = vrcp.f32 %v1809_v25  ;;  %v1810_v18 = vadd.f32 1.0, %v2625_v17  ;;  %v2627_v23 = vpop.eup %2626 }
 0x66c   : > { %v2629_v24 = vpop.eup %2628 }
 0x66d   : > { %2632 = vrcp.f32 %v1810_v18  ;;  %v1811_v29 = vadd.f32 1.0, %v2629_v24 }
 0x66f   : > { %2634 = vrcp.f32 %v1811_v29 }
 0x678   : > { %v2631_v21 = vpop.eup %2630 }
 0x679   : > { %v1820_v16 = vmul.f32 %v2631_v21, %v2627_v23 }
 0x67a   : > { %v2633_v34 = vpop.eup %2632 }
 0x67b   : > { %v1819_v30 = vmul.f32 %v2633_v34, %v4020_v28 }
 0x67c   : > { %v2635_v12 = vpop.eup %2634 }
 0x67d   : > { %v1821_v35 = vadd.f32 %v1820_v16, %v1819_v30  ;;  %v4597_v30 = vld [vmem:[#allocation68_spill] sm:$0xff] }
 0x67f   : > { %2636 = vtanh.f32 %v1821_v35  ;;  %v4101_v31 = vsel %vm1830_vm6, %v1821_v35, %v4020_v28 }
 0x68c   : > { %v2637_v26 = vpop.eup %2636 }
 0x68d   : > { %v1823_v27 = vmul.f32 %v2637_v26, %v2635_v12 }
 0x68f   : > { %2425 = vst [vmem:[%s3164_s15 + $0x28] sm:$0xff] %v1823_v27  ;;  %v4105_v33 = vsel %vm1830_vm6, %v1823_v27, %v4024_v36  ;;  %v4598_v27 = vld [vmem:[#allocation70_spill] sm:$0xff] }
 0x690   : > { %1903 = vmatmul.mubr.f32.vlgmr.msra.gmra.mxu0 %v4105_v33  ;;  %1974 = vmatmul.mubr.f32.vlgmr.msra.gmra.mxu1 %v4105_v33 }
 0x691   : > { %2023 = vmatpush1.msra.mxu0 %v3742_v19  ;;  %2094 = vmatpush1.msra.mxu1 %v3745_v63  ;;  %v4573_v19 = vld [vmem:[#allocation44_spill] sm:$0xff]  ;;  %v4574_v63 = vld [vmem:[#allocation46_spill] sm:$0xff] }
 0x692   : > { %2024 = vmatprep.subr.mxu0 %v3748_v2  ;;  %2095 = vmatprep.subr.mxu1 %v3751_v55  ;;  %v4575_v2 = vld [vmem:[#allocation45_spill] sm:$0xff]  ;;  %v4576_v55 = vld [vmem:[#allocation47_spill] sm:$0xff] }
 0x693   : > { %2025 = vmatpush1.msra.mxu0 %v3754_v10  ;;  %2096 = vmatpush1.msra.mxu1 %v3757_v11  ;;  %v4577_v10 = vld [vmem:[#allocation25_spill] sm:$0xff]  ;;  %v4578_v11 = vld [vmem:[#allocation26_spill] sm:$0xff] }
 0x694   : > { %2026 = vmatprep.subr.mxu0 %v3760_v13  ;;  %2097 = vmatprep.subr.mxu1 %v3763_v14  ;;  %v4579_v13 = vld [vmem:[#allocation27_spill] sm:$0xff]  ;;  %v4580_v14 = vld [vmem:[#allocation28_spill] sm:$0xff] }
 0x695   : > { %2027 = vmatpush1.msra.mxu0 %v3766_v15  ;;  %2098 = vmatpush1.msra.mxu1 %v3769_v38  ;;  %v4581_v15 = vld [vmem:[#allocation29_spill] sm:$0xff]  ;;  %v4582_v38 = vld [vmem:[#allocation30_spill] sm:$0xff] }
 0x696   : > { %2028 = vmatprep.subr.mxu0 %v3772_v39  ;;  %2099 = vmatprep.subr.mxu1 %v3775_v40  ;;  %v4583_v39 = vld [vmem:[#allocation31_spill] sm:$0xff]  ;;  %v4584_v40 = vld [vmem:[#allocation32_spill] sm:$0xff] }
 0x697   : > { %2029 = vmatpush1.msra.mxu0 %v3778_v41  ;;  %2100 = vmatpush1.msra.mxu1 %v3781_v42  ;;  %v4585_v41 = vld [vmem:[#allocation33_spill] sm:$0xff]  ;;  %v4586_v42 = vld [vmem:[#allocation34_spill] sm:$0xff] }
 0x698   : > { %2030 = vmatprep.subr.mxu0 %v3784_v43  ;;  %2101 = vmatprep.subr.mxu1 %v3787_v44  ;;  %v4587_v43 = vld [vmem:[#allocation35_spill] sm:$0xff]  ;;  %v4588_v44 = vld [vmem:[#allocation36_spill] sm:$0xff] }
 0x699   : > { %2031 = vmatpush1.msra.mxu0 %v3790_v45  ;;  %2102 = vmatpush1.msra.mxu1 %v3793_v47  ;;  %v4589_v45 = vld [vmem:[#allocation37_spill] sm:$0xff]  ;;  %v4590_v47 = vld [vmem:[#allocation38_spill] sm:$0xff] }
 0x69a   : > { %2032 = vmatprep.subr.mxu0 %v3796_v48  ;;  %2103 = vmatprep.subr.mxu1 %v3799_v49  ;;  %v4591_v48 = vmov 0.0   ;;  %v4592_v49 = vld [vmem:[#allocation39_spill] sm:$0xff] }
 0x69b   : > { %2033 = vmatpush1.msra.mxu0 %v3802_v50  ;;  %2104 = vmatpush1.msra.mxu1 %v3805_v51  ;;  %v4593_v51 = vld [vmem:[#allocation64_spill] sm:$0xff] }
 0x69c   : > { %2034 = vmatprep.subr.mxu0 %v3808_v52  ;;  %2105 = vmatprep.subr.mxu1 %v3811_v53 }
 0x69d   : > { %2035 = vmatpush1.msra.mxu0 %v3814_v54  ;;  %2106 = vmatpush1.msra.mxu1 %v3817_v56  ;;  %v4594_v56 = vld [vmem:[#allocation66_spill] sm:$0xff] }
 0x69e   : > { %2036 = vmatprep.subr.mxu0 %v3820_v57  ;;  %2107 = vmatprep.subr.mxu1 %v3823_v37 }
 0x69f   : > { %2037 = vmatpush1.msra.mxu0 %v3826_v59  ;;  %2108 = vmatpush1.msra.mxu1 %v3829_v9 }
 0x6a0   : > { %2038 = vmatprep.subr.mxu0 %v3832_v60  ;;  %2109 = vmatprep.subr.mxu1 %v3835_v5  ;;  %v4595_v5 = vld [vmem:[#allocation65_spill] sm:$0xff] }
 0x6a1   : > { %2039 = vmatpush1.msra.mxu0 %v3838_v61  ;;  %2110 = vmatpush1.msra.mxu1 %v3841_v7 }
 0x6a2   : > { %2040 = vmatprep.subr.mxu0 %v3844_v6  ;;  %2111 = vmatprep.subr.mxu1 %v3847_v8  ;;  %v4596_v8 = vld [vmem:[#allocation67_spill] sm:$0xff] }
 0x6a3   : > { %2041 = vmatpush1.msra.mxu0 %v3850_v46  ;;  %2112 = vmatpush1.msra.mxu1 %v4521_v62 }
 0x6a4   : > { %2042 = vmatprep.subr.mxu0 %v4522_v3  ;;  %2113 = vmatprep.subr.mxu1 %v4523_v32 }
 0x6a5   : > { %2043 = vmatpush1.msra.mxu0 %v3862_v4  ;;  %2114 = vmatpush1.msra.mxu1 %v3865_v1 }
 0x6a6   : > { %2044 = vmatprep.subr.mxu0 %v3868_v0  ;;  %2115 = vmatprep.subr.mxu1 %v4573_v19 }
 0x6a7   : > { %2045 = vmatpush1.msra.mxu0 %v4574_v63  ;;  %2116 = vmatpush1.msra.mxu1 %v4575_v2 }
 0x6a8   : > { %2046 = vmatprep.subr.mxu0 %v4576_v55  ;;  %2117 = vmatprep.subr.mxu1 %v4577_v10  ;;  %v4599_v10 = vld [vmem:[#allocation69_spill] sm:$0xff] }
 0x6a9   : > { %2047 = vmatpush1.msra.mxu0 %v4578_v11  ;;  %2118 = vmatpush1.msra.mxu1 %v4579_v13 }
 0x6aa   : > { %2048 = vmatprep.subr.mxu0 %v4580_v14  ;;  %2119 = vmatprep.subr.mxu1 %v4581_v15  ;;  %v4600_v14 = vld [vmem:[#allocation71_spill] sm:$0xff] }
 0x6ab   : > { %2049 = vmatpush1.msra.mxu0 %v4582_v38  ;;  %2120 = vmatpush1.msra.mxu1 %v4583_v39 }
 0x6ac   : > { %2050 = vmatprep.subr.mxu0 %v4584_v40  ;;  %2121 = vmatprep.subr.mxu1 %v4585_v41 }
 0x6ad   : > { %2051 = vmatpush1.msra.mxu0 %v4586_v42  ;;  %2122 = vmatpush1.msra.mxu1 %v4587_v43 }
 0x6ae   : > { %2052 = vmatprep.subr.mxu0 %v4588_v44  ;;  %2123 = vmatprep.subr.mxu1 %v4589_v45 }
 0x6af   : > { %2053 = vmatpush1.msra.mxu0 %v4590_v47  ;;  %2086 = vmatprep.mubr.f32.mxu0 %v4591_v48 }
 0x6b0   : > { %2124 = vmatpush1.msra.mxu1 %v4592_v49  ;;  %2157 = vmatprep.mubr.f32.mxu1 %v4591_v48  ;;  %v2197_v48 = vstv %s2196_s18 }
 0x6b1   : > { %vm2198_vm8 = vcmp.eq.s32.totalorder %v2197_v48, 1 }
 0x750   : > { %v1904_v50 = vpop.f32.mrf.mxu0  ;;  %v1975_v9 = vpop.f32.mrf.mxu1 }
 0x751   : > { %v1980_v52 = vadd.f32 %v1904_v50, %v4593_v51  ;;  %v1982_v61 = vadd.f32 %v1975_v9, %v4595_v5 }
 0x752   : > { %v1906_v53 = vpop.f32.mrf.mxu0  ;;  %v1977_v6 = vpop.f32.mrf.mxu1 }
 0x753   : > { %v1984_v54 = vsub.f32 0.0, %v1980_v52  ;;  %v1981_v57 = vadd.f32 %v1906_v53, %v4594_v56  ;;  %v1986_v7 = vsub.f32 0.0, %v1982_v61  ;;  %v1983_v46 = vadd.f32 %v1977_v6, %v4596_v8 }
 0x755   : > { %v1987_v37 = vmul.f32 1.442695, %v1984_v54  ;;  %v1985_v59 = vsub.f32 0.0, %v1981_v57  ;;  %v1991_v4 = vmul.f32 1.442695, %v1986_v7 }
 0x757   : > { %2638 = vpow2.f32 %v1987_v37  ;;  %v1989_v60 = vmul.f32 1.442695, %v1985_v59 }
 0x759   : > { %2640 = vpow2.f32 %v1989_v60 }
 0x75a   : > { %2642 = vtanh.f32 %v1983_v46 }
 0x75b   : > { %2644 = vpow2.f32 %v1991_v4 }
 0x764   : > { %v2639_v1 = vpop.eup %2638 }
 0x765   : > { %v1993_v0 = vadd.f32 1.0, %v2639_v1 }
 0x766   : > { %v2641_v62 = vpop.eup %2640 }
 0x767   : > { %2646 = vrcp.f32 %v1993_v0  ;;  %v1994_v3 = vadd.f32 1.0, %v2641_v62  ;;  %v2643_v32 = vpop.eup %2642 }
 0x768   : > { %v2645_v28 = vpop.eup %2644 }
 0x769   : > { %2648 = vrcp.f32 %v1994_v3  ;;  %v1995_v17 = vadd.f32 1.0, %v2645_v28 }
 0x76b   : > { %2650 = vrcp.f32 %v1995_v17 }
 0x774   : > { %v2647_v36 = vpop.eup %2646 }
 0x775   : > { %v2004_v20 = vmul.f32 %v2647_v36, %v2643_v32 }
 0x776   : > { %v2649_v25 = vpop.eup %2648 }
 0x777   : > { %v2003_v18 = vmul.f32 %v2649_v25, %v4101_v31 }
 0x778   : > { %v2651_v21 = vpop.eup %2650 }
 0x779   : > { %v2005_v23 = vadd.f32 %v2004_v20, %v2003_v18 }
 0x77b   : > { %2652 = vtanh.f32 %v2005_v23  ;;  %v2016_v24 = vsel %vm2014_vm7, %v2005_v23, %v4101_v31 }
 0x788   : > { %v2653_v16 = vpop.eup %2652 }
 0x789   : > { %v2007_v58 = vmul.f32 %v2653_v16, %v2651_v21 }
 0x78b   : > { %2426 = vst [vmem:[%s3164_s15 + $0x30] sm:$0xff] %v2007_v58  ;;  %v2015_v34 = vsel %vm2014_vm7, %v2007_v58, %v4105_v33 }
 0x78c   : > { %2087 = vmatmul.mubr.f32.vlgmr.msra.gmra.mxu0 %v2015_v34  ;;  %2158 = vmatmul.mubr.f32.vlgmr.msra.gmra.mxu1 %v2015_v34 }
 0x84c   : > { %v2088_v29 = vpop.f32.mrf.mxu0  ;;  %v2159_v55 = vpop.f32.mrf.mxu1 }
 0x84d   : > { %v2164_v35 = vadd.f32 %v2088_v29, %v4597_v30  ;;  %v2166_v11 = vadd.f32 %v2159_v55, %v4599_v10 }
 0x84e   : > { %v2090_v12 = vpop.f32.mrf.mxu0  ;;  %v2161_v33 = vpop.f32.mrf.mxu1 }
 0x84f   : > { %v2168_v26 = vsub.f32 0.0, %v2164_v35  ;;  %v2165_v19 = vadd.f32 %v2090_v12, %v4598_v27  ;;  %v2170_v13 = vsub.f32 0.0, %v2166_v11  ;;  %v2167_v15 = vadd.f32 %v2161_v33, %v4600_v14 }
 0x851   : > { %v2171_v63 = vmul.f32 1.442695, %v2168_v26  ;;  %v2169_v2 = vsub.f32 0.0, %v2165_v19  ;;  %v2175_v38 = vmul.f32 1.442695, %v2170_v13 }
 0x853   : > { %2654 = vpow2.f32 %v2171_v63  ;;  %v2173_v31 = vmul.f32 1.442695, %v2169_v2 }
 0x855   : > { %2656 = vpow2.f32 %v2173_v31 }
 0x856   : > { %2658 = vtanh.f32 %v2167_v15 }
 0x857   : > { %2660 = vpow2.f32 %v2175_v38 }
 0x860   : > { %v2655_v39 = vpop.eup %2654 }
 0x861   : > { %v2177_v40 = vadd.f32 1.0, %v2655_v39 }
 0x862   : > { %v2657_v41 = vpop.eup %2656 }
 0x863   : > { %2662 = vrcp.f32 %v2177_v40  ;;  %v2178_v42 = vadd.f32 1.0, %v2657_v41  ;;  %v2659_v43 = vpop.eup %2658 }
 0x864   : > { %v2661_v44 = vpop.eup %2660 }
 0x865   : > { %2664 = vrcp.f32 %v2178_v42  ;;  %v2179_v50 = vadd.f32 1.0, %v2661_v44 }
 0x867   : > { %2666 = vrcp.f32 %v2179_v50 }
 0x870   : > { %v2663_v45 = vpop.eup %2662 }
 0x871   : > { %v2188_v47 = vmul.f32 %v2663_v45, %v2659_v43 }
 0x872   : > { %v2665_v49 = vpop.eup %2664 }
 0x873   : > { %v2187_v51 = vmul.f32 %v2665_v49, %v2016_v24 }
 0x874   : > { %v2667_v54 = vpop.eup %2666 }
 0x875   : > { %v2189_v52 = vadd.f32 %v2188_v47, %v2187_v51 }
 0x877   : > { %2668 = vtanh.f32 %v2189_v52  ;;  %v2200_v53 = vsel %vm2198_vm8, %v2189_v52, %v2016_v24 }
 0x878   : > { %2202 = vst [vmem:[#allocation3] sm:$0xff] %v2200_v53 }
 0x884   : > { %v2669_v56 = vpop.eup %2668  ;;  %2206 = sbr.rel (%p2428_p5) target bundleno = 2186 (0x88a), region = 56 }
 0x885   : > { %v2191_v57 = vmul.f32 %v2669_v56, %v2667_v54 }
 0x887   : > { %2427 = vst [vmem:[%s3164_s15 + $0x38] sm:$0xff] %v2191_v57  ;;  %v2199_v37 = vsel %vm2198_vm8, %v2191_v57, %v2015_v34 }
 0x888   : > { %2201 = vst [vmem:[#allocation2] sm:$0xff] %v2199_v37 }
 0x889   : > { %2207 = vst [vmem:[#allocation12] sm:$0xff] %v2199_v37  ;;  %2208 = vst [vmem:[#allocation14] sm:$0xff] %v2200_v53 }
 0x88a PF: > { %s2210_s30 = scalar_lea.sflag [#allocation7], %s3150_s16  ;;  %p4601_p8 = scmp.ne.s32.totalorder %s4394_s12, 0 }
 0x88b   : > { %s2218_s27 = ssub.s32 (%p4601_p8), 12, %s3565_s20 }
 0x88c   : > { %2216 = sbr.rel (!%p4601_p8) target bundleno = 2220 (0x8ac), region = 60  ;;  %p2219_p2 = scmp.lt.s32.totalorder (%p4601_p8), %s2218_s27, 8 }
 0x891   : > { %s4615_s27 = smov (!%p2219_p2, %s2218_s27), 8 }
 0x892   : > { %s4193_s1 = sshll.u32 %s4615_s27, 7 }
 0x893   : > { %s2223_s17 = ssub.s32 1024, %s4193_s1 }
 0x894   : > { %2224 = vsyncadd %s2210_s30, %s2223_s17  ;;  %p2432_p4 = scmp.ne.s32.totalorder %s4193_s1, 0  ;;  %s2443_s29 = sshll.u32 %s2940_s24, 10 }
 0x895   : > { %s4203_s7 = scalar_lea.hbm %s4278_s4, %s2443_s29  ;;  %s2230_s20 = sshll.u32 %s3164_s15, 4  ;;  %s4206_s20 = int_to_ptr.vmem [resolvable:$true] %s2230_s20 }
 0x896   : > { %s2812_s8 = scalar_lea.vmem %s4206_s20, %s4193_s1  ;;  %s2959_s11 = smov [#allocation11]  }
 0x897   : > { %p2813_p0 = scmp.ne.s32.totalorder %s4206_s20, %s2812_s8  ;;  %s2816_s19 = sshll.u32 %s2959_s11, 4  ;;  %s2817_s19 = int_to_ptr.vmem [resolvable:$false] %s2816_s19 }
 0x898   : > { %s2818_s24 = scalar_lea.vmem %s2817_s19, 2048  ;;  %p2819_p13 = scmp.lt.s32.totalorder %s4206_s20, %s2817_s19 }
 0x899   : > { %p2814_p3 = pnand %p2813_p0, %p2432_p4  ;;  %p2820_p1 = scmp.lt.s32.totalorder %s2818_s24, %s2812_s8 }
 0x89b   : > { %p2815_p12 = pneg %p2814_p3  ;;  %p2821_p7 = por %p2820_p1, %p2819_p13 }
 0x89d   : > { %p2822_p10 = pnand %p2821_p7, %p2815_p12 }
 0x89f   : > { %2825 = shalt.err (!%p2822_p10)
}
 0x8a0   : > { %s2826_s15 = scalar_lea.hbm %s4203_s7, %s4193_s1  ;;  %s2830_s27 = scalar_lea.hbm %s4278_s4, 1536 }
 0x8a1   : > { %p2827_p11 = scmp.ne.s32.totalorder %s4203_s7, %s2826_s15  ;;  %p2831_p8 = scmp.lt.s32.totalorder %s4203_s7, %s4278_s4 }
 0x8a2   : > { %p2832_p2 = scmp.lt.s32.totalorder %s2830_s27, %s2826_s15 }
 0x8a3   : > { %p2828_p6 = pnand %p2827_p11, %p2432_p4 }
 0x8a4   : > { %p2833_p0 = por %p2832_p2, %p2831_p8 }
 0x8a5   : > { %p2829_p5 = pneg %p2828_p6 }
 0x8a7   : > { %p2834_p3 = pnand %p2833_p0, %p2829_p5 }
 0x8a9   : > { %2837 = shalt.err (!%p2834_p3)
}
 0x8aa   : > { %s2960_s12 = smov 128   ;;  %s2961_s28 = smov 8  }
 0x8ab   : > { %2236 = dma.vmem_to_hbm [thread:$0]  (%p2432_p4), %s4206_s20, %s4193_s1, %s4203_s7, %s2210_s30, %s2960_s12, %s2960_s12, %s2961_s28  }
 0x8ac PF: > { %s2962_s8 = smov [#allocation12]   ;;  %s2963_s19 = smov [#allocation14]  }
 0x8ad   : > { %s2246_s11 = sshll.u32 %s2962_s8, 4  ;;  %s2259_s24 = sshll.u32 %s2963_s19, 4  ;;  %s2247_s11 = int_to_ptr.vmem [resolvable:$true] %s2246_s11  ;;  %s2260_s24 = int_to_ptr.vmem [resolvable:$true] %s2259_s24 }
 0x8ae   : > { %s2838_s15 = scalar_lea.vmem %s2247_s11, 128  ;;  %p4602_p13 = scmp.ne.s32.totalorder %s4392_s10, 0 }
 0x8af   : > { %p2839_p12 = scmp.ne.s32.totalorder %s2247_s11, %s2838_s15  ;;  %p2845_p10 = scmp.lt.s32.totalorder %s2247_s11, %s2247_s11 }
 0x8b0   : > { %p2846_p11 = scmp.lt.s32.totalorder %s2838_s15, %s2838_s15 }
 0x8b1   : > { %p2840_p1 = pnand %p2839_p12, %p4602_p13 }
 0x8b2   : > { %p2847_p6 = por %p2846_p11, %p2845_p10 }
 0x8b3   : > { %p2841_p7 = pneg %p2840_p1 }
 0x8b5   : > { %p2848_p5 = pnand %p2847_p6, %p2841_p7 }
 0x8b7   : > { %2851 = shalt.err (!%p2848_p5)
}
 0x8b8   : > { %2454 = dma.vmem_to_hbm [thread:$0]  (%p4602_p13), %s2247_s11, 128, %s4279_s5, [#allocation13]  }
 0x8b9   : > { %s2862_s1 = scalar_lea.vmem %s2260_s24, 128  ;;  %p2869_p0 = scmp.lt.s32.totalorder %s2260_s24, %s2260_s24 }
 0x8ba   : > { %p2863_p4 = scmp.ne.s32.totalorder %s2260_s24, %s2862_s1  ;;  %p2870_p3 = scmp.lt.s32.totalorder %s2862_s1, %s2862_s1 }
 0x8bc   : > { %p2864_p8 = pnand %p2863_p4, %p4602_p13  ;;  %p2871_p12 = por %p2870_p3, %p2869_p0 }
 0x8be   : > { %p2865_p2 = pneg %p2864_p8 }
 0x8c0   : > { %p2872_p1 = pnand %p2871_p12, %p2865_p2 }
 0x8c2   : > { %2875 = shalt.err (!%p2872_p1)
}
 0x8c3   : > { %2456 = dma.vmem_to_hbm [thread:$0]  (%p4602_p13), %s2260_s24, 128, %s4280_s6, [#allocation13]  }
 0x8c4   : > { %2919 = dma.done.wait (%p4602_p13), [#allocation13], 256  }
 0x8c5   : > { %2921 = vsyncadd (%p4602_p13), [#allocation13], 4294967040 }
 0x8c6 PF: > { %s2279_s9 = sand.u32 1, %s2928_s21   ;;  %p4603_p7 = scmp.ne.s32.totalorder %s4395_s14, 0 }
 0x8c7   : > { %s2280_s18 = scalar_lea.sflag [#allocation7], %s2279_s9 }
 0x8c8   : > { %p2470_p10 = pnand %p2390_p9, %p4603_p7 }
 0x8ca   : > { %p2471_p11 = pneg %p2470_p10 }
 0x8cc   : > { %2923 = dma.done.wait (%p2471_p11), %s2280_s18, 1024  }
 0x8cd   : > { %2925 = vsyncadd (%p2471_p11), %s2280_s18, 4294966272  ;;  %s25_s26 = sadd.s32 1, %s2948_s26   ;;  %s4604_s10 = sld [smem:[#allocation19_spill]] }
 0x8ce   : > { %p22_p6 = scmp.ge.s32.totalorder %s25_s26, 4   ;;  %s4605_s21 = smov %s2932_s22 }
 0x8cf   : > { %s4606_s22 = smov %s2936_s23  ;;  %s4607_s23 = smov %s3067_s13 }
 0x8d0   : > { %s4608_s24 = smov %s2944_s25  ;;  %24 = sbr.rel (!%p22_p6) target bundleno = 10 (0xa), region = 129 }
 0x8d3   : > { %s4609_s25 = smov %s4604_s10 }
 0x8d5   :  { %2285 = vsyncpa [#allocation6], 1 }
 0x8d6   :  { %2287 = vsyncpa [#allocation6 + $0x1], 1 }
 0x8d7   :  { %2288 = vsyncpa [#allocation9], 1 }
 0x8d8   :  { %2289 = vsyncpa [#allocation7], 1 }
 0x8d9   :  { %2291 = vsyncpa [#allocation7 + $0x1], 1 }
 0x8da   :  { %2292 = vsyncpa [#allocation13], 1 }

// kernel: tpu_custom_call.1
= control target key start
LH: loop header
LB: loop body
LE: loop exit
PB: predicated region body
PF: predicated region fallthrough
CT: control target
= control target key end

     0   :  { %s4274_s0 = inlined_call_operand.hbm [shape: f32[12,8,16], index: 0, kind: input, shape index: {}]   ;;  %s4275_s1 = inlined_call_operand.hbm [shape: f32[16,512], index: 1, kind: input, shape index: {}]   ;;  %s4276_s2 = inlined_call_operand.hbm [shape: f32[128,512], index: 2, kind: input, shape index: {}]   ;;  %s4277_s3 = inlined_call_operand.vmem [shape: f32[1,512], index: 3, kind: input, shape index: {}]   ;;  %s4278_s4 = inlined_call_operand.hbm [shape: f32[12,8,128], index: 4, kind: output, shape index: {0}]   ;;  %s4279_s5 = inlined_call_operand.hbm [shape: f32[1,8,128], index: 5, kind: output, shape index: {1}]   ;;  %s4280_s6 = inlined_call_operand.hbm [shape: f32[1,8,128], index: 6, kind: output, shape index: {2}]  }
   0x1   :  { %4388 = sst [smem:[#allocation72_spill]] %s4275_s1 }
   0x2   :  { %12 = vsyncpa [#allocation6], 0 }
   0x3   :  { %14 = vsyncpa [#allocation6 + $0x1], 0 }
   0x4   :  { %15 = vsyncpa [#allocation9], 0 }
   0x5   :  { %16 = vsyncpa [#allocation7], 0 }
   0x6   :  { %18 = vsyncpa [#allocation7 + $0x1], 0 }
   0x7   :  { %19 = vsyncpa [#allocation13], 0  ;;  %s2999_s21 = smov 0   ;;  %s3001_s22 = smov 0  }
   0x8   :  { %s3003_s23 = smov 0   ;;  %s3005_s24 = smov 0  }
   0x9   :  { %s3007_s25 = smov 0   ;;  %s3009_s26 = smov 0  }
   0xa LB: > { %s2385_s27 = sadd.s32 4294967295, %s2948_s26   ;;  %s2386_s28 = sadd.s32 4294967294, %s2948_s26   ;;  %s2948_s26 = sphi %s3009_s26, %s25_s26   ;;  %s2944_s25 = sphi %s3007_s25, %s4609_s25   ;;  %s2940_s24 = sphi %s3005_s24, %s4608_s24   ;;  %s2936_s23 = sphi %s3003_s23, %s4607_s23   ;;  %s2932_s22 = sphi %s3001_s22, %s4606_s22   ;;  %s2928_s21 = sphi %s2999_s21, %s4605_s21  }
   0xb   : > { %s34_s29 = sadd.s32 1, %s2944_s25  ;;  %s46_s30 = sadd.s32 1, %s2936_s23 }
   0xc   : > { %p35_p0 = scmp.ge.s32.totalorder %s34_s29, 2  ;;  %p53_p1 = scmp.ne.s32.totalorder %s2936_s23, %s2932_s22 }
   0xd   : > { %p54_p2 = scmp.eq.s32.totalorder %s2948_s26, 0  ;;  %p59_p3 = scmp.ne.s32.totalorder %s2932_s22, %s2928_s21 }
   0xe   : > { %s4611_s29 = smov (%p35_p0, %s34_s29), 0  ;;  %p3044_p5 = scmp.eq.s32.totalorder %s2385_s27, 0 }
   0xf   : > { %4389 = sst [smem:[#allocation19_spill]] %s4611_s29  ;;  %p3040_p4 = por %p54_p2, %p53_p1 }
  0x10   : > { %s4391_s8 = scalar_select %p3044_p5, 1, 0 }
  0x11   : > { %s41_s9 = ssub.s32 %s2944_s25, %s4611_s29  ;;  %p3050_p6 = scmp.eq.s32.totalorder %s2385_s27, 1 }
  0x12   : > { %p44_p7 = scmp.eq.s32.totalorder %s41_s9, 0  ;;  %p3056_p8 = por %p3044_p5, %p59_p3 }
  0x13   : > { %s4392_s10 = scalar_select %p3050_p6, 1, 0 }
  0x14   : > { %s4393_s11 = scalar_select %p3056_p8, 1, 0 }
  0x15   : > { %p3062_p9 = por %p3050_p6, %p53_p1  ;;  %p154_p10 = scmp.eq.s32.totalorder %s2386_s28, 1 }
  0x16   : > { %s3067_s13 = scalar_select %p44_p7, %s2936_s23, %s46_s30  }
  0x17   : > { %s4394_s12 = scalar_select %p3062_p9, 1, 0 }
  0x18   : > { %p3069_p11 = por %p154_p10, %p59_p3  ;;  %p2387_p12 = scmp.ge.s32.totalorder %s2948_s26, 1 }
  0x19   : > { %p213_p13 = scmp.lt.s32.totalorder %s2948_s26, 3  ;;  %s2950_s16 = smov [#allocation8]  }
  0x1a   : > { %s4395_s14 = scalar_select %p3069_p11, 1, 0 }
  0x1b   : > { %p3075_p0 = pnand %p2387_p12, %p213_p13  ;;  %s225_s17 = sshll.u32 %s2950_s16, 4  ;;  %s226_s17 = int_to_ptr.vmem [resolvable:$true] %s225_s17 }
  0x1c   : > { %s2951_s18 = smov [#allocation10]   ;;  %s2745_s27 = scalar_lea.vmem %s226_s17, 1024 }
  0x1d   : > { %p2462_p1 = pneg %p3075_p0  ;;  %s238_s19 = sshll.u32 %s2951_s18, 4  ;;  %s239_s19 = int_to_ptr.vmem [resolvable:$true] %s238_s19 }
  0x1e   : > { %p2746_p7 = scmp.ne.s32.totalorder %s226_s17, %s2745_s27  ;;  %p2753_p13 = scmp.lt.s32.totalorder %s226_s17, %s226_s17 }
  0x1f   : > { %p3083_p2 = pnand %p2462_p1, %p3044_p5  ;;  %p2754_p11 = scmp.lt.s32.totalorder %s2745_s27, %s2745_s27 }
  0x21   : > { %p2736_p3 = pneg %p3083_p2  ;;  %p2755_p6 = por %p2754_p11, %p2753_p13 }
  0x23   : > { %p2748_p10 = pnand %p2746_p7, %p2736_p3 }
  0x25   : > { %p2749_p12 = pneg %p2748_p10 }
  0x27   : > { %p2756_p9 = pnand %p2755_p6, %p2749_p12 }
  0x29   : > { %2759 = shalt.err (!%p2756_p9)
}
  0x2a   : > { %s2952_s28 = smov 512   ;;  %s2953_s30 = smov 32  }
  0x2b   : > { %s4398_s1 = sld [smem:[#allocation72_spill]]  ;;  %s2771_s18 = scalar_lea.vmem %s239_s19, 8192 }
  0x2c   : > { %p2772_p1 = scmp.ne.s32.totalorder %s239_s19, %s2771_s18  ;;  %p2779_p5 = scmp.lt.s32.totalorder %s239_s19, %s239_s19 }
  0x2d   : > { %p2780_p8 = scmp.lt.s32.totalorder %s2771_s18, %s2771_s18 }
  0x2e   : > { %p2774_p7 = pnand %p2772_p1, %p2736_p3 }
  0x2f   : > { %p2781_p11 = por %p2780_p8, %p2779_p5 }
  0x30   : > { %p2775_p10 = pneg %p2774_p7 }
  0x31   : > { %2465 = dma.hbm_to_vmem [thread:$0]  (!%p3083_p2), %s4398_s1, 1024, %s226_s17, [#allocation9], %s2952_s28, %s2952_s28, %s2953_s30  }
  0x32   : > { %p2782_p6 = pnand %p2781_p11, %p2775_p10 }
  0x34   : > { %2785 = shalt.err (!%p2782_p6)
}
  0x35   : > { %2468 = dma.hbm_to_vmem [thread:$0]  (!%p3083_p2), %s4276_s2, 8192, %s239_s19, [#allocation9], %s2952_s28, %s2952_s28, %s2953_s30  }
  0x36   : > { %p2390_p9 = scmp.ge.s32.totalorder %s2948_s26, 2 }
  0x38   : > { %251 = sbr.rel (%p2390_p9) target bundleno = 93 (0x5d), region = 28 }
  0x3d   : > { %254 = sbr.rel (!%p3040_p4) target bundleno = 93 (0x5d), region = 32  ;;  %s255_s17 = sand.u32 (%p3040_p4), 1, %s2936_s23  }
  0x3e   : > { %s2392_s9 = sshll.u32 (%p3040_p4), %s2944_s25, 3  ;;  %s2391_s16 = sshll.u32 (%p3040_p4), %s255_s17, 6 }
  0x3f   : > { %s261_s18 = ssub.s32 (%p3040_p4), 12, %s2392_s9  ;;  %s3115_s19 = scalar_lea.sflag (%p3040_p4), [#allocation6], %s255_s17 }
  0x40   : > { %p262_p5 = scmp.lt.s32.totalorder (%p3040_p4), %s261_s18, 8  ;;  %s259_s28 = scalar_lea.vmem (%p3040_p4), [#allocation5], %s2391_s16 }
  0x42   : > { %s4613_s18 = smov (!%p262_p5, %s261_s18), 8 }
  0x43   : > { %s3112_s20 = sshll.u32 %s4613_s18, 7 }
  0x44   : > { %s266_s29 = ssub.s32 1024, %s3112_s20 }
  0x45   : > { %267 = vsyncadd %s3115_s19, %s266_s29  ;;  %p2394_p4 = scmp.ne.s32.totalorder %s3112_s20, 0  ;;  %s2442_s7 = sshll.u32 %s2944_s25, 10 }
  0x46   : > { %s3123_s9 = scalar_lea.hbm %s4274_s0, %s2442_s7  ;;  %s273_s18 = sshll.u32 %s259_s28, 4  ;;  %s3125_s18 = int_to_ptr.vmem [resolvable:$true] %s273_s18 }
  0x47   : > { %s2786_s17 = scalar_lea.hbm %s3123_s9, %s3112_s20  ;;  %s2790_s1 = scalar_lea.hbm %s4274_s0, 1536 }
  0x48   : > { %p2787_p8 = scmp.ne.s32.totalorder %s3123_s9, %s2786_s17  ;;  %p2792_p12 = scmp.lt.s32.totalorder %s2790_s1, %s2786_s17 }
  0x4a   : > { %p2788_p2 = pnand %p2787_p8, %p2394_p4 }
  0x4c   : > { %p2789_p3 = pneg %p2788_p2 }
  0x4e   : > { %p2794_p13 = pnand %p2792_p12, %p2789_p3 }
  0x50   : > { %2797 = shalt.err (!%p2794_p13)
}
  0x51   : > { %s2798_s28 = scalar_lea.vmem %s3125_s18, %s3112_s20  ;;  %s2954_s7 = smov [#allocation5]  }
  0x52   : > { %p2799_p1 = scmp.ne.s32.totalorder %s3125_s18, %s2798_s28  ;;  %s2802_s30 = sshll.u32 %s2954_s7, 4  ;;  %s2803_s30 = int_to_ptr.vmem [resolvable:$false] %s2802_s30 }
  0x53   : > { %s2804_s27 = scalar_lea.vmem %s2803_s30, 2048  ;;  %p2805_p11 = scmp.lt.s32.totalorder %s3125_s18, %s2803_s30 }
  0x54   : > { %p2800_p7 = pnand %p2799_p1, %p2394_p4  ;;  %p2806_p6 = scmp.lt.s32.totalorder %s2804_s27, %s2798_s28 }
  0x56   : > { %p2801_p10 = pneg %p2800_p7  ;;  %p2807_p5 = por %p2806_p6, %p2805_p11 }
  0x58   : > { %p2808_p8 = pnand %p2807_p5, %p2801_p10 }
  0x5a   : > { %2811 = shalt.err (!%p2808_p8)
}
  0x5b   : > { %s2955_s1 = smov 128   ;;  %s2956_s17 = smov 8  }
  0x5c   : > { %279 = dma.hbm_to_vmem [thread:$0]  (%p2394_p4), %s3123_s9, %s3112_s20, %s3125_s18, %s3115_s19, %s2955_s1, %s2955_s1, %s2956_s17  }
  0x5d PF: > { %285 = sbr.rel (%p3075_p0) target bundleno = 2246 (0x8c6), region = 36 }
  0x62   : > { %s3150_s16 = sand.u32 1, %s2932_s22   ;;  %p4399_p2 = scmp.ne.s32.totalorder %s4393_s11, 0 }
  0x63   : > { %s2399_s29 = sshll.u32 %s3150_s16, 6  ;;  %s288_s28 = scalar_lea.sflag [#allocation6], %s3150_s16 }
  0x64   : > { %s3154_s7 = scalar_lea.vmem [#allocation5], %s2399_s29 }
  0x65   : > { %2911 = dma.done.wait (%p4399_p2), %s288_s28, 1024  }
  0x66   : > { %2913 = vsyncadd (%p4399_p2), %s288_s28, 4294966272  ;;  %p4400_p4 = scmp.ne.s32.totalorder %s4391_s8, 0 }
  0x68   : > { %2915 = dma.done.wait (%p4400_p4), [#allocation9], 9216  }
  0x69   : > { %2917 = vsyncadd (%p4400_p4), [#allocation9], 4294958080  ;;  %s3164_s15 = scalar_lea.vmem [#allocation11], %s2399_s29  ;;  %p2403_p0 = scmp.ne.s32.totalorder %s2940_s24, 0 }
  0x6b   : > { %341 = sbr.rel (%p2403_p0) target bundleno = 114 (0x72), region = 52 }
  0x70   : > { %v2957_v0 = vmov 0.0  }
  0x71   : > { %342 = vst [vmem:[#allocation2] sm:$0xff] %v2957_v0  ;;  %343 = vst [vmem:[#allocation3] sm:$0xff] %v2957_v0 }
  0x72 PF: > { %v357_v1 = vld [vmem:[#allocation8 + $0x28] sm:$0xff]  ;;  %v359_v2 = vld [vmem:[#allocation8 + $0x38] sm:$0xff]  ;;  %v356_v3 = vld [vmem:[#allocation8 + $0x20] sm:$0xff]  ;;  %vm382_vm0 = vcmask 130048   ;;  %v4287_v10 = vmov 0.0   ;;  %s3565_s20 = sshll.u32 %s2940_s24, 3 }
  0x73   : > { %435 = vmatprep.subr.mxu0 %v357_v1  ;;  %548 = vmatprep.subr.mxu1 %v359_v2  ;;  %v358_v4 = vld [vmem:[#allocation8 + $0x30] sm:$0xff]  ;;  %v353_v5 = vld [vmem:[#allocation8 + $0x8] sm:$0xff]  ;;  %v355_v6 = vld [vmem:[#allocation8 + $0x18] sm:$0xff]  ;;  %p907_p3 = scmp.lt.s32.totalorder %s3565_s20, 12  ;;  %s1090_s9 = sadd.s32 1, %s3565_s20 }
  0x74   : > { %436 = vmatpush1.msra.mxu0 %v356_v3  ;;  %549 = vmatpush1.msra.mxu1 %v358_v4  ;;  %v352_v7 = vld [vmem:[#allocation8] sm:$0xff]  ;;  %v354_v8 = vld [vmem:[#allocation8 + $0x10] sm:$0xff]  ;;  %v3169_v11 = vld [vmem:[#allocation10 + $0x1e8] sm:$0xff]  ;;  %p1091_p12 = scmp.lt.s32.totalorder %s1090_s9, 12  ;;  %s1274_s30 = sadd.s32 2, %s3565_s20 }
  0x75   : > { %437 = vmatprep.subr.mxu0 %v353_v5  ;;  %550 = vmatprep.subr.mxu1 %v355_v6  ;;  %v344_v9 = vld [vmem:[%s3154_s7] sm:$0xff]  ;;  %4401 = vst [vmem:[#allocation20_spill] sm:$0xff] %v3169_v11  ;;  %v3171_v12 = vld [vmem:[#allocation10 + $0x1f8] sm:$0xff]  ;;  %v3176_v14 = vld [vmem:[#allocation10 + $0x1f0] sm:$0xff]  ;;  %s908_s19 = scalar_select %p907_p3, 1, 0 }
  0x76   : > { %438 = vmatpush1.msra.mxu0 %v352_v7  ;;  %471 = vmatprep.mubr.f32.mxu0 %v4287_v10  ;;  %4402 = vst [vmem:[#allocation21_spill] sm:$0xff] %v3171_v12  ;;  %v3174_v13 = vld [vmem:[#allocation10 + $0x1e0] sm:$0xff]  ;;  %v3180_v15 = vld [vmem:[#allocation10 + $0x1c8] sm:$0xff]  ;;  %v3182_v16 = vld [vmem:[#allocation10 + $0x1d8] sm:$0xff]  ;;  %s1092_s18 = scalar_select %p1091_p12, 1, 0 }
  0x77   : > { %551 = vmatpush1.msra.mxu1 %v354_v8  ;;  %584 = vmatprep.mubr.f32.mxu1 %v4287_v10  ;;  %v3188_v17 = vld [vmem:[#allocation10 + $0x1c0] sm:$0xff]  ;;  %v3190_v18 = vld [vmem:[#allocation10 + $0x1d0] sm:$0xff]  ;;  %v345_v19 = vld [vmem:[%s3154_s7 + $0x8] sm:$0xff]  ;;  %p1275_p13 = scmp.lt.s32.totalorder %s1274_s30, 12  ;;  %s1458_s1 = sadd.s32 3, %s3565_s20 }
  0x78   : > { %2404 = vmatmul.mubr.msk.f32.vlgmr.msra.gmra.mxu0 %vm382_vm0, %v344_v9  ;;  %2412 = vmatmul.mubr.msk.f32.vlgmr.msra.gmra.mxu1 %vm382_vm0, %v344_v9  ;;  %v3197_v20 = vld [vmem:[#allocation10 + $0x1a8] sm:$0xff]  ;;  %v3199_v21 = vld [vmem:[#allocation10 + $0x1b8] sm:$0xff]  ;;  %v3203_v22 = vld [vmem:[#allocation10 + $0x1a0] sm:$0xff]  ;;  %p1459_p1 = scmp.lt.s32.totalorder %s1458_s1, 12  ;;  %s1642_s29 = sadd.s32 4, %s3565_s20 }
  0x79   : > { %735 = vmatprep.subr.mxu0 %v3169_v11  ;;  %806 = vmatprep.subr.mxu1 %v3171_v12  ;;  %v3205_v23 = vld [vmem:[#allocation10 + $0x1b0] sm:$0xff]  ;;  %v3209_v24 = vld [vmem:[#allocation10 + $0x188] sm:$0xff]  ;;  %v3211_v25 = vld [vmem:[#allocation10 + $0x198] sm:$0xff]  ;;  %s1276_s27 = scalar_select %p1275_p13, 1, 0 }
  0x7a   : > { %736 = vmatpush1.msra.mxu0 %v3174_v13  ;;  %807 = vmatpush1.msra.mxu1 %v3176_v14  ;;  %v3217_v26 = vld [vmem:[#allocation10 + $0x180] sm:$0xff]  ;;  %v3219_v27 = vld [vmem:[#allocation10 + $0x190] sm:$0xff]  ;;  %v3226_v29 = vld [vmem:[#allocation10 + $0x168] sm:$0xff]  ;;  %s1460_s17 = scalar_select %p1459_p1, 1, 0 }
  0x7b   : > { %737 = vmatprep.subr.mxu0 %v3180_v15  ;;  %808 = vmatprep.subr.mxu1 %v3182_v16  ;;  %v346_v28 = vld [vmem:[%s3154_s7 + $0x10] sm:$0xff]  ;;  %v3228_v30 = vld [vmem:[#allocation10 + $0x178] sm:$0xff]  ;;  %v3232_v31 = vld [vmem:[#allocation10 + $0x160] sm:$0xff]  ;;  %p1643_p7 = scmp.lt.s32.totalorder %s1642_s29, 12  ;;  %s2010_s11 = sadd.s32 6, %s3565_s20 }
  0x7c   : > { %477 = vmatprep.mubr.f32.mxu0 %v4287_v10  ;;  %590 = vmatprep.mubr.f32.mxu1 %v4287_v10  ;;  %v3234_v32 = vld [vmem:[#allocation10 + $0x170] sm:$0xff]  ;;  %v3238_v33 = vld [vmem:[#allocation10 + $0x148] sm:$0xff]  ;;  %v3240_v34 = vld [vmem:[#allocation10 + $0x158] sm:$0xff]  ;;  %p2011_p11 = scmp.lt.s32.totalorder %s2010_s11, 12  ;;  %s2194_s9 = sadd.s32 7, %s3565_s20 }
  0x7d   : > { %738 = vmatpush1.msra.mxu0 %v3188_v17  ;;  %809 = vmatpush1.msra.mxu1 %v3190_v18  ;;  %v3246_v35 = vld [vmem:[#allocation10 + $0x140] sm:$0xff]  ;;  %v3248_v36 = vld [vmem:[#allocation10 + $0x150] sm:$0xff]  ;;  %v347_v37 = vld [vmem:[%s3154_s7 + $0x18] sm:$0xff]  ;;  %s1644_s28 = scalar_select %p1643_p7, 1, 0 }
  0x7e   : > { %2405 = vmatmul.mubr.msk.f32.gmra.mxu0 %vm382_vm0, %v345_v19  ;;  %2413 = vmatmul.mubr.msk.f32.gmra.mxu1 %vm382_vm0, %v345_v19  ;;  %v3255_v38 = vld [vmem:[#allocation10 + $0x128] sm:$0xff]  ;;  %v3257_v39 = vld [vmem:[#allocation10 + $0x138] sm:$0xff]  ;;  %v3261_v40 = vld [vmem:[#allocation10 + $0x120] sm:$0xff]  ;;  %p2195_p6 = scmp.lt.s32.totalorder %s2194_s9, 12  ;;  %p2428_p5 = scmp.ne.s32.totalorder %s2940_s24, 1 }
  0x7f   : > { %739 = vmatprep.subr.mxu0 %v3197_v20  ;;  %810 = vmatprep.subr.mxu1 %v3199_v21  ;;  %v3263_v41 = vld [vmem:[#allocation10 + $0x130] sm:$0xff]  ;;  %v3267_v42 = vld [vmem:[#allocation10 + $0x108] sm:$0xff]  ;;  %v3269_v43 = vld [vmem:[#allocation10 + $0x118] sm:$0xff] }
  0x80   : > { %740 = vmatpush1.msra.mxu0 %v3203_v22  ;;  %811 = vmatpush1.msra.mxu1 %v3205_v23  ;;  %v3275_v44 = vld [vmem:[#allocation10 + $0x100] sm:$0xff]  ;;  %v3277_v45 = vld [vmem:[#allocation10 + $0x110] sm:$0xff]  ;;  %v3284_v47 = vld [vmem:[#allocation10 + $0xe8] sm:$0xff] }
  0x81   : > { %741 = vmatprep.subr.mxu0 %v3209_v24  ;;  %812 = vmatprep.subr.mxu1 %v3211_v25  ;;  %v348_v46 = vld [vmem:[%s3154_s7 + $0x20] sm:$0xff]  ;;  %v3286_v48 = vld [vmem:[#allocation10 + $0xf8] sm:$0xff]  ;;  %v3292_v50 = vld [vmem:[#allocation10 + $0xf0] sm:$0xff] }
  0x82   : > { %483 = vmatprep.mubr.f32.mxu0 %v4287_v10  ;;  %596 = vmatprep.mubr.f32.mxu1 %v4287_v10  ;;  %v3290_v49 = vld [vmem:[#allocation10 + $0xe0] sm:$0xff]  ;;  %v3296_v51 = vld [vmem:[#allocation10 + $0xc8] sm:$0xff]  ;;  %v3298_v52 = vld [vmem:[#allocation10 + $0xd8] sm:$0xff] }
  0x83   : > { %742 = vmatpush1.msra.mxu0 %v3217_v26  ;;  %813 = vmatpush1.msra.mxu1 %v3219_v27  ;;  %v3304_v53 = vld [vmem:[#allocation10 + $0xc0] sm:$0xff]  ;;  %v3306_v54 = vld [vmem:[#allocation10 + $0xd0] sm:$0xff]  ;;  %v349_v55 = vld [vmem:[%s3154_s7 + $0x28] sm:$0xff] }
  0x84   : > { %2406 = vmatmul.mubr.msk.f32.gmra.mxu0 %vm382_vm0, %v346_v28  ;;  %2414 = vmatmul.mubr.msk.f32.gmra.mxu1 %vm382_vm0, %v346_v28  ;;  %v3313_v56 = vld [vmem:[#allocation10 + $0xa8] sm:$0xff]  ;;  %v3315_v57 = vld [vmem:[#allocation10 + $0xb8] sm:$0xff]  ;;  %v3319_v58 = vld [vmem:[#allocation10 + $0xa0] sm:$0xff] }
  0x85   : > { %743 = vmatprep.subr.mxu0 %v3226_v29  ;;  %814 = vmatprep.subr.mxu1 %v3228_v30  ;;  %4403 = vst [vmem:[#allocation22_spill] sm:$0xff] %v3319_v58  ;;  %v3321_v59 = vld [vmem:[#allocation10 + $0xb0] sm:$0xff]  ;;  %v3325_v60 = vld [vmem:[#allocation10 + $0x88] sm:$0xff]  ;;  %v3327_v61 = vld [vmem:[#allocation10 + $0x98] sm:$0xff] }
  0x86   : > { %744 = vmatpush1.msra.mxu0 %v3232_v31  ;;  %815 = vmatpush1.msra.mxu1 %v3234_v32  ;;  %4404 = vst [vmem:[#allocation23_spill] sm:$0xff] %v3321_v59  ;;  %4405 = vst [vmem:[#allocation24_spill] sm:$0xff] %v3325_v60  ;;  %v3333_v62 = vld [vmem:[#allocation10 + $0x80] sm:$0xff]  ;;  %v3335_v63 = vld [vmem:[#allocation10 + $0x90] sm:$0xff] }
  0x87   : > { %745 = vmatprep.subr.mxu0 %v3238_v33  ;;  %816 = vmatprep.subr.mxu1 %v3240_v34  ;;  %4406 = vst [vmem:[#allocation25_spill] sm:$0xff] %v3327_v61  ;;  %4407 = vst [vmem:[#allocation26_spill] sm:$0xff] %v3333_v62  ;;  %v350_v0 = vld [vmem:[%s3154_s7 + $0x30] sm:$0xff]  ;;  %v3342_v1 = vld [vmem:[#allocation10 + $0x68] sm:$0xff] }
  0x88   : > { %489 = vmatprep.mubr.f32.mxu0 %v4287_v10  ;;  %602 = vmatprep.mubr.f32.mxu1 %v4287_v10  ;;  %4408 = vst [vmem:[#allocation27_spill] sm:$0xff] %v3335_v63  ;;  %4409 = vst [vmem:[#allocation28_spill] sm:$0xff] %v3342_v1  ;;  %v3344_v2 = vld [vmem:[#allocation10 + $0x78] sm:$0xff]  ;;  %v3348_v3 = vld [vmem:[#allocation10 + $0x60] sm:$0xff] }
  0x89   : > { %746 = vmatpush1.msra.mxu0 %v3246_v35  ;;  %817 = vmatpush1.msra.mxu1 %v3248_v36  ;;  %4410 = vst [vmem:[#allocation29_spill] sm:$0xff] %v3344_v2  ;;  %4411 = vst [vmem:[#allocation30_spill] sm:$0xff] %v3348_v3  ;;  %v3350_v4 = vld [vmem:[#allocation10 + $0x70] sm:$0xff]  ;;  %v3354_v5 = vld [vmem:[#allocation10 + $0x48] sm:$0xff] }
  0x8a   : > { %2407 = vmatmul.mubr.msk.f32.gmra.mxu0 %vm382_vm0, %v347_v37  ;;  %2415 = vmatmul.mubr.msk.f32.gmra.mxu1 %vm382_vm0, %v347_v37  ;;  %4412 = vst [vmem:[#allocation31_spill] sm:$0xff] %v3350_v4  ;;  %4413 = vst [vmem:[#allocation32_spill] sm:$0xff] %v3354_v5  ;;  %v3356_v6 = vld [vmem:[#allocation10 + $0x58] sm:$0xff]  ;;  %v3362_v7 = vld [vmem:[#allocation10 + $0x40] sm:$0xff] }
  0x8b   : > { %747 = vmatprep.subr.mxu0 %v3255_v38  ;;  %818 = vmatprep.subr.mxu1 %v3257_v39  ;;  %4414 = vst [vmem:[#allocation33_spill] sm:$0xff] %v3356_v6  ;;  %4415 = vst [vmem:[#allocation34_spill] sm:$0xff] %v3362_v7  ;;  %v3364_v8 = vld [vmem:[#allocation10 + $0x50] sm:$0xff]  ;;  %v351_v9 = vld [vmem:[%s3154_s7 + $0x38] sm:$0xff]  ;;  %s1826_s7 = sadd.s32 5, %s3565_s20 }
  0x8c   : > { %748 = vmatpush1.msra.mxu0 %v3261_v40  ;;  %819 = vmatpush1.msra.mxu1 %v3263_v41  ;;  %4416 = vst [vmem:[#allocation35_spill] sm:$0xff] %v3364_v8  ;;  %v3371_v19 = vld [vmem:[#allocation10 + $0x28] sm:$0xff]  ;;  %v3373_v28 = vld [vmem:[#allocation10 + $0x38] sm:$0xff]  ;;  %v3377_v37 = vld [vmem:[#allocation10 + $0x20] sm:$0xff]  ;;  %p1827_p10 = scmp.lt.s32.totalorder %s1826_s7, 12 }
  0x8d   : > { %749 = vmatprep.subr.mxu0 %v3267_v42  ;;  %820 = vmatprep.subr.mxu1 %v3269_v43  ;;  %4417 = vst [vmem:[#allocation36_spill] sm:$0xff] %v3371_v19  ;;  %4418 = vst [vmem:[#allocation37_spill] sm:$0xff] %v3373_v28 }
  0x8e   : > { %495 = vmatprep.mubr.f32.mxu0 %v4287_v10  ;;  %608 = vmatprep.mubr.f32.mxu1 %v4287_v10  ;;  %4419 = vst [vmem:[#allocation38_spill] sm:$0xff] %v3377_v37  ;;  %s1828_s8 = scalar_select %p1827_p10, 1, 0 }
  0x8f   : > { %750 = vmatpush1.msra.mxu0 %v3275_v44  ;;  %821 = vmatpush1.msra.mxu1 %v3277_v45 }
  0x90   : > { %2408 = vmatmul.mubr.msk.f32.gmra.mxu0 %vm382_vm0, %v348_v46  ;;  %2416 = vmatmul.mubr.msk.f32.gmra.mxu1 %vm382_vm0, %v348_v46  ;;  %v3379_v46 = vld [vmem:[#allocation10 + $0x30] sm:$0xff] }
  0x91   : > { %751 = vmatprep.subr.mxu0 %v3284_v47  ;;  %822 = vmatprep.subr.mxu1 %v3286_v48  ;;  %4420 = vst [vmem:[#allocation39_spill] sm:$0xff] %v3379_v46 }
  0x92   : > { %752 = vmatpush1.msra.mxu0 %v3290_v49  ;;  %823 = vmatpush1.msra.mxu1 %v3292_v50 }
  0x93   : > { %753 = vmatprep.subr.mxu0 %v3296_v51  ;;  %824 = vmatprep.subr.mxu1 %v3298_v52 }
  0x94   : > { %501 = vmatprep.mubr.f32.mxu0 %v4287_v10  ;;  %614 = vmatprep.mubr.f32.mxu1 %v4287_v10 }
  0x95   : > { %754 = vmatpush1.msra.mxu0 %v3304_v53  ;;  %825 = vmatpush1.msra.mxu1 %v3306_v54 }
  0x96   : > { %2409 = vmatmul.mubr.msk.f32.gmra.mxu0 %vm382_vm0, %v349_v55  ;;  %2417 = vmatmul.mubr.msk.f32.gmra.mxu1 %vm382_vm0, %v349_v55  ;;  %v3383_v55 = vld [vmem:[#allocation10 + $0x8] sm:$0xff] }
  0x97   : > { %755 = vmatprep.subr.mxu0 %v3313_v56  ;;  %826 = vmatprep.subr.mxu1 %v3315_v57  ;;  %4421 = vst [vmem:[#allocation40_spill] sm:$0xff] %v3383_v55 }
  0x98   : > { %756 = vmatpush1.msra.mxu0 %v3319_v58  ;;  %827 = vmatpush1.msra.mxu1 %v3321_v59 }
  0x99   : > { %757 = vmatprep.subr.mxu0 %v3325_v60  ;;  %828 = vmatprep.subr.mxu1 %v3327_v61 }
  0x9a   : > { %507 = vmatprep.mubr.f32.mxu0 %v4287_v10  ;;  %620 = vmatprep.mubr.f32.mxu1 %v4287_v10 }
  0x9b   : > { %758 = vmatpush1.msra.mxu0 %v3333_v62  ;;  %829 = vmatpush1.msra.mxu1 %v3335_v63 }
  0x9c   : > { %2410 = vmatmul.mubr.msk.f32.gmra.mxu0 %vm382_vm0, %v350_v0  ;;  %2418 = vmatmul.mubr.msk.f32.gmra.mxu1 %vm382_vm0, %v350_v0  ;;  %v3385_v0 = vld [vmem:[#allocation10 + $0x18] sm:$0xff] }
  0x9d   : > { %759 = vmatprep.subr.mxu0 %v3342_v1  ;;  %830 = vmatprep.subr.mxu1 %v3344_v2  ;;  %4422 = vst [vmem:[#allocation41_spill] sm:$0xff] %v3385_v0 }
  0x9e   : > { %760 = vmatpush1.msra.mxu0 %v3348_v3  ;;  %831 = vmatpush1.msra.mxu1 %v3350_v4 }
  0x9f   : > { %761 = vmatprep.subr.mxu0 %v3354_v5  ;;  %832 = vmatprep.subr.mxu1 %v3356_v6 }
  0xa0   : > { %513 = vmatprep.mubr.f32.mxu0 %v4287_v10  ;;  %626 = vmatprep.mubr.f32.mxu1 %v4287_v10  ;;  %v3389_v10 = vld [vmem:[#allocation10] sm:$0xff] }
  0xa1   : > { %762 = vmatpush1.msra.mxu0 %v3362_v7  ;;  %833 = vmatpush1.msra.mxu1 %v3364_v8  ;;  %4423 = vst [vmem:[#allocation42_spill] sm:$0xff] %v3389_v10  ;;  %v3393_v8 = vld [vmem:[#allocation10 + $0x10] sm:$0xff]  ;;  %v4425_v7 = vmov 0.0  }
  0xa2   : > { %2411 = vmatmul.mubr.msk.f32.gmra.mxu0 %vm382_vm0, %v351_v9  ;;  %2419 = vmatmul.mubr.msk.f32.gmra.mxu1 %vm382_vm0, %v351_v9  ;;  %4424 = vst [vmem:[#allocation43_spill] sm:$0xff] %v3393_v8  ;;  %v3397_v9 = vld [vmem:[#allocation2] sm:$0xff] }
  0xa3   : > { %763 = vmatprep.subr.mxu0 %v3371_v19  ;;  %834 = vmatprep.subr.mxu1 %v3373_v28 }
  0xa4   : > { %764 = vmatpush1.msra.mxu0 %v3377_v37  ;;  %835 = vmatpush1.msra.mxu1 %v3379_v46 }
  0xa5   : > { %765 = vmatprep.subr.mxu0 %v3383_v55  ;;  %836 = vmatprep.subr.mxu1 %v3385_v0 }
  0xa6   : > { %766 = vmatpush1.msra.mxu0 %v3389_v10  ;;  %799 = vmatprep.mubr.f32.mxu0 %v4425_v7 }
  0xa7   : > { %837 = vmatpush1.msra.mxu1 %v3393_v8  ;;  %870 = vmatprep.mubr.f32.mxu1 %v4425_v7 }
  0xa8   : > { %800 = vmatmul.mubr.f32.vlgmr.msra.gmra.mxu0 %v3397_v9  ;;  %871 = vmatmul.mubr.f32.vlgmr.msra.gmra.mxu1 %v3397_v9 }
  0xa9   : > { %918 = vmatprep.subr.mxu0 %v3169_v11  ;;  %989 = vmatprep.subr.mxu1 %v3171_v12 }
  0xaa   : > { %919 = vmatpush1.msra.mxu0 %v3174_v13  ;;  %990 = vmatpush1.msra.mxu1 %v3176_v14 }
  0xab   : > { %920 = vmatprep.subr.mxu0 %v3180_v15  ;;  %991 = vmatprep.subr.mxu1 %v3182_v16 }
  0xac   : > { %921 = vmatpush1.msra.mxu0 %v3188_v17  ;;  %992 = vmatpush1.msra.mxu1 %v3190_v18 }
  0xad   : > { %922 = vmatprep.subr.mxu0 %v3197_v20  ;;  %993 = vmatprep.subr.mxu1 %v3199_v21 }
  0xae   : > { %923 = vmatpush1.msra.mxu0 %v3203_v22  ;;  %994 = vmatpush1.msra.mxu1 %v3205_v23 }
  0xaf   : > { %924 = vmatprep.subr.mxu0 %v3209_v24  ;;  %995 = vmatprep.subr.mxu1 %v3211_v25 }
  0xb0   : > { %925 = vmatpush1.msra.mxu0 %v3217_v26  ;;  %996 = vmatpush1.msra.mxu1 %v3219_v27 }
  0xb1   : > { %926 = vmatprep.subr.mxu0 %v3226_v29  ;;  %997 = vmatprep.subr.mxu1 %v3228_v30 }
  0xb2   : > { %927 = vmatpush1.msra.mxu0 %v3232_v31  ;;  %998 = vmatpush1.msra.mxu1 %v3234_v32 }
  0xb3   : > { %928 = vmatprep.subr.mxu0 %v3238_v33  ;;  %999 = vmatprep.subr.mxu1 %v3240_v34 }
  0xb4   : > { %929 = vmatpush1.msra.mxu0 %v3246_v35  ;;  %1000 = vmatpush1.msra.mxu1 %v3248_v36 }
  0xb5   : > { %930 = vmatprep.subr.mxu0 %v3255_v38  ;;  %1001 = vmatprep.subr.mxu1 %v3257_v39 }
  0xb6   : > { %931 = vmatpush1.msra.mxu0 %v3261_v40  ;;  %1002 = vmatpush1.msra.mxu1 %v3263_v41 }
  0xb7   : > { %932 = vmatprep.subr.mxu0 %v3267_v42  ;;  %1003 = vmatprep.subr.mxu1 %v3269_v43 }
  0xb8   : > { %933 = vmatpush1.msra.mxu0 %v3275_v44  ;;  %1004 = vmatpush1.msra.mxu1 %v3277_v45 }
  0xb9   : > { %934 = vmatprep.subr.mxu0 %v3284_v47  ;;  %1005 = vmatprep.subr.mxu1 %v3286_v48 }
  0xba   : > { %935 = vmatpush1.msra.mxu0 %v3290_v49  ;;  %1006 = vmatpush1.msra.mxu1 %v3292_v50 }
  0xbb   : > { %936 = vmatprep.subr.mxu0 %v3296_v51  ;;  %1007 = vmatprep.subr.mxu1 %v3298_v52 }
  0xbc   : > { %937 = vmatpush1.msra.mxu0 %v3304_v53  ;;  %1008 = vmatpush1.msra.mxu1 %v3306_v54 }
  0xbd   : > { %938 = vmatprep.subr.mxu0 %v3313_v56  ;;  %1009 = vmatprep.subr.mxu1 %v3315_v57 }
  0xbe   : > { %939 = vmatpush1.msra.mxu0 %v3319_v58  ;;  %1010 = vmatpush1.msra.mxu1 %v3321_v59  ;;  %v4426_v59 = vld [vmem:[#allocation34_spill] sm:$0xff] }
  0xbf   : > { %940 = vmatprep.subr.mxu0 %v3325_v60  ;;  %1011 = vmatprep.subr.mxu1 %v3327_v61  ;;  %v4427_v60 = vld [vmem:[#allocation35_spill] sm:$0xff] }
  0xc0   : > { %941 = vmatpush1.msra.mxu0 %v3333_v62  ;;  %1012 = vmatpush1.msra.mxu1 %v3335_v63 }
  0xc1   : > { %942 = vmatprep.subr.mxu0 %v3342_v1  ;;  %1013 = vmatprep.subr.mxu1 %v3344_v2 }
  0xc2   : > { %943 = vmatpush1.msra.mxu0 %v3348_v3  ;;  %1014 = vmatpush1.msra.mxu1 %v3350_v4 }
  0xc3   : > { %944 = vmatprep.subr.mxu0 %v3354_v5  ;;  %1015 = vmatprep.subr.mxu1 %v3356_v6 }
  0xc4   : > { %945 = vmatpush1.msra.mxu0 %v4426_v59  ;;  %1016 = vmatpush1.msra.mxu1 %v4427_v60 }
  0xc5   : > { %946 = vmatprep.subr.mxu0 %v3371_v19  ;;  %1017 = vmatprep.subr.mxu1 %v3373_v28  ;;  %v362_v28 = vlaneseq }
  0xc6   : > { %947 = vmatpush1.msra.mxu0 %v3377_v37  ;;  %1018 = vmatpush1.msra.mxu1 %v3379_v46 }
  0xc7   : > { %948 = vmatprep.subr.mxu0 %v3383_v55  ;;  %1019 = vmatprep.subr.mxu1 %v3385_v0  ;;  %v363_v37 = vshrl.u32 %v362_v28, 7 }
  0xc8   : > { %949 = vmatpush1.msra.mxu0 %v3389_v10  ;;  %982 = vmatprep.mubr.f32.mxu0 %v4425_v7  ;;  %v360_v10 = vld [vmem:[%s4277_s3] sm:$0xf] }
  0xc9   : > { %1020 = vmatpush1.msra.mxu1 %v3393_v8  ;;  %1053 = vmatprep.mubr.f32.mxu1 %v4425_v7  ;;  %v364_v55 = vsub.s32 0, %v363_v37  ;;  %v372_v0 = vsub.s32 2, %v363_v37  ;;  %v368_v7 = vsub.s32 1, %v363_v37 }
  0xca   : > { %1102 = vmatprep.subr.mxu0 %v3169_v11  ;;  %1173 = vmatprep.subr.mxu1 %v3171_v12  ;;  %v376_v11 = vsub.s32 3, %v363_v37 }
  0xcb   : > { %v365_v59 = vrot.slane %v360_v10, %v364_v55  ;;  %v3484_v12 = vrot.slane %v360_v10, %v372_v0  ;;  %v369_v5 = vrot.slane %v360_v10, %v368_v7 }
  0xcc   : > { %v3486_v4 = vrot.slane %v360_v10, %v376_v11 }
 0x138   : > { %v3473_v19 = vpop.f32.mrf.mxu0  ;;  %v3475_v46 = vpop.f32.mrf.mxu1 }
 0x13a   : > { %v3480_v60 = vpop.f32.mrf.mxu0  ;;  %v3482_v8 = vpop.f32.mrf.mxu1 }
 0x13e   : > { %v479_v28 = vpop.f32.mrf.mxu0  ;;  %v592_v6 = vpop.f32.mrf.mxu1 }
 0x13f   : > { %v3488_v3 = vadd.f32 %v479_v28, %v365_v59  ;;  %v3491_v2 = vadd.f32 %v592_v6, %v3484_v12 }
 0x140   : > { %v481_v1 = vpop.f32.mrf.mxu0  ;;  %v594_v63 = vpop.f32.mrf.mxu1 }
 0x141   : > { %4428 = vst [vmem:[#allocation44_spill] sm:$0xff] %v3488_v3  ;;  %4429 = vst [vmem:[#allocation45_spill] sm:$0xff] %v3491_v2  ;;  %v3493_v62 = vadd.f32 %v481_v1, %v369_v5  ;;  %v3496_v61 = vadd.f32 %v594_v63, %v3486_v4 }
 0x143   : > { %4430 = vst [vmem:[#allocation46_spill] sm:$0xff] %v3493_v62  ;;  %4431 = vst [vmem:[#allocation47_spill] sm:$0xff] %v3496_v61 }
 0x144   : > { %v485_v37 = vpop.f32.mrf.mxu0  ;;  %v598_v55 = vpop.f32.mrf.mxu1 }
 0x145   : > { %v3498_v0 = vadd.f32 %v485_v37, %v365_v59  ;;  %v3501_v7 = vadd.f32 %v598_v55, %v3484_v12 }
 0x146   : > { %v487_v10 = vpop.f32.mrf.mxu0  ;;  %v600_v11 = vpop.f32.mrf.mxu1 }
 0x147   : > { %4432 = vst [vmem:[#allocation48_spill] sm:$0xff] %v3498_v0  ;;  %4433 = vst [vmem:[#allocation49_spill] sm:$0xff] %v3501_v7  ;;  %v3503_v28 = vadd.f32 %v487_v10, %v369_v5  ;;  %v3506_v6 = vadd.f32 %v600_v11, %v3486_v4 }
 0x149   : > { %4434 = vst [vmem:[#allocation50_spill] sm:$0xff] %v3503_v28  ;;  %4435 = vst [vmem:[#allocation51_spill] sm:$0xff] %v3506_v6 }
 0x14a   : > { %v491_v2 = vpop.f32.mrf.mxu0  ;;  %v604_v1 = vpop.f32.mrf.mxu1 }
 0x14b   : > { %v3508_v62 = vadd.f32 %v491_v2, %v365_v59  ;;  %v3511_v63 = vadd.f32 %v604_v1, %v3484_v12 }
 0x14c   : > { %v493_v61 = vpop.f32.mrf.mxu0  ;;  %v606_v37 = vpop.f32.mrf.mxu1 }
 0x14d   : > { %4436 = vst [vmem:[#allocation52_spill] sm:$0xff] %v3508_v62  ;;  %4437 = vst [vmem:[#allocation53_spill] sm:$0xff] %v3511_v63  ;;  %v3513_v0 = vadd.f32 %v493_v61, %v369_v5  ;;  %v3516_v55 = vadd.f32 %v606_v37, %v3486_v4 }
 0x14f   : > { %4438 = vst [vmem:[#allocation54_spill] sm:$0xff] %v3513_v0  ;;  %4439 = vst [vmem:[#allocation55_spill] sm:$0xff] %v3516_v55 }
 0x150   : > { %v497_v7 = vpop.f32.mrf.mxu0  ;;  %v610_v10 = vpop.f32.mrf.mxu1 }
 0x151   : > { %v3518_v28 = vadd.f32 %v497_v7, %v365_v59  ;;  %v3521_v11 = vadd.f32 %v610_v10, %v3484_v12 }
 0x152   : > { %v499_v6 = vpop.f32.mrf.mxu0  ;;  %v612_v2 = vpop.f32.mrf.mxu1 }
 0x153   : > { %4440 = vst [vmem:[#allocation56_spill] sm:$0xff] %v3518_v28  ;;  %4441 = vst [vmem:[#allocation57_spill] sm:$0xff] %v3521_v11  ;;  %v3523_v62 = vadd.f32 %v499_v6, %v369_v5  ;;  %v3526_v1 = vadd.f32 %v612_v2, %v3486_v4 }
 0x155   : > { %4442 = vst [vmem:[#allocation58_spill] sm:$0xff] %v3523_v62  ;;  %4443 = vst [vmem:[#allocation59_spill] sm:$0xff] %v3526_v1 }
 0x156   : > { %v503_v63 = vpop.f32.mrf.mxu0  ;;  %v616_v61 = vpop.f32.mrf.mxu1 }
 0x157   : > { %v3528_v0 = vadd.f32 %v503_v63, %v365_v59  ;;  %v3531_v37 = vadd.f32 %v616_v61, %v3484_v12 }
 0x158   : > { %v505_v55 = vpop.f32.mrf.mxu0  ;;  %v618_v7 = vpop.f32.mrf.mxu1 }
 0x159   : > { %4444 = vst [vmem:[#allocation60_spill] sm:$0xff] %v3528_v0  ;;  %4445 = vst [vmem:[#allocation61_spill] sm:$0xff] %v3531_v37  ;;  %v3533_v28 = vadd.f32 %v505_v55, %v369_v5  ;;  %v3536_v10 = vadd.f32 %v618_v7, %v3486_v4 }
 0x15b   : > { %4446 = vst [vmem:[#allocation62_spill] sm:$0xff] %v3533_v28  ;;  %4447 = vst [vmem:[#allocation63_spill] sm:$0xff] %v3536_v10 }
 0x15c   : > { %v509_v11 = vpop.f32.mrf.mxu0  ;;  %v622_v6 = vpop.f32.mrf.mxu1 }
 0x15d   : > { %v3538_v62 = vadd.f32 %v509_v11, %v365_v59  ;;  %v3541_v2 = vadd.f32 %v622_v6, %v3484_v12 }
 0x15e   : > { %v511_v1 = vpop.f32.mrf.mxu0  ;;  %v624_v63 = vpop.f32.mrf.mxu1 }
 0x15f   : > { %4448 = vst [vmem:[#allocation64_spill] sm:$0xff] %v3538_v62  ;;  %4449 = vst [vmem:[#allocation65_spill] sm:$0xff] %v3541_v2  ;;  %v3543_v0 = vadd.f32 %v511_v1, %v369_v5  ;;  %v3546_v61 = vadd.f32 %v624_v63, %v3486_v4  ;;  %v474_v1 = vadd.f32 %v3473_v19, %v365_v59 }
 0x160   : > { %v476_v63 = vadd.f32 %v3480_v60, %v369_v5  ;;  %v589_v60 = vadd.f32 %v3482_v8, %v3486_v4  ;;  %v909_v8 = vstv %s908_s19  ;;  %s2012_s19 = scalar_select %p2011_p11, 1, 0 }
 0x161   : > { %4450 = vst [vmem:[#allocation66_spill] sm:$0xff] %v3543_v0  ;;  %4451 = vst [vmem:[#allocation67_spill] sm:$0xff] %v3546_v61  ;;  %vm910_vm1 = vcmp.eq.s32.totalorder %v909_v8, 1  ;;  %v4468_v8 = vld [vmem:[#allocation34_spill] sm:$0xff] }
 0x162   : > { %v515_v37 = vpop.f32.mrf.mxu0  ;;  %v628_v55 = vpop.f32.mrf.mxu1 }
 0x163   : > { %v3548_v28 = vadd.f32 %v515_v37, %v365_v59  ;;  %v3551_v7 = vadd.f32 %v628_v55, %v3484_v12 }
 0x164   : > { %v517_v10 = vpop.f32.mrf.mxu0  ;;  %v630_v11 = vpop.f32.mrf.mxu1 }
 0x165   : > { %4452 = vst [vmem:[#allocation68_spill] sm:$0xff] %v3548_v28  ;;  %4453 = vst [vmem:[#allocation69_spill] sm:$0xff] %v3551_v7  ;;  %v3553_v62 = vadd.f32 %v517_v10, %v369_v5  ;;  %v3556_v6 = vadd.f32 %v630_v11, %v3486_v4  ;;  %v587_v10 = vadd.f32 %v3475_v46, %v3484_v12  ;;  %v730_v46 = vld [vmem:[#allocation3] sm:$0xff] }
 0x167   : > { %4454 = vst [vmem:[#allocation70_spill] sm:$0xff] %v3553_v62  ;;  %4455 = vst [vmem:[#allocation71_spill] sm:$0xff] %v3556_v6  ;;  %v4477_v62 = vmov 0.0  }
 0x168   : > { %v801_v2 = vpop.f32.mrf.mxu0  ;;  %v872_v55 = vpop.f32.mrf.mxu1 }
 0x169   : > { %v877_v61 = vadd.f32 %v801_v2, %v474_v1  ;;  %v879_v11 = vadd.f32 %v872_v55, %v587_v10 }
 0x16a   : > { %v803_v0 = vpop.f32.mrf.mxu0  ;;  %v874_v59 = vpop.f32.mrf.mxu1 }
 0x16b   : > { %v881_v3 = vsub.f32 0.0, %v877_v61  ;;  %v878_v37 = vadd.f32 %v803_v0, %v476_v63  ;;  %v883_v6 = vsub.f32 0.0, %v879_v11  ;;  %v880_v2 = vadd.f32 %v874_v59, %v589_v60  ;;  %v4457_v60 = vld [vmem:[#allocation23_spill] sm:$0xff] }
 0x16d   : > { %v884_v28 = vmul.f32 1.442695, %v881_v3  ;;  %v882_v58 = vsub.f32 0.0, %v878_v37  ;;  %v888_v5 = vmul.f32 1.442695, %v883_v6 }
 0x16f   : > { %2542 = vpow2.f32 %v884_v28  ;;  %v886_v7 = vmul.f32 1.442695, %v882_v58 }
 0x171   : > { %2544 = vpow2.f32 %v886_v7 }
 0x172   : > { %2546 = vpow2.f32 %v888_v5  ;;  %v4458_v5 = vld [vmem:[#allocation24_spill] sm:$0xff] }
 0x17c   : > { %v2543_v19 = vpop.eup %2542 }
 0x17d   : > { %v890_v0 = vadd.f32 1.0, %v2543_v19  ;;  %v4459_v19 = vld [vmem:[#allocation25_spill] sm:$0xff] }
 0x17e   : > { %v2545_v3 = vpop.eup %2544 }
 0x17f   : > { %2548 = vrcp.f32 %v890_v0  ;;  %v891_v28 = vadd.f32 1.0, %v2545_v3  ;;  %v2547_v12 = vpop.eup %2546  ;;  %v4461_v0 = vld [vmem:[#allocation27_spill] sm:$0xff]  ;;  %v4462_v3 = vld [vmem:[#allocation28_spill] sm:$0xff] }
 0x180   : > { %2550 = vtanh.f32 %v880_v2  ;;  %v892_v7 = vadd.f32 1.0, %v2547_v12  ;;  %v4460_v2 = vld [vmem:[#allocation26_spill] sm:$0xff] }
 0x181   : > { %2552 = vrcp.f32 %v891_v28  ;;  %v4463_v28 = vld [vmem:[#allocation29_spill] sm:$0xff]  ;;  %v4464_v12 = vld [vmem:[#allocation30_spill] sm:$0xff] }
 0x182   : > { %2554 = vrcp.f32 %v892_v7  ;;  %v4470_v7 = vld [vmem:[#allocation36_spill] sm:$0xff] }
 0x18c   : > { %v2549_v58 = vpop.eup %2548 }
 0x18d   : > { %v2551_v4 = vpop.eup %2550 }
 0x18e   : > { %v2553_v61 = vpop.eup %2552  ;;  %v901_v1 = vmul.f32 %v2551_v4, %v2549_v58  ;;  %v4465_v58 = vld [vmem:[#allocation31_spill] sm:$0xff]  ;;  %v4467_v4 = vld [vmem:[#allocation33_spill] sm:$0xff] }
 0x18f   : > { %v900_v6 = vmul.f32 %v2553_v61, %v730_v46  ;;  %v2555_v55 = vpop.eup %2554  ;;  %v4469_v61 = vld [vmem:[#allocation35_spill] sm:$0xff] }
 0x191   : > { %v902_v63 = vadd.f32 %v901_v1, %v900_v6  ;;  %v4471_v6 = vld [vmem:[#allocation37_spill] sm:$0xff]  ;;  %v4472_v1 = vld [vmem:[#allocation38_spill] sm:$0xff] }
 0x193   : > { %2556 = vtanh.f32 %v902_v63  ;;  %v3568_v37 = vsel %vm910_vm1, %v902_v63, %v730_v46  ;;  %v4466_v46 = vld [vmem:[#allocation32_spill] sm:$0xff]  ;;  %v4473_v63 = vld [vmem:[#allocation39_spill] sm:$0xff] }
 0x1a0   : > { %v2557_v10 = vpop.eup %2556 }
 0x1a1   : > { %v904_v11 = vmul.f32 %v2557_v10, %v2555_v55  ;;  %v4474_v55 = vld [vmem:[#allocation40_spill] sm:$0xff]  ;;  %v4475_v10 = vld [vmem:[#allocation41_spill] sm:$0xff] }
 0x1a3   : > { %905 = vst [vmem:[%s3164_s15] sm:$0xff] %v904_v11  ;;  %v3572_v59 = vsel %vm910_vm1, %v904_v11, %v3397_v9  ;;  %v4456_v9 = vld [vmem:[#allocation22_spill] sm:$0xff] }
 0x1a4   : > { %983 = vmatmul.mubr.f32.vlgmr.msra.gmra.mxu0 %v3572_v59  ;;  %1054 = vmatmul.mubr.f32.vlgmr.msra.gmra.mxu1 %v3572_v59  ;;  %v4476_v11 = vld [vmem:[#allocation42_spill] sm:$0xff] }
 0x1a5   : > { %1103 = vmatpush1.msra.mxu0 %v3174_v13  ;;  %1174 = vmatpush1.msra.mxu1 %v3176_v14 }
 0x1a6   : > { %1104 = vmatprep.subr.mxu0 %v3180_v15  ;;  %1175 = vmatprep.subr.mxu1 %v3182_v16 }
 0x1a7   : > { %1105 = vmatpush1.msra.mxu0 %v3188_v17  ;;  %1176 = vmatpush1.msra.mxu1 %v3190_v18 }
 0x1a8   : > { %1106 = vmatprep.subr.mxu0 %v3197_v20  ;;  %1177 = vmatprep.subr.mxu1 %v3199_v21 }
 0x1a9   : > { %1107 = vmatpush1.msra.mxu0 %v3203_v22  ;;  %1178 = vmatpush1.msra.mxu1 %v3205_v23 }
 0x1aa   : > { %1108 = vmatprep.subr.mxu0 %v3209_v24  ;;  %1179 = vmatprep.subr.mxu1 %v3211_v25 }
 0x1ab   : > { %1109 = vmatpush1.msra.mxu0 %v3217_v26  ;;  %1180 = vmatpush1.msra.mxu1 %v3219_v27 }
 0x1ac   : > { %1110 = vmatprep.subr.mxu0 %v3226_v29  ;;  %1181 = vmatprep.subr.mxu1 %v3228_v30 }
 0x1ad   : > { %1111 = vmatpush1.msra.mxu0 %v3232_v31  ;;  %1182 = vmatpush1.msra.mxu1 %v3234_v32 }
 0x1ae   : > { %1112 = vmatprep.subr.mxu0 %v3238_v33  ;;  %1183 = vmatprep.subr.mxu1 %v3240_v34 }
 0x1af   : > { %1113 = vmatpush1.msra.mxu0 %v3246_v35  ;;  %1184 = vmatpush1.msra.mxu1 %v3248_v36 }
 0x1b0   : > { %1114 = vmatprep.subr.mxu0 %v3255_v38  ;;  %1185 = vmatprep.subr.mxu1 %v3257_v39 }
 0x1b1   : > { %1115 = vmatpush1.msra.mxu0 %v3261_v40  ;;  %1186 = vmatpush1.msra.mxu1 %v3263_v41 }
 0x1b2   : > { %1116 = vmatprep.subr.mxu0 %v3267_v42  ;;  %1187 = vmatprep.subr.mxu1 %v3269_v43 }
 0x1b3   : > { %1117 = vmatpush1.msra.mxu0 %v3275_v44  ;;  %1188 = vmatpush1.msra.mxu1 %v3277_v45 }
 0x1b4   : > { %1118 = vmatprep.subr.mxu0 %v3284_v47  ;;  %1189 = vmatprep.subr.mxu1 %v3286_v48 }
 0x1b5   : > { %1119 = vmatpush1.msra.mxu0 %v3290_v49  ;;  %1190 = vmatpush1.msra.mxu1 %v3292_v50 }
 0x1b6   : > { %1120 = vmatprep.subr.mxu0 %v3296_v51  ;;  %1191 = vmatprep.subr.mxu1 %v3298_v52 }
 0x1b7   : > { %1121 = vmatpush1.msra.mxu0 %v3304_v53  ;;  %1192 = vmatpush1.msra.mxu1 %v3306_v54 }
 0x1b8   : > { %1122 = vmatprep.subr.mxu0 %v3313_v56  ;;  %1193 = vmatprep.subr.mxu1 %v3315_v57 }
 0x1b9   : > { %1123 = vmatpush1.msra.mxu0 %v4456_v9  ;;  %1194 = vmatpush1.msra.mxu1 %v4457_v60 }
 0x1ba   : > { %1124 = vmatprep.subr.mxu0 %v4458_v5  ;;  %1195 = vmatprep.subr.mxu1 %v4459_v19 }
 0x1bb   : > { %1125 = vmatpush1.msra.mxu0 %v4460_v2  ;;  %1196 = vmatpush1.msra.mxu1 %v4461_v0  ;;  %v4484_v0 = vld [vmem:[#allocation47_spill] sm:$0xff] }
 0x1bc   : > { %1126 = vmatprep.subr.mxu0 %v4462_v3  ;;  %1197 = vmatprep.subr.mxu1 %v4463_v28 }
 0x1bd   : > { %1127 = vmatpush1.msra.mxu0 %v4464_v12  ;;  %1198 = vmatpush1.msra.mxu1 %v4465_v58 }
 0x1be   : > { %1128 = vmatprep.subr.mxu0 %v4466_v46  ;;  %1199 = vmatprep.subr.mxu1 %v4467_v4  ;;  %v4478_v4 = vld [vmem:[#allocation43_spill] sm:$0xff] }
 0x1bf   : > { %1129 = vmatpush1.msra.mxu0 %v4468_v8  ;;  %1200 = vmatpush1.msra.mxu1 %v4469_v61  ;;  %v4479_v61 = vld [vmem:[#allocation20_spill] sm:$0xff] }
 0x1c0   : > { %1130 = vmatprep.subr.mxu0 %v4470_v7  ;;  %1201 = vmatprep.subr.mxu1 %v4471_v6  ;;  %v4480_v7 = vld [vmem:[#allocation21_spill] sm:$0xff] }
 0x1c1   : > { %1131 = vmatpush1.msra.mxu0 %v4472_v1  ;;  %1202 = vmatpush1.msra.mxu1 %v4473_v63  ;;  %v4481_v1 = vld [vmem:[#allocation44_spill] sm:$0xff] }
 0x1c2   : > { %1132 = vmatprep.subr.mxu0 %v4474_v55  ;;  %1203 = vmatprep.subr.mxu1 %v4475_v10  ;;  %v4482_v55 = vld [vmem:[#allocation46_spill] sm:$0xff] }
 0x1c3   : > { %1133 = vmatpush1.msra.mxu0 %v4476_v11  ;;  %1166 = vmatprep.mubr.f32.mxu0 %v4477_v62 }
 0x1c4   : > { %1204 = vmatpush1.msra.mxu1 %v4478_v4  ;;  %1237 = vmatprep.mubr.f32.mxu1 %v4477_v62  ;;  %v4483_v4 = vld [vmem:[#allocation45_spill] sm:$0xff] }
 0x1c5   : > { %1286 = vmatprep.subr.mxu0 %v4479_v61  ;;  %1357 = vmatprep.subr.mxu1 %v4480_v7 }
 0x264   : > { %v984_v6 = vpop.f32.mrf.mxu0  ;;  %v1055_v11 = vpop.f32.mrf.mxu1 }
 0x265   : > { %v1060_v8 = vadd.f32 %v984_v6, %v4481_v1  ;;  %v1062_v62 = vadd.f32 %v1055_v11, %v4483_v4  ;;  %v1093_v4 = vstv %s1092_s18  ;;  %s2196_s18 = scalar_select %p2195_p6, 1, 0 }
 0x266   : > { %v986_v63 = vpop.f32.mrf.mxu0  ;;  %v1057_v61 = vpop.f32.mrf.mxu1  ;;  %vm1094_vm2 = vcmp.eq.s32.totalorder %v1093_v4, 1 }
 0x267   : > { %v1064_v46 = vsub.f32 0.0, %v1060_v8  ;;  %v1061_v58 = vadd.f32 %v986_v63, %v4482_v55  ;;  %v1066_v3 = vsub.f32 0.0, %v1062_v62  ;;  %v1063_v7 = vadd.f32 %v1057_v61, %v4484_v0 }
 0x269   : > { %v1067_v10 = vmul.f32 1.442695, %v1064_v46  ;;  %v1065_v12 = vsub.f32 0.0, %v1061_v58  ;;  %v1071_v2 = vmul.f32 1.442695, %v1066_v3 }
 0x26b   : > { %2558 = vpow2.f32 %v1067_v10  ;;  %v1069_v28 = vmul.f32 1.442695, %v1065_v12 }
 0x26d   : > { %2560 = vpow2.f32 %v1069_v28 }
 0x26e   : > { %2562 = vtanh.f32 %v1063_v7 }
 0x26f   : > { %2564 = vpow2.f32 %v1071_v2 }
 0x278   : > { %v2559_v19 = vpop.eup %2558 }
 0x279   : > { %v1073_v6 = vadd.f32 1.0, %v2559_v19 }
 0x27a   : > { %v2561_v8 = vpop.eup %2560 }
 0x27b   : > { %2566 = vrcp.f32 %v1073_v6  ;;  %v1074_v46 = vadd.f32 1.0, %v2561_v8  ;;  %v2563_v12 = vpop.eup %2562  ;;  %v1277_v8 = vstv %s1276_s27 }
 0x27c   : > { %v2565_v28 = vpop.eup %2564  ;;  %vm1278_vm3 = vcmp.eq.s32.totalorder %v1277_v8, 1  ;;  %v3847_v8 = vld [vmem:[#allocation10 + $0xd8] sm:$0xff] }
 0x27d   : > { %2568 = vrcp.f32 %v1074_v46  ;;  %v1075_v0 = vadd.f32 1.0, %v2565_v28 }
 0x27f   : > { %2570 = vrcp.f32 %v1075_v0 }
 0x288   : > { %v2567_v58 = vpop.eup %2566 }
 0x289   : > { %v1084_v62 = vmul.f32 %v2567_v58, %v2563_v12 }
 0x28a   : > { %v2569_v1 = vpop.eup %2568 }
 0x28b   : > { %v1083_v3 = vmul.f32 %v2569_v1, %v3568_v37 }
 0x28c   : > { %v2571_v63 = vpop.eup %2570 }
 0x28d   : > { %v1085_v19 = vadd.f32 %v1084_v62, %v1083_v3 }
 0x28f   : > { %2572 = vtanh.f32 %v1085_v19  ;;  %v3649_v2 = vsel %vm1094_vm2, %v1085_v19, %v3568_v37  ;;  %v3742_v19 = vld [vmem:[#allocation10 + $0x1e0] sm:$0xff] }
 0x29c   : > { %v2573_v55 = vpop.eup %2572 }
 0x29d   : > { %v1087_v10 = vmul.f32 %v2573_v55, %v2571_v63  ;;  %v3745_v63 = vld [vmem:[#allocation10 + $0x1f0] sm:$0xff]  ;;  %v3751_v55 = vld [vmem:[#allocation10 + $0x1d8] sm:$0xff] }
 0x29f   : > { %2421 = vst [vmem:[%s3164_s15 + $0x8] sm:$0xff] %v1087_v10  ;;  %v3653_v11 = vsel %vm1094_vm2, %v1087_v10, %v3572_v59  ;;  %v3754_v10 = vld [vmem:[#allocation10 + $0x1c0] sm:$0xff] }
 0x2a0   : > { %1167 = vmatmul.mubr.f32.vlgmr.msra.gmra.mxu0 %v3653_v11  ;;  %1238 = vmatmul.mubr.f32.vlgmr.msra.gmra.mxu1 %v3653_v11 }
 0x2a1   : > { %1287 = vmatpush1.msra.mxu0 %v3174_v13  ;;  %1358 = vmatpush1.msra.mxu1 %v3176_v14  ;;  %v4485_v13 = vld [vmem:[#allocation25_spill] sm:$0xff]  ;;  %v4486_v14 = vld [vmem:[#allocation26_spill] sm:$0xff] }
 0x2a2   : > { %1288 = vmatprep.subr.mxu0 %v3180_v15  ;;  %1359 = vmatprep.subr.mxu1 %v3182_v16  ;;  %v4487_v15 = vld [vmem:[#allocation27_spill] sm:$0xff]  ;;  %v4488_v16 = vld [vmem:[#allocation28_spill] sm:$0xff] }
 0x2a3   : > { %1289 = vmatpush1.msra.mxu0 %v3188_v17  ;;  %1360 = vmatpush1.msra.mxu1 %v3190_v18  ;;  %v4489_v17 = vld [vmem:[#allocation29_spill] sm:$0xff]  ;;  %v4490_v18 = vld [vmem:[#allocation30_spill] sm:$0xff] }
 0x2a4   : > { %1290 = vmatprep.subr.mxu0 %v3197_v20  ;;  %1361 = vmatprep.subr.mxu1 %v3199_v21  ;;  %v4491_v20 = vld [vmem:[#allocation31_spill] sm:$0xff]  ;;  %v4492_v21 = vld [vmem:[#allocation32_spill] sm:$0xff] }
 0x2a5   : > { %1291 = vmatpush1.msra.mxu0 %v3203_v22  ;;  %1362 = vmatpush1.msra.mxu1 %v3205_v23  ;;  %v4493_v22 = vld [vmem:[#allocation33_spill] sm:$0xff]  ;;  %v4494_v23 = vld [vmem:[#allocation34_spill] sm:$0xff] }
 0x2a6   : > { %1292 = vmatprep.subr.mxu0 %v3209_v24  ;;  %1363 = vmatprep.subr.mxu1 %v3211_v25  ;;  %v4495_v24 = vld [vmem:[#allocation35_spill] sm:$0xff]  ;;  %v4496_v25 = vld [vmem:[#allocation36_spill] sm:$0xff] }
 0x2a7   : > { %1293 = vmatpush1.msra.mxu0 %v3217_v26  ;;  %1364 = vmatpush1.msra.mxu1 %v3219_v27  ;;  %v4497_v26 = vld [vmem:[#allocation37_spill] sm:$0xff]  ;;  %v4498_v27 = vld [vmem:[#allocation38_spill] sm:$0xff] }
 0x2a8   : > { %1294 = vmatprep.subr.mxu0 %v3226_v29  ;;  %1365 = vmatprep.subr.mxu1 %v3228_v30  ;;  %v4499_v29 = vld [vmem:[#allocation39_spill] sm:$0xff]  ;;  %v4500_v30 = vld [vmem:[#allocation40_spill] sm:$0xff] }
 0x2a9   : > { %1295 = vmatpush1.msra.mxu0 %v3232_v31  ;;  %1366 = vmatpush1.msra.mxu1 %v3234_v32  ;;  %v4501_v31 = vld [vmem:[#allocation41_spill] sm:$0xff]  ;;  %v4502_v32 = vld [vmem:[#allocation42_spill] sm:$0xff] }
 0x2aa   : > { %1296 = vmatprep.subr.mxu0 %v3238_v33  ;;  %1367 = vmatprep.subr.mxu1 %v3240_v34  ;;  %v4503_v33 = vmov 0.0   ;;  %v4504_v34 = vld [vmem:[#allocation43_spill] sm:$0xff] }
 0x2ab   : > { %1297 = vmatpush1.msra.mxu0 %v3246_v35  ;;  %1368 = vmatpush1.msra.mxu1 %v3248_v36  ;;  %v3721_v35 = vld [vmem:[#allocation10 + $0x1e8] sm:$0xff]  ;;  %v3724_v36 = vld [vmem:[#allocation10 + $0x1f8] sm:$0xff] }
 0x2ac   : > { %1298 = vmatprep.subr.mxu0 %v3255_v38  ;;  %1369 = vmatprep.subr.mxu1 %v3257_v39  ;;  %4505 = vst [vmem:[#allocation22_spill] sm:$0xff] %v3721_v35  ;;  %4506 = vst [vmem:[#allocation23_spill] sm:$0xff] %v3724_v36  ;;  %v4507_v39 = vld [vmem:[#allocation48_spill] sm:$0xff] }
 0x2ad   : > { %1299 = vmatpush1.msra.mxu0 %v3261_v40  ;;  %1370 = vmatpush1.msra.mxu1 %v3263_v41 }
 0x2ae   : > { %1300 = vmatprep.subr.mxu0 %v3267_v42  ;;  %1371 = vmatprep.subr.mxu1 %v3269_v43  ;;  %v4508_v43 = vld [vmem:[#allocation50_spill] sm:$0xff] }
 0x2af   : > { %1301 = vmatpush1.msra.mxu0 %v3275_v44  ;;  %1372 = vmatpush1.msra.mxu1 %v3277_v45 }
 0x2b0   : > { %1302 = vmatprep.subr.mxu0 %v3284_v47  ;;  %1373 = vmatprep.subr.mxu1 %v3286_v48 }
 0x2b1   : > { %1303 = vmatpush1.msra.mxu0 %v3290_v49  ;;  %1374 = vmatpush1.msra.mxu1 %v3292_v50  ;;  %v4509_v50 = vld [vmem:[#allocation49_spill] sm:$0xff] }
 0x2b2   : > { %1304 = vmatprep.subr.mxu0 %v3296_v51  ;;  %1375 = vmatprep.subr.mxu1 %v3298_v52 }
 0x2b3   : > { %1305 = vmatpush1.msra.mxu0 %v3304_v53  ;;  %1376 = vmatpush1.msra.mxu1 %v3306_v54  ;;  %v4510_v54 = vld [vmem:[#allocation51_spill] sm:$0xff] }
 0x2b4   : > { %1306 = vmatprep.subr.mxu0 %v3313_v56  ;;  %1377 = vmatprep.subr.mxu1 %v3315_v57 }
 0x2b5   : > { %1307 = vmatpush1.msra.mxu0 %v4456_v9  ;;  %1378 = vmatpush1.msra.mxu1 %v4457_v60 }
 0x2b6   : > { %1308 = vmatprep.subr.mxu0 %v4458_v5  ;;  %1379 = vmatprep.subr.mxu1 %v4485_v13  ;;  %v3760_v13 = vld [vmem:[#allocation10 + $0x1a8] sm:$0xff] }
 0x2b7   : > { %1309 = vmatpush1.msra.mxu0 %v4486_v14  ;;  %1380 = vmatpush1.msra.mxu1 %v4487_v15  ;;  %v3763_v14 = vld [vmem:[#allocation10 + $0x1b8] sm:$0xff]  ;;  %v3766_v15 = vld [vmem:[#allocation10 + $0x1a0] sm:$0xff] }
 0x2b8   : > { %1310 = vmatprep.subr.mxu0 %v4488_v16  ;;  %1381 = vmatprep.subr.mxu1 %v4489_v17 }
 0x2b9   : > { %1311 = vmatpush1.msra.mxu0 %v4490_v18  ;;  %1382 = vmatpush1.msra.mxu1 %v4491_v20 }
 0x2ba   : > { %1312 = vmatprep.subr.mxu0 %v4492_v21  ;;  %1383 = vmatprep.subr.mxu1 %v4493_v22 }
 0x2bb   : > { %1313 = vmatpush1.msra.mxu0 %v4494_v23  ;;  %1384 = vmatpush1.msra.mxu1 %v4495_v24 }
 0x2bc   : > { %1314 = vmatprep.subr.mxu0 %v4496_v25  ;;  %1385 = vmatprep.subr.mxu1 %v4497_v26 }
 0x2bd   : > { %1315 = vmatpush1.msra.mxu0 %v4498_v27  ;;  %1386 = vmatpush1.msra.mxu1 %v4499_v29 }
 0x2be   : > { %1316 = vmatprep.subr.mxu0 %v4500_v30  ;;  %1387 = vmatprep.subr.mxu1 %v4501_v31 }
 0x2bf   : > { %1317 = vmatpush1.msra.mxu0 %v4502_v32  ;;  %1350 = vmatprep.mubr.f32.mxu0 %v4503_v33 }
 0x2c0   : > { %1388 = vmatpush1.msra.mxu1 %v4504_v34  ;;  %1421 = vmatprep.mubr.f32.mxu1 %v4503_v33 }
 0x2c1   : > { %1470 = vmatprep.subr.mxu0 %v3721_v35  ;;  %1541 = vmatprep.subr.mxu1 %v3724_v36 }
 0x360   : > { %v1168_v38 = vpop.f32.mrf.mxu0  ;;  %v1239_v48 = vpop.f32.mrf.mxu1 }
 0x361   : > { %v1244_v40 = vadd.f32 %v1168_v38, %v4507_v39  ;;  %v1246_v51 = vadd.f32 %v1239_v48, %v4509_v50  ;;  %v3769_v38 = vld [vmem:[#allocation10 + $0x1b0] sm:$0xff]  ;;  %v3772_v39 = vld [vmem:[#allocation10 + $0x188] sm:$0xff]  ;;  %v3802_v50 = vld [vmem:[#allocation10 + $0x140] sm:$0xff] }
 0x362   : > { %v1170_v41 = vpop.f32.mrf.mxu0  ;;  %v1241_v53 = vpop.f32.mrf.mxu1  ;;  %v3796_v48 = vld [vmem:[#allocation10 + $0x148] sm:$0xff] }
 0x363   : > { %v1248_v42 = vsub.f32 0.0, %v1244_v40  ;;  %v1245_v44 = vadd.f32 %v1170_v41, %v4508_v43  ;;  %v1250_v52 = vsub.f32 0.0, %v1246_v51  ;;  %v1247_v56 = vadd.f32 %v1241_v53, %v4510_v54  ;;  %v3775_v40 = vld [vmem:[#allocation10 + $0x198] sm:$0xff]  ;;  %v3778_v41 = vld [vmem:[#allocation10 + $0x180] sm:$0xff]  ;;  %v3784_v43 = vld [vmem:[#allocation10 + $0x168] sm:$0xff] }
 0x364   : > { %v3805_v51 = vld [vmem:[#allocation10 + $0x150] sm:$0xff]  ;;  %v3811_v53 = vld [vmem:[#allocation10 + $0x138] sm:$0xff]  ;;  %v3814_v54 = vld [vmem:[#allocation10 + $0x120] sm:$0xff] }
 0x365   : > { %v1251_v45 = vmul.f32 1.442695, %v1248_v42  ;;  %v1249_v47 = vsub.f32 0.0, %v1245_v44  ;;  %v1255_v57 = vmul.f32 1.442695, %v1250_v52  ;;  %v3781_v42 = vld [vmem:[#allocation10 + $0x190] sm:$0xff] }
 0x366   : > { %v3787_v44 = vld [vmem:[#allocation10 + $0x178] sm:$0xff]  ;;  %v3808_v52 = vld [vmem:[#allocation10 + $0x128] sm:$0xff] }
 0x367   : > { %2574 = vpow2.f32 %v1251_v45  ;;  %v1253_v49 = vmul.f32 1.442695, %v1249_v47  ;;  %v3790_v45 = vld [vmem:[#allocation10 + $0x160] sm:$0xff]  ;;  %v3793_v47 = vld [vmem:[#allocation10 + $0x170] sm:$0xff] }
 0x369   : > { %2576 = vpow2.f32 %v1253_v49  ;;  %v3799_v49 = vld [vmem:[#allocation10 + $0x158] sm:$0xff] }
 0x36a   : > { %2578 = vtanh.f32 %v1247_v56  ;;  %v3817_v56 = vld [vmem:[#allocation10 + $0x130] sm:$0xff] }
 0x36b   : > { %2580 = vpow2.f32 %v1255_v57  ;;  %v3820_v57 = vld [vmem:[#allocation10 + $0x108] sm:$0xff] }
 0x374   : > { %v2575_v37 = vpop.eup %2574 }
 0x375   : > { %v1257_v59 = vadd.f32 1.0, %v2575_v37  ;;  %v3823_v37 = vld [vmem:[#allocation10 + $0x118] sm:$0xff] }
 0x376   : > { %v2577_v9 = vpop.eup %2576 }
 0x377   : > { %2582 = vrcp.f32 %v1257_v59  ;;  %v1258_v60 = vadd.f32 1.0, %v2577_v9  ;;  %v2579_v5 = vpop.eup %2578  ;;  %v3826_v59 = vld [vmem:[#allocation10 + $0x100] sm:$0xff]  ;;  %v3829_v9 = vld [vmem:[#allocation10 + $0x110] sm:$0xff] }
 0x378   : > { %v2581_v61 = vpop.eup %2580 }
 0x379   : > { %2584 = vrcp.f32 %v1258_v60  ;;  %v1259_v12 = vadd.f32 1.0, %v2581_v61  ;;  %v3832_v60 = vld [vmem:[#allocation10 + $0xe8] sm:$0xff]  ;;  %v3838_v61 = vld [vmem:[#allocation10 + $0xe0] sm:$0xff] }
 0x37b   : > { %2586 = vrcp.f32 %v1259_v12  ;;  %v3853_v12 = vld [vmem:[#allocation10 + $0xd0] sm:$0xff] }
 0x37c   : > { %4511 = vst [vmem:[#allocation24_spill] sm:$0xff] %v3853_v12 }
 0x384   : > { %v2583_v7 = vpop.eup %2582 }
 0x385   : > { %v1268_v6 = vmul.f32 %v2583_v7, %v2579_v5  ;;  %v3835_v5 = vld [vmem:[#allocation10 + $0xf8] sm:$0xff]  ;;  %v3841_v7 = vld [vmem:[#allocation10 + $0xf0] sm:$0xff] }
 0x386   : > { %v2585_v46 = vpop.eup %2584 }
 0x387   : > { %v1267_v28 = vmul.f32 %v2585_v46, %v3649_v2  ;;  %v3850_v46 = vld [vmem:[#allocation10 + $0xc0] sm:$0xff] }
 0x388   : > { %v2587_v4 = vpop.eup %2586 }
 0x389   : > { %v1269_v58 = vadd.f32 %v1268_v6, %v1267_v28  ;;  %v3844_v6 = vld [vmem:[#allocation10 + $0xc8] sm:$0xff] }
 0x38a   : > { %v3856_v28 = vld [vmem:[#allocation10 + $0xa8] sm:$0xff] }
 0x38b   : > { %2588 = vtanh.f32 %v1269_v58  ;;  %v3734_v62 = vsel %vm1278_vm3, %v1269_v58, %v3649_v2  ;;  %v3748_v2 = vld [vmem:[#allocation10 + $0x1c8] sm:$0xff]  ;;  %4512 = vst [vmem:[#allocation20_spill] sm:$0xff] %v3856_v28  ;;  %v3859_v58 = vld [vmem:[#allocation10 + $0xb8] sm:$0xff] }
 0x38c   : > { %4513 = vst [vmem:[#allocation21_spill] sm:$0xff] %v3859_v58 }
 0x398   : > { %v2589_v1 = vpop.eup %2588 }
 0x399   : > { %v1271_v0 = vmul.f32 %v2589_v1, %v2587_v4  ;;  %v3862_v4 = vld [vmem:[#allocation10 + $0xa0] sm:$0xff]  ;;  %v3865_v1 = vld [vmem:[#allocation10 + $0xb0] sm:$0xff] }
 0x39b   : > { %2422 = vst [vmem:[%s3164_s15 + $0x10] sm:$0xff] %v1271_v0  ;;  %v3738_v3 = vsel %vm1278_vm3, %v1271_v0, %v3653_v11  ;;  %v3757_v11 = vld [vmem:[#allocation10 + $0x1d0] sm:$0xff]  ;;  %v3868_v0 = vld [vmem:[#allocation10 + $0x88] sm:$0xff] }
 0x39c   : > { %1351 = vmatmul.mubr.f32.vlgmr.msra.gmra.mxu0 %v3738_v3  ;;  %1422 = vmatmul.mubr.f32.vlgmr.msra.gmra.mxu1 %v3738_v3 }
 0x39d   : > { %1471 = vmatpush1.msra.mxu0 %v3742_v19  ;;  %1542 = vmatpush1.msra.mxu1 %v3745_v63 }
 0x39e   : > { %1472 = vmatprep.subr.mxu0 %v3748_v2  ;;  %1543 = vmatprep.subr.mxu1 %v3751_v55 }
 0x39f   : > { %1473 = vmatpush1.msra.mxu0 %v3754_v10  ;;  %1544 = vmatpush1.msra.mxu1 %v3757_v11 }
 0x3a0   : > { %1474 = vmatprep.subr.mxu0 %v3760_v13  ;;  %1545 = vmatprep.subr.mxu1 %v3763_v14 }
 0x3a1   : > { %1475 = vmatpush1.msra.mxu0 %v3766_v15  ;;  %1546 = vmatpush1.msra.mxu1 %v3769_v38 }
 0x3a2   : > { %1476 = vmatprep.subr.mxu0 %v3772_v39  ;;  %1547 = vmatprep.subr.mxu1 %v3775_v40 }
 0x3a3   : > { %1477 = vmatpush1.msra.mxu0 %v3778_v41  ;;  %1548 = vmatpush1.msra.mxu1 %v3781_v42 }
 0x3a4   : > { %1478 = vmatprep.subr.mxu0 %v3784_v43  ;;  %1549 = vmatprep.subr.mxu1 %v3787_v44 }
 0x3a5   : > { %1479 = vmatpush1.msra.mxu0 %v3790_v45  ;;  %1550 = vmatpush1.msra.mxu1 %v3793_v47 }
 0x3a6   : > { %1480 = vmatprep.subr.mxu0 %v3796_v48  ;;  %1551 = vmatprep.subr.mxu1 %v3799_v49 }
 0x3a7   : > { %1481 = vmatpush1.msra.mxu0 %v3802_v50  ;;  %1552 = vmatpush1.msra.mxu1 %v3805_v51 }
 0x3a8   : > { %1482 = vmatprep.subr.mxu0 %v3808_v52  ;;  %1553 = vmatprep.subr.mxu1 %v3811_v53 }
 0x3a9   : > { %1483 = vmatpush1.msra.mxu0 %v3814_v54  ;;  %1554 = vmatpush1.msra.mxu1 %v3817_v56 }
 0x3aa   : > { %1484 = vmatprep.subr.mxu0 %v3820_v57  ;;  %1555 = vmatprep.subr.mxu1 %v3823_v37 }
 0x3ab   : > { %1485 = vmatpush1.msra.mxu0 %v3826_v59  ;;  %1556 = vmatpush1.msra.mxu1 %v3829_v9 }
 0x3ac   : > { %1486 = vmatprep.subr.mxu0 %v3832_v60  ;;  %1557 = vmatprep.subr.mxu1 %v3835_v5 }
 0x3ad   : > { %1487 = vmatpush1.msra.mxu0 %v3838_v61  ;;  %1558 = vmatpush1.msra.mxu1 %v3841_v7 }
 0x3ae   : > { %1488 = vmatprep.subr.mxu0 %v3844_v6  ;;  %1559 = vmatprep.subr.mxu1 %v3847_v8 }
 0x3af   : > { %1489 = vmatpush1.msra.mxu0 %v3850_v46  ;;  %1560 = vmatpush1.msra.mxu1 %v3853_v12  ;;  %v3871_v12 = vld [vmem:[#allocation10 + $0x98] sm:$0xff] }
 0x3b0   : > { %1490 = vmatprep.subr.mxu0 %v3856_v28  ;;  %1561 = vmatprep.subr.mxu1 %v3859_v58  ;;  %4514 = vst [vmem:[#allocation44_spill] sm:$0xff] %v3871_v12  ;;  %v3874_v28 = vld [vmem:[#allocation10 + $0x80] sm:$0xff]  ;;  %v3877_v58 = vld [vmem:[#allocation10 + $0x90] sm:$0xff] }
 0x3b1   : > { %1491 = vmatpush1.msra.mxu0 %v3862_v4  ;;  %1562 = vmatpush1.msra.mxu1 %v3865_v1  ;;  %4515 = vst [vmem:[#allocation46_spill] sm:$0xff] %v3874_v28  ;;  %4516 = vst [vmem:[#allocation45_spill] sm:$0xff] %v3877_v58 }
 0x3b2   : > { %1492 = vmatprep.subr.mxu0 %v3868_v0  ;;  %1563 = vmatprep.subr.mxu1 %v3871_v12 }
 0x3b3   : > { %1493 = vmatpush1.msra.mxu0 %v3874_v28  ;;  %1564 = vmatpush1.msra.mxu1 %v3877_v58 }
 0x3b4   : > { %1494 = vmatprep.subr.mxu0 %v4488_v16  ;;  %1565 = vmatprep.subr.mxu1 %v4489_v17  ;;  %v4517_v17 = vld [vmem:[#allocation52_spill] sm:$0xff] }
 0x3b5   : > { %1495 = vmatpush1.msra.mxu0 %v4490_v18  ;;  %1566 = vmatpush1.msra.mxu1 %v4491_v20 }
 0x3b6   : > { %1496 = vmatprep.subr.mxu0 %v4492_v21  ;;  %1567 = vmatprep.subr.mxu1 %v4493_v22  ;;  %v4518_v22 = vld [vmem:[#allocation54_spill] sm:$0xff] }
 0x3b7   : > { %1497 = vmatpush1.msra.mxu0 %v4494_v23  ;;  %1568 = vmatpush1.msra.mxu1 %v4495_v24 }
 0x3b8   : > { %1498 = vmatprep.subr.mxu0 %v4496_v25  ;;  %1569 = vmatprep.subr.mxu1 %v4497_v26 }
 0x3b9   : > { %1499 = vmatpush1.msra.mxu0 %v4498_v27  ;;  %1570 = vmatpush1.msra.mxu1 %v4499_v29  ;;  %v4519_v29 = vld [vmem:[#allocation53_spill] sm:$0xff] }
 0x3ba   : > { %1500 = vmatprep.subr.mxu0 %v4500_v30  ;;  %1571 = vmatprep.subr.mxu1 %v4501_v31 }
 0x3bb   : > { %1501 = vmatpush1.msra.mxu0 %v4502_v32  ;;  %1534 = vmatprep.mubr.f32.mxu0 %v4503_v33 }
 0x3bc   : > { %1572 = vmatpush1.msra.mxu1 %v4504_v34  ;;  %1605 = vmatprep.mubr.f32.mxu1 %v4503_v33  ;;  %v4520_v34 = vld [vmem:[#allocation55_spill] sm:$0xff] }
 0x3bd   : > { %1654 = vmatprep.subr.mxu0 %v3721_v35  ;;  %1725 = vmatprep.subr.mxu1 %v3724_v36 }
 0x45c   : > { %v1352_v16 = vpop.f32.mrf.mxu0  ;;  %v1423_v26 = vpop.f32.mrf.mxu1 }
 0x45d   : > { %v1428_v18 = vadd.f32 %v1352_v16, %v4517_v17  ;;  %v1430_v30 = vadd.f32 %v1423_v26, %v4519_v29 }
 0x45e   : > { %v1354_v20 = vpop.f32.mrf.mxu0  ;;  %v1425_v32 = vpop.f32.mrf.mxu1 }
 0x45f   : > { %v1432_v21 = vsub.f32 0.0, %v1428_v18  ;;  %v1429_v23 = vadd.f32 %v1354_v20, %v4518_v22  ;;  %v1434_v31 = vsub.f32 0.0, %v1430_v30  ;;  %v1431_v36 = vadd.f32 %v1425_v32, %v4520_v34  ;;  %v4523_v32 = vld [vmem:[#allocation21_spill] sm:$0xff]  ;;  %v3961_v34 = vld [vmem:[#allocation10 + $0x68] sm:$0xff] }
 0x460   : > { %4524 = vst [vmem:[#allocation47_spill] sm:$0xff] %v3961_v34 }
 0x461   : > { %v1435_v24 = vmul.f32 1.442695, %v1432_v21  ;;  %v1433_v25 = vsub.f32 0.0, %v1429_v23  ;;  %v1439_v35 = vmul.f32 1.442695, %v1434_v31 }
 0x463   : > { %2590 = vpow2.f32 %v1435_v24  ;;  %v1437_v27 = vmul.f32 1.442695, %v1433_v25  ;;  %v1461_v24 = vstv %s1460_s17 }
 0x464   : > { %vm1462_vm4 = vcmp.eq.s32.totalorder %v1461_v24, 1  ;;  %v3985_v24 = vld [vmem:[#allocation10 + $0x28] sm:$0xff] }
 0x465   : > { %2592 = vpow2.f32 %v1437_v27  ;;  %4532 = vst [vmem:[#allocation32_spill] sm:$0xff] %v3985_v24 }
 0x466   : > { %2594 = vtanh.f32 %v1431_v36 }
 0x467   : > { %2596 = vpow2.f32 %v1439_v35 }
 0x470   : > { %v2591_v33 = vpop.eup %2590 }
 0x471   : > { %v1441_v16 = vadd.f32 1.0, %v2591_v33 }
 0x472   : > { %v2593_v17 = vpop.eup %2592 }
 0x473   : > { %2598 = vrcp.f32 %v1441_v16  ;;  %v1442_v18 = vadd.f32 1.0, %v2593_v17  ;;  %v2595_v20 = vpop.eup %2594  ;;  %v3964_v16 = vld [vmem:[#allocation10 + $0x78] sm:$0xff]  ;;  %v3967_v17 = vld [vmem:[#allocation10 + $0x60] sm:$0xff] }
 0x474   : > { %v2597_v21 = vpop.eup %2596  ;;  %4525 = vst [vmem:[#allocation25_spill] sm:$0xff] %v3964_v16  ;;  %4526 = vst [vmem:[#allocation26_spill] sm:$0xff] %v3967_v17 }
 0x475   : > { %2600 = vrcp.f32 %v1442_v18  ;;  %v1443_v26 = vadd.f32 1.0, %v2597_v21  ;;  %v3970_v18 = vld [vmem:[#allocation10 + $0x70] sm:$0xff]  ;;  %v3976_v21 = vld [vmem:[#allocation10 + $0x58] sm:$0xff] }
 0x476   : > { %4527 = vst [vmem:[#allocation27_spill] sm:$0xff] %v3970_v18  ;;  %4529 = vst [vmem:[#allocation29_spill] sm:$0xff] %v3976_v21 }
 0x477   : > { %2602 = vrcp.f32 %v1443_v26  ;;  %v3991_v26 = vld [vmem:[#allocation10 + $0x20] sm:$0xff] }
 0x478   : > { %4534 = vst [vmem:[#allocation34_spill] sm:$0xff] %v3991_v26 }
 0x480   : > { %v2599_v22 = vpop.eup %2598 }
 0x481   : > { %v1452_v23 = vmul.f32 %v2599_v22, %v2595_v20  ;;  %v3973_v20 = vld [vmem:[#allocation10 + $0x48] sm:$0xff]  ;;  %v3979_v22 = vld [vmem:[#allocation10 + $0x40] sm:$0xff] }
 0x482   : > { %v2601_v25 = vpop.eup %2600  ;;  %4528 = vst [vmem:[#allocation28_spill] sm:$0xff] %v3973_v20  ;;  %4530 = vst [vmem:[#allocation30_spill] sm:$0xff] %v3979_v22 }
 0x483   : > { %v1451_v27 = vmul.f32 %v2601_v25, %v3734_v62  ;;  %v3988_v25 = vld [vmem:[#allocation10 + $0x38] sm:$0xff] }
 0x484   : > { %v2603_v36 = vpop.eup %2602  ;;  %4533 = vst [vmem:[#allocation33_spill] sm:$0xff] %v3988_v25 }
 0x485   : > { %v1453_v33 = vadd.f32 %v1452_v23, %v1451_v27  ;;  %v3982_v23 = vld [vmem:[#allocation10 + $0x50] sm:$0xff] }
 0x486   : > { %4531 = vst [vmem:[#allocation31_spill] sm:$0xff] %v3982_v23  ;;  %v3994_v27 = vld [vmem:[#allocation10 + $0x30] sm:$0xff] }
 0x487   : > { %2604 = vtanh.f32 %v1453_v33  ;;  %v3907_v35 = vsel %vm1462_vm4, %v1453_v33, %v3734_v62  ;;  %v4521_v62 = vld [vmem:[#allocation24_spill] sm:$0xff]  ;;  %4535 = vst [vmem:[#allocation35_spill] sm:$0xff] %v3994_v27  ;;  %v3997_v33 = vld [vmem:[#allocation10 + $0x8] sm:$0xff] }
 0x488   : > { %4536 = vst [vmem:[#allocation36_spill] sm:$0xff] %v3997_v33 }
 0x494   : > { %v2605_v29 = vpop.eup %2604 }
 0x495   : > { %v1455_v30 = vmul.f32 %v2605_v29, %v2603_v36  ;;  %v4000_v36 = vld [vmem:[#allocation10 + $0x18] sm:$0xff]  ;;  %v4003_v29 = vld [vmem:[#allocation10] sm:$0xff] }
 0x496   : > { %4537 = vst [vmem:[#allocation37_spill] sm:$0xff] %v4000_v36  ;;  %4538 = vst [vmem:[#allocation38_spill] sm:$0xff] %v4003_v29 }
 0x497   : > { %2423 = vst [vmem:[%s3164_s15 + $0x18] sm:$0xff] %v1455_v30  ;;  %v3911_v31 = vsel %vm1462_vm4, %v1455_v30, %v3738_v3  ;;  %v4522_v3 = vld [vmem:[#allocation20_spill] sm:$0xff]  ;;  %v4539_v30 = vmov 0.0  }
 0x498   : > { %1535 = vmatmul.mubr.f32.vlgmr.msra.gmra.mxu0 %v3911_v31  ;;  %1606 = vmatmul.mubr.f32.vlgmr.msra.gmra.mxu1 %v3911_v31 }
 0x499   : > { %1655 = vmatpush1.msra.mxu0 %v3742_v19  ;;  %1726 = vmatpush1.msra.mxu1 %v3745_v63 }
 0x49a   : > { %1656 = vmatprep.subr.mxu0 %v3748_v2  ;;  %1727 = vmatprep.subr.mxu1 %v3751_v55 }
 0x49b   : > { %1657 = vmatpush1.msra.mxu0 %v3754_v10  ;;  %1728 = vmatpush1.msra.mxu1 %v3757_v11 }
 0x49c   : > { %1658 = vmatprep.subr.mxu0 %v3760_v13  ;;  %1729 = vmatprep.subr.mxu1 %v3763_v14 }
 0x49d   : > { %1659 = vmatpush1.msra.mxu0 %v3766_v15  ;;  %1730 = vmatpush1.msra.mxu1 %v3769_v38 }
 0x49e   : > { %1660 = vmatprep.subr.mxu0 %v3772_v39  ;;  %1731 = vmatprep.subr.mxu1 %v3775_v40 }
 0x49f   : > { %1661 = vmatpush1.msra.mxu0 %v3778_v41  ;;  %1732 = vmatpush1.msra.mxu1 %v3781_v42 }
 0x4a0   : > { %1662 = vmatprep.subr.mxu0 %v3784_v43  ;;  %1733 = vmatprep.subr.mxu1 %v3787_v44 }
 0x4a1   : > { %1663 = vmatpush1.msra.mxu0 %v3790_v45  ;;  %1734 = vmatpush1.msra.mxu1 %v3793_v47 }
 0x4a2   : > { %1664 = vmatprep.subr.mxu0 %v3796_v48  ;;  %1735 = vmatprep.subr.mxu1 %v3799_v49 }
 0x4a3   : > { %1665 = vmatpush1.msra.mxu0 %v3802_v50  ;;  %1736 = vmatpush1.msra.mxu1 %v3805_v51 }
 0x4a4   : > { %1666 = vmatprep.subr.mxu0 %v3808_v52  ;;  %1737 = vmatprep.subr.mxu1 %v3811_v53 }
 0x4a5   : > { %1667 = vmatpush1.msra.mxu0 %v3814_v54  ;;  %1738 = vmatpush1.msra.mxu1 %v3817_v56 }
 0x4a6   : > { %1668 = vmatprep.subr.mxu0 %v3820_v57  ;;  %1739 = vmatprep.subr.mxu1 %v3823_v37 }
 0x4a7   : > { %1669 = vmatpush1.msra.mxu0 %v3826_v59  ;;  %1740 = vmatpush1.msra.mxu1 %v3829_v9 }
 0x4a8   : > { %1670 = vmatprep.subr.mxu0 %v3832_v60  ;;  %1741 = vmatprep.subr.mxu1 %v3835_v5 }
 0x4a9   : > { %1671 = vmatpush1.msra.mxu0 %v3838_v61  ;;  %1742 = vmatpush1.msra.mxu1 %v3841_v7 }
 0x4aa   : > { %1672 = vmatprep.subr.mxu0 %v3844_v6  ;;  %1743 = vmatprep.subr.mxu1 %v3847_v8 }
 0x4ab   : > { %1673 = vmatpush1.msra.mxu0 %v3850_v46  ;;  %1744 = vmatpush1.msra.mxu1 %v4521_v62 }
 0x4ac   : > { %1674 = vmatprep.subr.mxu0 %v4522_v3  ;;  %1745 = vmatprep.subr.mxu1 %v4523_v32 }
 0x4ad   : > { %1675 = vmatpush1.msra.mxu0 %v3862_v4  ;;  %1746 = vmatpush1.msra.mxu1 %v3865_v1 }
 0x4ae   : > { %1676 = vmatprep.subr.mxu0 %v3868_v0  ;;  %1747 = vmatprep.subr.mxu1 %v3871_v12 }
 0x4af   : > { %1677 = vmatpush1.msra.mxu0 %v3874_v28  ;;  %1748 = vmatpush1.msra.mxu1 %v3877_v58  ;;  %v4546_v58 = vld [vmem:[#allocation59_spill] sm:$0xff] }
 0x4b0   : > { %1678 = vmatprep.subr.mxu0 %v3961_v34  ;;  %1749 = vmatprep.subr.mxu1 %v3964_v16 }
 0x4b1   : > { %1679 = vmatpush1.msra.mxu0 %v3967_v17  ;;  %1750 = vmatpush1.msra.mxu1 %v3970_v18 }
 0x4b2   : > { %1680 = vmatprep.subr.mxu0 %v3973_v20  ;;  %1751 = vmatprep.subr.mxu1 %v3976_v21  ;;  %v4544_v21 = vld [vmem:[#allocation58_spill] sm:$0xff] }
 0x4b3   : > { %1681 = vmatpush1.msra.mxu0 %v3979_v22  ;;  %1752 = vmatpush1.msra.mxu1 %v3982_v23 }
 0x4b4   : > { %1682 = vmatprep.subr.mxu0 %v3985_v24  ;;  %1753 = vmatprep.subr.mxu1 %v3988_v25  ;;  %v4007_v25 = vld [vmem:[#allocation10 + $0x10] sm:$0xff] }
 0x4b5   : > { %1683 = vmatpush1.msra.mxu0 %v3991_v26  ;;  %1754 = vmatpush1.msra.mxu1 %v3994_v27  ;;  %4540 = vst [vmem:[#allocation39_spill] sm:$0xff] %v4007_v25  ;;  %v4541_v27 = vld [vmem:[#allocation22_spill] sm:$0xff]  ;;  %v4542_v26 = vld [vmem:[#allocation23_spill] sm:$0xff]  ;;  %v4543_v24 = vld [vmem:[#allocation56_spill] sm:$0xff] }
 0x4b6   : > { %1684 = vmatprep.subr.mxu0 %v3997_v33  ;;  %1755 = vmatprep.subr.mxu1 %v4000_v36 }
 0x4b7   : > { %1685 = vmatpush1.msra.mxu0 %v4003_v29  ;;  %1718 = vmatprep.mubr.f32.mxu0 %v4539_v30 }
 0x4b8   : > { %1756 = vmatpush1.msra.mxu1 %v4007_v25  ;;  %1789 = vmatprep.mubr.f32.mxu1 %v4539_v30  ;;  %v4545_v25 = vld [vmem:[#allocation57_spill] sm:$0xff] }
 0x4b9   : > { %1838 = vmatprep.subr.mxu0 %v4541_v27  ;;  %1909 = vmatprep.subr.mxu1 %v4542_v26 }
 0x558   : > { %v1536_v33 = vpop.f32.mrf.mxu0  ;;  %v1607_v17 = vpop.f32.mrf.mxu1 }
 0x559   : > { %v1612_v23 = vadd.f32 %v1536_v33, %v4543_v24  ;;  %v1614_v30 = vadd.f32 %v1607_v17, %v4545_v25 }
 0x55a   : > { %v1538_v36 = vpop.f32.mrf.mxu0  ;;  %v1609_v27 = vpop.f32.mrf.mxu1 }
 0x55b   : > { %v1616_v22 = vsub.f32 0.0, %v1612_v23  ;;  %v1613_v20 = vadd.f32 %v1538_v36, %v4544_v21  ;;  %v1618_v34 = vsub.f32 0.0, %v1614_v30  ;;  %v1615_v26 = vadd.f32 %v1609_v27, %v4546_v58  ;;  %v4550_v30 = vld [vmem:[#allocation47_spill] sm:$0xff] }
 0x55d   : > { %v1619_v29 = vmul.f32 1.442695, %v1616_v22  ;;  %v1617_v18 = vsub.f32 0.0, %v1613_v20  ;;  %v1623_v28 = vmul.f32 1.442695, %v1618_v34  ;;  %v1645_v22 = vstv %s1644_s28 }
 0x55e   : > { %vm1646_vm5 = vcmp.eq.s32.totalorder %v1645_v22, 1  ;;  %v4558_v22 = vld [vmem:[#allocation32_spill] sm:$0xff] }
 0x55f   : > { %2606 = vpow2.f32 %v1619_v29  ;;  %v1621_v16 = vmul.f32 1.442695, %v1617_v18  ;;  %v4549_v29 = vld [vmem:[#allocation45_spill] sm:$0xff] }
 0x561   : > { %2608 = vpow2.f32 %v1621_v16 }
 0x562   : > { %2610 = vtanh.f32 %v1615_v26 }
 0x563   : > { %2612 = vpow2.f32 %v1623_v28 }
 0x56c   : > { %v2607_v12 = vpop.eup %2606 }
 0x56d   : > { %v1625_v24 = vadd.f32 1.0, %v2607_v12 }
 0x56e   : > { %v2609_v23 = vpop.eup %2608 }
 0x56f   : > { %2614 = vrcp.f32 %v1625_v24  ;;  %v1626_v21 = vadd.f32 1.0, %v2609_v23  ;;  %v2611_v18 = vpop.eup %2610  ;;  %v4551_v24 = vld [vmem:[#allocation25_spill] sm:$0xff]  ;;  %v4552_v23 = vld [vmem:[#allocation26_spill] sm:$0xff] }
 0x570   : > { %v2613_v16 = vpop.eup %2612 }
 0x571   : > { %2616 = vrcp.f32 %v1626_v21  ;;  %v1627_v58 = vadd.f32 1.0, %v2613_v16  ;;  %v4553_v21 = vld [vmem:[#allocation27_spill] sm:$0xff]  ;;  %v4555_v16 = vld [vmem:[#allocation29_spill] sm:$0xff] }
 0x573   : > { %2618 = vrcp.f32 %v1627_v58  ;;  %v4560_v58 = vld [vmem:[#allocation34_spill] sm:$0xff] }
 0x57c   : > { %v2615_v17 = vpop.eup %2614 }
 0x57d   : > { %v1636_v20 = vmul.f32 %v2615_v17, %v2611_v18  ;;  %v4554_v18 = vld [vmem:[#allocation28_spill] sm:$0xff]  ;;  %v4556_v17 = vld [vmem:[#allocation30_spill] sm:$0xff] }
 0x57e   : > { %v2617_v25 = vpop.eup %2616 }
 0x57f   : > { %v1635_v34 = vmul.f32 %v2617_v25, %v3907_v35  ;;  %v4559_v25 = vld [vmem:[#allocation33_spill] sm:$0xff] }
 0x580   : > { %v2619_v26 = vpop.eup %2618 }
 0x581   : > { %v1637_v12 = vadd.f32 %v1636_v20, %v1635_v34  ;;  %v4557_v20 = vld [vmem:[#allocation31_spill] sm:$0xff] }
 0x582   : > { %v4561_v34 = vld [vmem:[#allocation35_spill] sm:$0xff] }
 0x583   : > { %2620 = vtanh.f32 %v1637_v12  ;;  %v4020_v28 = vsel %vm1646_vm5, %v1637_v12, %v3907_v35  ;;  %v4547_v35 = vld [vmem:[#allocation44_spill] sm:$0xff] }
 0x584   : > { %v4562_v12 = vld [vmem:[#allocation36_spill] sm:$0xff] }
 0x590   : > { %v2621_v27 = vpop.eup %2620 }
 0x591   : > { %v1639_v33 = vmul.f32 %v2621_v27, %v2619_v26  ;;  %v4563_v26 = vld [vmem:[#allocation37_spill] sm:$0xff]  ;;  %v4564_v27 = vld [vmem:[#allocation38_spill] sm:$0xff] }
 0x593   : > { %2424 = vst [vmem:[%s3164_s15 + $0x20] sm:$0xff] %v1639_v33  ;;  %v4024_v36 = vsel %vm1646_vm5, %v1639_v33, %v3911_v31  ;;  %v4548_v31 = vld [vmem:[#allocation46_spill] sm:$0xff]  ;;  %v4565_v33 = vmov 0.0  }
 0x594   : > { %1719 = vmatmul.mubr.f32.vlgmr.msra.gmra.mxu0 %v4024_v36  ;;  %1790 = vmatmul.mubr.f32.vlgmr.msra.gmra.mxu1 %v4024_v36 }
 0x595   : > { %1839 = vmatpush1.msra.mxu0 %v3742_v19  ;;  %1910 = vmatpush1.msra.mxu1 %v3745_v63 }
 0x596   : > { %1840 = vmatprep.subr.mxu0 %v3748_v2  ;;  %1911 = vmatprep.subr.mxu1 %v3751_v55 }
 0x597   : > { %1841 = vmatpush1.msra.mxu0 %v3754_v10  ;;  %1912 = vmatpush1.msra.mxu1 %v3757_v11 }
 0x598   : > { %1842 = vmatprep.subr.mxu0 %v3760_v13  ;;  %1913 = vmatprep.subr.mxu1 %v3763_v14 }
 0x599   : > { %1843 = vmatpush1.msra.mxu0 %v3766_v15  ;;  %1914 = vmatpush1.msra.mxu1 %v3769_v38 }
 0x59a   : > { %1844 = vmatprep.subr.mxu0 %v3772_v39  ;;  %1915 = vmatprep.subr.mxu1 %v3775_v40 }
 0x59b   : > { %1845 = vmatpush1.msra.mxu0 %v3778_v41  ;;  %1916 = vmatpush1.msra.mxu1 %v3781_v42 }
 0x59c   : > { %1846 = vmatprep.subr.mxu0 %v3784_v43  ;;  %1917 = vmatprep.subr.mxu1 %v3787_v44 }
 0x59d   : > { %1847 = vmatpush1.msra.mxu0 %v3790_v45  ;;  %1918 = vmatpush1.msra.mxu1 %v3793_v47 }
 0x59e   : > { %1848 = vmatprep.subr.mxu0 %v3796_v48  ;;  %1919 = vmatprep.subr.mxu1 %v3799_v49 }
 0x59f   : > { %1849 = vmatpush1.msra.mxu0 %v3802_v50  ;;  %1920 = vmatpush1.msra.mxu1 %v3805_v51 }
 0x5a0   : > { %1850 = vmatprep.subr.mxu0 %v3808_v52  ;;  %1921 = vmatprep.subr.mxu1 %v3811_v53 }
 0x5a1   : > { %1851 = vmatpush1.msra.mxu0 %v3814_v54  ;;  %1922 = vmatpush1.msra.mxu1 %v3817_v56 }
 0x5a2   : > { %1852 = vmatprep.subr.mxu0 %v3820_v57  ;;  %1923 = vmatprep.subr.mxu1 %v3823_v37 }
 0x5a3   : > { %1853 = vmatpush1.msra.mxu0 %v3826_v59  ;;  %1924 = vmatpush1.msra.mxu1 %v3829_v9 }
 0x5a4   : > { %1854 = vmatprep.subr.mxu0 %v3832_v60  ;;  %1925 = vmatprep.subr.mxu1 %v3835_v5 }
 0x5a5   : > { %1855 = vmatpush1.msra.mxu0 %v3838_v61  ;;  %1926 = vmatpush1.msra.mxu1 %v3841_v7 }
 0x5a6   : > { %1856 = vmatprep.subr.mxu0 %v3844_v6  ;;  %1927 = vmatprep.subr.mxu1 %v3847_v8 }
 0x5a7   : > { %1857 = vmatpush1.msra.mxu0 %v3850_v46  ;;  %1928 = vmatpush1.msra.mxu1 %v4521_v62 }
 0x5a8   : > { %1858 = vmatprep.subr.mxu0 %v4522_v3  ;;  %1929 = vmatprep.subr.mxu1 %v4523_v32 }
 0x5a9   : > { %1859 = vmatpush1.msra.mxu0 %v3862_v4  ;;  %1930 = vmatpush1.msra.mxu1 %v3865_v1 }
 0x5aa   : > { %1860 = vmatprep.subr.mxu0 %v3868_v0  ;;  %1931 = vmatprep.subr.mxu1 %v4547_v35 }
 0x5ab   : > { %1861 = vmatpush1.msra.mxu0 %v4548_v31  ;;  %1932 = vmatpush1.msra.mxu1 %v4549_v29  ;;  %v4572_v29 = vld [vmem:[#allocation63_spill] sm:$0xff] }
 0x5ac   : > { %1862 = vmatprep.subr.mxu0 %v4550_v30  ;;  %1933 = vmatprep.subr.mxu1 %v4551_v24 }
 0x5ad   : > { %1863 = vmatpush1.msra.mxu0 %v4552_v23  ;;  %1934 = vmatpush1.msra.mxu1 %v4553_v21 }
 0x5ae   : > { %1864 = vmatprep.subr.mxu0 %v4554_v18  ;;  %1935 = vmatprep.subr.mxu1 %v4555_v16  ;;  %v4566_v16 = vld [vmem:[#allocation39_spill] sm:$0xff] }
 0x5af   : > { %1865 = vmatpush1.msra.mxu0 %v4556_v17  ;;  %1936 = vmatpush1.msra.mxu1 %v4557_v20  ;;  %v4567_v20 = vld [vmem:[#allocation22_spill] sm:$0xff] }
 0x5b0   : > { %1866 = vmatprep.subr.mxu0 %v4558_v22  ;;  %1937 = vmatprep.subr.mxu1 %v4559_v25  ;;  %v4568_v22 = vld [vmem:[#allocation23_spill] sm:$0xff] }
 0x5b1   : > { %1867 = vmatpush1.msra.mxu0 %v4560_v58  ;;  %1938 = vmatpush1.msra.mxu1 %v4561_v34  ;;  %v4569_v58 = vld [vmem:[#allocation60_spill] sm:$0xff] }
 0x5b2   : > { %1868 = vmatprep.subr.mxu0 %v4562_v12  ;;  %1939 = vmatprep.subr.mxu1 %v4563_v26  ;;  %v4570_v12 = vld [vmem:[#allocation62_spill] sm:$0xff] }
 0x5b3   : > { %1869 = vmatpush1.msra.mxu0 %v4564_v27  ;;  %1902 = vmatprep.mubr.f32.mxu0 %v4565_v33 }
 0x5b4   : > { %1940 = vmatpush1.msra.mxu1 %v4566_v16  ;;  %1973 = vmatprep.mubr.f32.mxu1 %v4565_v33  ;;  %v4571_v16 = vld [vmem:[#allocation61_spill] sm:$0xff] }
 0x5b5   : > { %2022 = vmatprep.subr.mxu0 %v4567_v20  ;;  %2093 = vmatprep.subr.mxu1 %v4568_v22 }
 0x654   : > { %v1720_v25 = vpop.f32.mrf.mxu0  ;;  %v1791_v27 = vpop.f32.mrf.mxu1 }
 0x655   : > { %v1796_v17 = vadd.f32 %v1720_v25, %v4569_v58  ;;  %v1798_v33 = vadd.f32 %v1791_v27, %v4571_v16  ;;  %v1829_v58 = vstv %s1828_s8 }
 0x656   : > { %v1722_v34 = vpop.f32.mrf.mxu0  ;;  %v1793_v20 = vpop.f32.mrf.mxu1  ;;  %vm1830_vm6 = vcmp.eq.s32.totalorder %v1829_v58, 1 }
 0x657   : > { %v1800_v18 = vsub.f32 0.0, %v1796_v17  ;;  %v1797_v21 = vadd.f32 %v1722_v34, %v4570_v12  ;;  %v1802_v30 = vsub.f32 0.0, %v1798_v33  ;;  %v1799_v22 = vadd.f32 %v1793_v20, %v4572_v29 }
 0x659   : > { %v1803_v26 = vmul.f32 1.442695, %v1800_v18  ;;  %v1801_v23 = vsub.f32 0.0, %v1797_v21  ;;  %v1807_v31 = vmul.f32 1.442695, %v1802_v30 }
 0x65b   : > { %2622 = vpow2.f32 %v1803_v26  ;;  %v1805_v24 = vmul.f32 1.442695, %v1801_v23 }
 0x65d   : > { %2624 = vpow2.f32 %v1805_v24 }
 0x65e   : > { %2626 = vtanh.f32 %v1799_v22  ;;  %v2013_v22 = vstv %s2012_s19 }
 0x65f   : > { %2628 = vpow2.f32 %v1807_v31  ;;  %vm2014_vm7 = vcmp.eq.s32.totalorder %v2013_v22, 1 }
 0x668   : > { %v2623_v35 = vpop.eup %2622 }
 0x669   : > { %v1809_v25 = vadd.f32 1.0, %v2623_v35 }
 0x66a   : > { %v2625_v17 = vpop.eup %2624 }
 0x66b   : > { %2630 = vrcp.f32 %v1809_v25  ;;  %v1810_v18 = vadd.f32 1.0, %v2625_v17  ;;  %v2627_v23 = vpop.eup %2626 }
 0x66c   : > { %v2629_v24 = vpop.eup %2628 }
 0x66d   : > { %2632 = vrcp.f32 %v1810_v18  ;;  %v1811_v29 = vadd.f32 1.0, %v2629_v24 }
 0x66f   : > { %2634 = vrcp.f32 %v1811_v29 }
 0x678   : > { %v2631_v21 = vpop.eup %2630 }
 0x679   : > { %v1820_v16 = vmul.f32 %v2631_v21, %v2627_v23 }
 0x67a   : > { %v2633_v34 = vpop.eup %2632 }
 0x67b   : > { %v1819_v30 = vmul.f32 %v2633_v34, %v4020_v28 }
 0x67c   : > { %v2635_v12 = vpop.eup %2634 }
 0x67d   : > { %v1821_v35 = vadd.f32 %v1820_v16, %v1819_v30  ;;  %v4597_v30 = vld [vmem:[#allocation68_spill] sm:$0xff] }
 0x67f   : > { %2636 = vtanh.f32 %v1821_v35  ;;  %v4101_v31 = vsel %vm1830_vm6, %v1821_v35, %v4020_v28 }
 0x68c   : > { %v2637_v26 = vpop.eup %2636 }
 0x68d   : > { %v1823_v27 = vmul.f32 %v2637_v26, %v2635_v12 }
 0x68f   : > { %2425 = vst [vmem:[%s3164_s15 + $0x28] sm:$0xff] %v1823_v27  ;;  %v4105_v33 = vsel %vm1830_vm6, %v1823_v27, %v4024_v36  ;;  %v4598_v27 = vld [vmem:[#allocation70_spill] sm:$0xff] }
 0x690   : > { %1903 = vmatmul.mubr.f32.vlgmr.msra.gmra.mxu0 %v4105_v33  ;;  %1974 = vmatmul.mubr.f32.vlgmr.msra.gmra.mxu1 %v4105_v33 }
 0x691   : > { %2023 = vmatpush1.msra.mxu0 %v3742_v19  ;;  %2094 = vmatpush1.msra.mxu1 %v3745_v63  ;;  %v4573_v19 = vld [vmem:[#allocation44_spill] sm:$0xff]  ;;  %v4574_v63 = vld [vmem:[#allocation46_spill] sm:$0xff] }
 0x692   : > { %2024 = vmatprep.subr.mxu0 %v3748_v2  ;;  %2095 = vmatprep.subr.mxu1 %v3751_v55  ;;  %v4575_v2 = vld [vmem:[#allocation45_spill] sm:$0xff]  ;;  %v4576_v55 = vld [vmem:[#allocation47_spill] sm:$0xff] }
 0x693   : > { %2025 = vmatpush1.msra.mxu0 %v3754_v10  ;;  %2096 = vmatpush1.msra.mxu1 %v3757_v11  ;;  %v4577_v10 = vld [vmem:[#allocation25_spill] sm:$0xff]  ;;  %v4578_v11 = vld [vmem:[#allocation26_spill] sm:$0xff] }
 0x694   : > { %2026 = vmatprep.subr.mxu0 %v3760_v13  ;;  %2097 = vmatprep.subr.mxu1 %v3763_v14  ;;  %v4579_v13 = vld [vmem:[#allocation27_spill] sm:$0xff]  ;;  %v4580_v14 = vld [vmem:[#allocation28_spill] sm:$0xff] }
 0x695   : > { %2027 = vmatpush1.msra.mxu0 %v3766_v15  ;;  %2098 = vmatpush1.msra.mxu1 %v3769_v38  ;;  %v4581_v15 = vld [vmem:[#allocation29_spill] sm:$0xff]  ;;  %v4582_v38 = vld [vmem:[#allocation30_spill] sm:$0xff] }
 0x696   : > { %2028 = vmatprep.subr.mxu0 %v3772_v39  ;;  %2099 = vmatprep.subr.mxu1 %v3775_v40  ;;  %v4583_v39 = vld [vmem:[#allocation31_spill] sm:$0xff]  ;;  %v4584_v40 = vld [vmem:[#allocation32_spill] sm:$0xff] }
 0x697   : > { %2029 = vmatpush1.msra.mxu0 %v3778_v41  ;;  %2100 = vmatpush1.msra.mxu1 %v3781_v42  ;;  %v4585_v41 = vld [vmem:[#allocation33_spill] sm:$0xff]  ;;  %v4586_v42 = vld [vmem:[#allocation34_spill] sm:$0xff] }
 0x698   : > { %2030 = vmatprep.subr.mxu0 %v3784_v43  ;;  %2101 = vmatprep.subr.mxu1 %v3787_v44  ;;  %v4587_v43 = vld [vmem:[#allocation35_spill] sm:$0xff]  ;;  %v4588_v44 = vld [vmem:[#allocation36_spill] sm:$0xff] }
 0x699   : > { %2031 = vmatpush1.msra.mxu0 %v3790_v45  ;;  %2102 = vmatpush1.msra.mxu1 %v3793_v47  ;;  %v4589_v45 = vld [vmem:[#allocation37_spill] sm:$0xff]  ;;  %v4590_v47 = vld [vmem:[#allocation38_spill] sm:$0xff] }
 0x69a   : > { %2032 = vmatprep.subr.mxu0 %v3796_v48  ;;  %2103 = vmatprep.subr.mxu1 %v3799_v49  ;;  %v4591_v48 = vmov 0.0   ;;  %v4592_v49 = vld [vmem:[#allocation39_spill] sm:$0xff] }
 0x69b   : > { %2033 = vmatpush1.msra.mxu0 %v3802_v50  ;;  %2104 = vmatpush1.msra.mxu1 %v3805_v51  ;;  %v4593_v51 = vld [vmem:[#allocation64_spill] sm:$0xff] }
 0x69c   : > { %2034 = vmatprep.subr.mxu0 %v3808_v52  ;;  %2105 = vmatprep.subr.mxu1 %v3811_v53 }
 0x69d   : > { %2035 = vmatpush1.msra.mxu0 %v3814_v54  ;;  %2106 = vmatpush1.msra.mxu1 %v3817_v56  ;;  %v4594_v56 = vld [vmem:[#allocation66_spill] sm:$0xff] }
 0x69e   : > { %2036 = vmatprep.subr.mxu0 %v3820_v57  ;;  %2107 = vmatprep.subr.mxu1 %v3823_v37 }
 0x69f   : > { %2037 = vmatpush1.msra.mxu0 %v3826_v59  ;;  %2108 = vmatpush1.msra.mxu1 %v3829_v9 }
 0x6a0   : > { %2038 = vmatprep.subr.mxu0 %v3832_v60  ;;  %2109 = vmatprep.subr.mxu1 %v3835_v5  ;;  %v4595_v5 = vld [vmem:[#allocation65_spill] sm:$0xff] }
 0x6a1   : > { %2039 = vmatpush1.msra.mxu0 %v3838_v61  ;;  %2110 = vmatpush1.msra.mxu1 %v3841_v7 }
 0x6a2   : > { %2040 = vmatprep.subr.mxu0 %v3844_v6  ;;  %2111 = vmatprep.subr.mxu1 %v3847_v8  ;;  %v4596_v8 = vld [vmem:[#allocation67_spill] sm:$0xff] }
 0x6a3   : > { %2041 = vmatpush1.msra.mxu0 %v3850_v46  ;;  %2112 = vmatpush1.msra.mxu1 %v4521_v62 }
 0x6a4   : > { %2042 = vmatprep.subr.mxu0 %v4522_v3  ;;  %2113 = vmatprep.subr.mxu1 %v4523_v32 }
 0x6a5   : > { %2043 = vmatpush1.msra.mxu0 %v3862_v4  ;;  %2114 = vmatpush1.msra.mxu1 %v3865_v1 }
 0x6a6   : > { %2044 = vmatprep.subr.mxu0 %v3868_v0  ;;  %2115 = vmatprep.subr.mxu1 %v4573_v19 }
 0x6a7   : > { %2045 = vmatpush1.msra.mxu0 %v4574_v63  ;;  %2116 = vmatpush1.msra.mxu1 %v4575_v2 }
 0x6a8   : > { %2046 = vmatprep.subr.mxu0 %v4576_v55  ;;  %2117 = vmatprep.subr.mxu1 %v4577_v10  ;;  %v4599_v10 = vld [vmem:[#allocation69_spill] sm:$0xff] }
 0x6a9   : > { %2047 = vmatpush1.msra.mxu0 %v4578_v11  ;;  %2118 = vmatpush1.msra.mxu1 %v4579_v13 }
 0x6aa   : > { %2048 = vmatprep.subr.mxu0 %v4580_v14  ;;  %2119 = vmatprep.subr.mxu1 %v4581_v15  ;;  %v4600_v14 = vld [vmem:[#allocation71_spill] sm:$0xff] }
 0x6ab   : > { %2049 = vmatpush1.msra.mxu0 %v4582_v38  ;;  %2120 = vmatpush1.msra.mxu1 %v4583_v39 }
 0x6ac   : > { %2050 = vmatprep.subr.mxu0 %v4584_v40  ;;  %2121 = vmatprep.subr.mxu1 %v4585_v41 }
 0x6ad   : > { %2051 = vmatpush1.msra.mxu0 %v4586_v42  ;;  %2122 = vmatpush1.msra.mxu1 %v4587_v43 }
 0x6ae   : > { %2052 = vmatprep.subr.mxu0 %v4588_v44  ;;  %2123 = vmatprep.subr.mxu1 %v4589_v45 }
 0x6af   : > { %2053 = vmatpush1.msra.mxu0 %v4590_v47  ;;  %2086 = vmatprep.mubr.f32.mxu0 %v4591_v48 }
 0x6b0   : > { %2124 = vmatpush1.msra.mxu1 %v4592_v49  ;;  %2157 = vmatprep.mubr.f32.mxu1 %v4591_v48  ;;  %v2197_v48 = vstv %s2196_s18 }
 0x6b1   : > { %vm2198_vm8 = vcmp.eq.s32.totalorder %v2197_v48, 1 }
 0x750   : > { %v1904_v50 = vpop.f32.mrf.mxu0  ;;  %v1975_v9 = vpop.f32.mrf.mxu1 }
 0x751   : > { %v1980_v52 = vadd.f32 %v1904_v50, %v4593_v51  ;;  %v1982_v61 = vadd.f32 %v1975_v9, %v4595_v5 }
 0x752   : > { %v1906_v53 = vpop.f32.mrf.mxu0  ;;  %v1977_v6 = vpop.f32.mrf.mxu1 }
 0x753   : > { %v1984_v54 = vsub.f32 0.0, %v1980_v52  ;;  %v1981_v57 = vadd.f32 %v1906_v53, %v4594_v56  ;;  %v1986_v7 = vsub.f32 0.0, %v1982_v61  ;;  %v1983_v46 = vadd.f32 %v1977_v6, %v4596_v8 }
 0x755   : > { %v1987_v37 = vmul.f32 1.442695, %v1984_v54  ;;  %v1985_v59 = vsub.f32 0.0, %v1981_v57  ;;  %v1991_v4 = vmul.f32 1.442695, %v1986_v7 }
 0x757   : > { %2638 = vpow2.f32 %v1987_v37  ;;  %v1989_v60 = vmul.f32 1.442695, %v1985_v59 }
 0x759   : > { %2640 = vpow2.f32 %v1989_v60 }
 0x75a   : > { %2642 = vtanh.f32 %v1983_v46 }
 0x75b   : > { %2644 = vpow2.f32 %v1991_v4 }
 0x764   : > { %v2639_v1 = vpop.eup %2638 }
 0x765   : > { %v1993_v0 = vadd.f32 1.0, %v2639_v1 }
 0x766   : > { %v2641_v62 = vpop.eup %2640 }
 0x767   : > { %2646 = vrcp.f32 %v1993_v0  ;;  %v1994_v3 = vadd.f32 1.0, %v2641_v62  ;;  %v2643_v32 = vpop.eup %2642 }
 0x768   : > { %v2645_v28 = vpop.eup %2644 }
 0x769   : > { %2648 = vrcp.f32 %v1994_v3  ;;  %v1995_v17 = vadd.f32 1.0, %v2645_v28 }
 0x76b   : > { %2650 = vrcp.f32 %v1995_v17 }
 0x774   : > { %v2647_v36 = vpop.eup %2646 }
 0x775   : > { %v2004_v20 = vmul.f32 %v2647_v36, %v2643_v32 }
 0x776   : > { %v2649_v25 = vpop.eup %2648 }
 0x777   : > { %v2003_v18 = vmul.f32 %v2649_v25, %v4101_v31 }
 0x778   : > { %v2651_v21 = vpop.eup %2650 }
 0x779   : > { %v2005_v23 = vadd.f32 %v2004_v20, %v2003_v18 }
 0x77b   : > { %2652 = vtanh.f32 %v2005_v23  ;;  %v2016_v24 = vsel %vm2014_vm7, %v2005_v23, %v4101_v31 }
 0x788   : > { %v2653_v16 = vpop.eup %2652 }
 0x789   : > { %v2007_v58 = vmul.f32 %v2653_v16, %v2651_v21 }
 0x78b   : > { %2426 = vst [vmem:[%s3164_s15 + $0x30] sm:$0xff] %v2007_v58  ;;  %v2015_v34 = vsel %vm2014_vm7, %v2007_v58, %v4105_v33 }
 0x78c   : > { %2087 = vmatmul.mubr.f32.vlgmr.msra.gmra.mxu0 %v2015_v34  ;;  %2158 = vmatmul.mubr.f32.vlgmr.msra.gmra.mxu1 %v2015_v34 }
 0x84c   : > { %v2088_v29 = vpop.f32.mrf.mxu0  ;;  %v2159_v55 = vpop.f32.mrf.mxu1 }
 0x84d   : > { %v2164_v35 = vadd.f32 %v2088_v29, %v4597_v30  ;;  %v2166_v11 = vadd.f32 %v2159_v55, %v4599_v10 }
 0x84e   : > { %v2090_v12 = vpop.f32.mrf.mxu0  ;;  %v2161_v33 = vpop.f32.mrf.mxu1 }
 0x84f   : > { %v2168_v26 = vsub.f32 0.0, %v2164_v35  ;;  %v2165_v19 = vadd.f32 %v2090_v12, %v4598_v27  ;;  %v2170_v13 = vsub.f32 0.0, %v2166_v11  ;;  %v2167_v15 = vadd.f32 %v2161_v33, %v4600_v14 }
 0x851   : > { %v2171_v63 = vmul.f32 1.442695, %v2168_v26  ;;  %v2169_v2 = vsub.f32 0.0, %v2165_v19  ;;  %v2175_v38 = vmul.f32 1.442695, %v2170_v13 }
 0x853   : > { %2654 = vpow2.f32 %v2171_v63  ;;  %v2173_v31 = vmul.f32 1.442695, %v2169_v2 }
 0x855   : > { %2656 = vpow2.f32 %v2173_v31 }
 0x856   : > { %2658 = vtanh.f32 %v2167_v15 }
 0x857   : > { %2660 = vpow2.f32 %v2175_v38 }
 0x860   : > { %v2655_v39 = vpop.eup %2654 }
 0x861   : > { %v2177_v40 = vadd.f32 1.0, %v2655_v39 }
 0x862   : > { %v2657_v41 = vpop.eup %2656 }
 0x863   : > { %2662 = vrcp.f32 %v2177_v40  ;;  %v2178_v42 = vadd.f32 1.0, %v2657_v41  ;;  %v2659_v43 = vpop.eup %2658 }
 0x864   : > { %v2661_v44 = vpop.eup %2660 }
 0x865   : > { %2664 = vrcp.f32 %v2178_v42  ;;  %v2179_v50 = vadd.f32 1.0, %v2661_v44 }
 0x867   : > { %2666 = vrcp.f32 %v2179_v50 }
 0x870   : > { %v2663_v45 = vpop.eup %2662 }
 0x871   : > { %v2188_v47 = vmul.f32 %v2663_v45, %v2659_v43 }
 0x872   : > { %v2665_v49 = vpop.eup %2664 }
 0x873   : > { %v2187_v51 = vmul.f32 %v2665_v49, %v2016_v24 }
 0x874   : > { %v2667_v54 = vpop.eup %2666 }
 0x875   : > { %v2189_v52 = vadd.f32 %v2188_v47, %v2187_v51 }
 0x877   : > { %2668 = vtanh.f32 %v2189_v52  ;;  %v2200_v53 = vsel %vm2198_vm8, %v2189_v52, %v2016_v24 }
 0x878   : > { %2202 = vst [vmem:[#allocation3] sm:$0xff] %v2200_v53 }
 0x884   : > { %v2669_v56 = vpop.eup %2668  ;;  %2206 = sbr.rel (%p2428_p5) target bundleno = 2186 (0x88a), region = 56 }
 0x885   : > { %v2191_v57 = vmul.f32 %v2669_v56, %v2667_v54 }
 0x887   : > { %2427 = vst [vmem:[%s3164_s15 + $0x38] sm:$0xff] %v2191_v57  ;;  %v2199_v37 = vsel %vm2198_vm8, %v2191_v57, %v2015_v34 }
 0x888   : > { %2201 = vst [vmem:[#allocation2] sm:$0xff] %v2199_v37 }
 0x889   : > { %2207 = vst [vmem:[#allocation12] sm:$0xff] %v2199_v37  ;;  %2208 = vst [vmem:[#allocation14] sm:$0xff] %v2200_v53 }
 0x88a PF: > { %s2210_s30 = scalar_lea.sflag [#allocation7], %s3150_s16  ;;  %p4601_p8 = scmp.ne.s32.totalorder %s4394_s12, 0 }
 0x88b   : > { %s2218_s27 = ssub.s32 (%p4601_p8), 12, %s3565_s20 }
 0x88c   : > { %2216 = sbr.rel (!%p4601_p8) target bundleno = 2220 (0x8ac), region = 60  ;;  %p2219_p2 = scmp.lt.s32.totalorder (%p4601_p8), %s2218_s27, 8 }
 0x891   : > { %s4615_s27 = smov (!%p2219_p2, %s2218_s27), 8 }
 0x892   : > { %s4193_s1 = sshll.u32 %s4615_s27, 7 }
 0x893   : > { %s2223_s17 = ssub.s32 1024, %s4193_s1 }
 0x894   : > { %2224 = vsyncadd %s2210_s30, %s2223_s17  ;;  %p2432_p4 = scmp.ne.s32.totalorder %s4193_s1, 0  ;;  %s2443_s29 = sshll.u32 %s2940_s24, 10 }
 0x895   : > { %s4203_s7 = scalar_lea.hbm %s4278_s4, %s2443_s29  ;;  %s2230_s20 = sshll.u32 %s3164_s15, 4  ;;  %s4206_s20 = int_to_ptr.vmem [resolvable:$true] %s2230_s20 }
 0x896   : > { %s2812_s8 = scalar_lea.vmem %s4206_s20, %s4193_s1  ;;  %s2959_s11 = smov [#allocation11]  }
 0x897   : > { %p2813_p0 = scmp.ne.s32.totalorder %s4206_s20, %s2812_s8  ;;  %s2816_s19 = sshll.u32 %s2959_s11, 4  ;;  %s2817_s19 = int_to_ptr.vmem [resolvable:$false] %s2816_s19 }
 0x898   : > { %s2818_s24 = scalar_lea.vmem %s2817_s19, 2048  ;;  %p2819_p13 = scmp.lt.s32.totalorder %s4206_s20, %s2817_s19 }
 0x899   : > { %p2814_p3 = pnand %p2813_p0, %p2432_p4  ;;  %p2820_p1 = scmp.lt.s32.totalorder %s2818_s24, %s2812_s8 }
 0x89b   : > { %p2815_p12 = pneg %p2814_p3  ;;  %p2821_p7 = por %p2820_p1, %p2819_p13 }
 0x89d   : > { %p2822_p10 = pnand %p2821_p7, %p2815_p12 }
 0x89f   : > { %2825 = shalt.err (!%p2822_p10)
}
 0x8a0   : > { %s2826_s15 = scalar_lea.hbm %s4203_s7, %s4193_s1  ;;  %s2830_s27 = scalar_lea.hbm %s4278_s4, 1536 }
 0x8a1   : > { %p2827_p11 = scmp.ne.s32.totalorder %s4203_s7, %s2826_s15  ;;  %p2831_p8 = scmp.lt.s32.totalorder %s4203_s7, %s4278_s4 }
 0x8a2   : > { %p2832_p2 = scmp.lt.s32.totalorder %s2830_s27, %s2826_s15 }
 0x8a3   : > { %p2828_p6 = pnand %p2827_p11, %p2432_p4 }
 0x8a4   : > { %p2833_p0 = por %p2832_p2, %p2831_p8 }
 0x8a5   : > { %p2829_p5 = pneg %p2828_p6 }
 0x8a7   : > { %p2834_p3 = pnand %p2833_p0, %p2829_p5 }
 0x8a9   : > { %2837 = shalt.err (!%p2834_p3)
}
 0x8aa   : > { %s2960_s12 = smov 128   ;;  %s2961_s28 = smov 8  }
 0x8ab   : > { %2236 = dma.vmem_to_hbm [thread:$0]  (%p2432_p4), %s4206_s20, %s4193_s1, %s4203_s7, %s2210_s30, %s2960_s12, %s2960_s12, %s2961_s28  }
 0x8ac PF: > { %s2962_s8 = smov [#allocation12]   ;;  %s2963_s19 = smov [#allocation14]  }
 0x8ad   : > { %s2246_s11 = sshll.u32 %s2962_s8, 4  ;;  %s2259_s24 = sshll.u32 %s2963_s19, 4  ;;  %s2247_s11 = int_to_ptr.vmem [resolvable:$true] %s2246_s11  ;;  %s2260_s24 = int_to_ptr.vmem [resolvable:$true] %s2259_s24 }
 0x8ae   : > { %s2838_s15 = scalar_lea.vmem %s2247_s11, 128  ;;  %p4602_p13 = scmp.ne.s32.totalorder %s4392_s10, 0 }
 0x8af   : > { %p2839_p12 = scmp.ne.s32.totalorder %s2247_s11, %s2838_s15  ;;  %p2845_p10 = scmp.lt.s32.totalorder %s2247_s11, %s2247_s11 }
 0x8b0   : > { %p2846_p11 = scmp.lt.s32.totalorder %s2838_s15, %s2838_s15 }
 0x8b1   : > { %p2840_p1 = pnand %p2839_p12, %p4602_p13 }
 0x8b2   : > { %p2847_p6 = por %p2846_p11, %p2845_p10 }
 0x8b3   : > { %p2841_p7 = pneg %p2840_p1 }
 0x8b5   : > { %p2848_p5 = pnand %p2847_p6, %p2841_p7 }
 0x8b7   : > { %2851 = shalt.err (!%p2848_p5)
}
 0x8b8   : > { %2454 = dma.vmem_to_hbm [thread:$0]  (%p4602_p13), %s2247_s11, 128, %s4279_s5, [#allocation13]  }
 0x8b9   : > { %s2862_s1 = scalar_lea.vmem %s2260_s24, 128  ;;  %p2869_p0 = scmp.lt.s32.totalorder %s2260_s24, %s2260_s24 }
 0x8ba   : > { %p2863_p4 = scmp.ne.s32.totalorder %s2260_s24, %s2862_s1  ;;  %p2870_p3 = scmp.lt.s32.totalorder %s2862_s1, %s2862_s1 }
 0x8bc   : > { %p2864_p8 = pnand %p2863_p4, %p4602_p13  ;;  %p2871_p12 = por %p2870_p3, %p2869_p0 }
 0x8be   : > { %p2865_p2 = pneg %p2864_p8 }
 0x8c0   : > { %p2872_p1 = pnand %p2871_p12, %p2865_p2 }
 0x8c2   : > { %2875 = shalt.err (!%p2872_p1)
}
 0x8c3   : > { %2456 = dma.vmem_to_hbm [thread:$0]  (%p4602_p13), %s2260_s24, 128, %s4280_s6, [#allocation13]  }
 0x8c4   : > { %2919 = dma.done.wait (%p4602_p13), [#allocation13], 256  }
 0x8c5   : > { %2921 = vsyncadd (%p4602_p13), [#allocation13], 4294967040 }
 0x8c6 PF: > { %s2279_s9 = sand.u32 1, %s2928_s21   ;;  %p4603_p7 = scmp.ne.s32.totalorder %s4395_s14, 0 }
 0x8c7   : > { %s2280_s18 = scalar_lea.sflag [#allocation7], %s2279_s9 }
 0x8c8   : > { %p2470_p10 = pnand %p2390_p9, %p4603_p7 }
 0x8ca   : > { %p2471_p11 = pneg %p2470_p10 }
 0x8cc   : > { %2923 = dma.done.wait (%p2471_p11), %s2280_s18, 1024  }
 0x8cd   : > { %2925 = vsyncadd (%p2471_p11), %s2280_s18, 4294966272  ;;  %s25_s26 = sadd.s32 1, %s2948_s26   ;;  %s4604_s10 = sld [smem:[#allocation19_spill]] }
 0x8ce   : > { %p22_p6 = scmp.ge.s32.totalorder %s25_s26, 4   ;;  %s4605_s21 = smov %s2932_s22 }
 0x8cf   : > { %s4606_s22 = smov %s2936_s23  ;;  %s4607_s23 = smov %s3067_s13 }
 0x8d0   : > { %s4608_s24 = smov %s2944_s25  ;;  %24 = sbr.rel (!%p22_p6) target bundleno = 10 (0xa), region = 129 }
 0x8d3   : > { %s4609_s25 = smov %s4604_s10 }
 0x8d5   :  { %2285 = vsyncpa [#allocation6], 1 }
 0x8d6   :  { %2287 = vsyncpa [#allocation6 + $0x1], 1 }
 0x8d7   :  { %2288 = vsyncpa [#allocation9], 1 }
 0x8d8   :  { %2289 = vsyncpa [#allocation7], 1 }
 0x8d9   :  { %2291 = vsyncpa [#allocation7 + $0x1], 1 }
 0x8da   :  { %2292 = vsyncpa [#allocation13], 1 }

</bundles_post_ra>
